<compile_context>
chip_gen: v5e
topology: v5e:2x2
jax: 0.10.0
libtpu: 0.0.40
codegen_flags: <defaults>
</compile_context>

<pallas_src>
from functools import partial

import jax
import jax.numpy as jnp
from jax.experimental import pallas as pl
from jax.experimental.pallas import tpu as pltpu


# ----------------------------- fused Pallas kernel ---------------------------

def elmo_fused_kernel(
    x_ref,       # (T, B, E)   time-major embeddings
    wih1_ref,    # (E, 4H)     layer-1 W_ih^T
    whh1_ref,    # (H, 4H)     layer-1 W_hh^T
    b1_ref,      # (1, 4H)     layer-1 b_ih + b_hh
    wih2_ref,    # (H, 4H)     layer-2 W_ih^T
    whh2_ref,    # (H, 4H)     layer-2 W_hh^T
    b2_ref,      # (1, 4H)     layer-2 b_ih + b_hh
    wh1_ref,     # (H, V)      head weight for l1 block (W[:, :H]^T)
    wh2_ref,     # (H, V)      head weight for l2 block (W[:, H:]^T)
    bh_ref,      # (1, V)      head bias
    out_ref,     # (T, B, V)   logits, time-major
    pre_scr,     # (T, B, 4H)  scratch: hoisted input projection (reused)
    l1_scr,      # (T, B, H)   scratch: layer-1 hidden states
    l2_scr,      # (T, B, H)   scratch: layer-2 hidden states
):
    T, B, E = x_ref.shape
    H = whh1_ref.shape[0]
    V = bh_ref.shape[1]

    # Load weights / biases once (hoisted out of the recurrent loops).
    wih1 = wih1_ref[...]
    whh1 = whh1_ref[...]
    b1 = b1_ref[...]
    wih2 = wih2_ref[...]
    whh2 = whh2_ref[...]
    b2 = b2_ref[...]

    def run_layer(in_flat, wih, whh, b, out_scr):
        # Hoisted input projection: one (T*B, D) x (D, 4H) matmul for all
        # timesteps, written to VMEM scratch.
        pre_scr[...] = (
            jnp.dot(in_flat, wih, preferred_element_type=jnp.float32) + b
        ).reshape(T, B, 4 * H)

        def step(t, carry):
            h, c = carry
            # Serial critical path: one small matmul + VPU/EUP work.
            gates = pre_scr[t] + jnp.dot(
                h, whh, preferred_element_type=jnp.float32)        # (B, 4H)
            sig = jax.nn.sigmoid(gates)        # one EUP pass over full slab
            i = sig[:, 0 * H:1 * H]
            f = sig[:, 1 * H:2 * H]
            o = sig[:, 3 * H:4 * H]
            g = jnp.tanh(gates[:, 2 * H:3 * H])
            c_new = f * c + i * g
            h_new = o * jnp.tanh(c_new)
            out_scr[t] = h_new
            return h_new, c_new

        h0 = jnp.zeros((B, H), jnp.float32)
        c0 = jnp.zeros((B, H), jnp.float32)
        # T is a tiny static trip count -> fully unroll for LLO visibility.
        jax.lax.fori_loop(0, T, step, (h0, c0), unroll=True)

    # Layer 1
    x_flat = x_ref[...].reshape(T * B, E)
    run_layer(x_flat, wih1, whh1, b1, l1_scr)

    # Layer 2 (input is layer-1 hidden states, VMEM resident)
    l1_flat = l1_scr[...].reshape(T * B, H)
    run_layer(l1_flat, wih2, whh2, b2, l2_scr)

    # Fused concat + linear head:  cat(l1, l2) @ W^T + b == l1@W1 + l2@W2 + b
    l2_flat = l2_scr[...].reshape(T * B, H)
    logits = (
        jnp.dot(l1_flat, wh1_ref[...], preferred_element_type=jnp.float32)
        + jnp.dot(l2_flat, wh2_ref[...], preferred_element_type=jnp.float32)
        + bh_ref[...]
    )
    out_ref[...] = logits.reshape(T, B, V)


# --------------------------------- wrappers ----------------------------------

_VMEM_SPEC = pl.BlockSpec(memory_space=pltpu.MemorySpace.VMEM)


def _elmo_stack(embed_tbe, lstm1, lstm2, head_w, head_b):
    """Run (LSTM -> LSTM -> fused concat+Linear) in one pallas_call.

    embed_tbe : (T, B, E) float32 time-major embeddings
    lstm*     : (w_ih (4H,D), w_hh (4H,H), b_ih (4H,), b_hh (4H,))
    head_w    : (V, 2H), head_b: (V,)
    returns   : (T, B, V) float32 logits (time-major)
    """
    T, B, E = embed_tbe.shape
    w_ih1, w_hh1, b_ih1, b_hh1 = lstm1
    w_ih2, w_hh2, b_ih2, b_hh2 = lstm2
    H = w_hh1.shape[1]
    V = head_w.shape[0]

    wih1_t = jnp.transpose(w_ih1)                    # (E, 4H)
    whh1_t = jnp.transpose(w_hh1)                    # (H, 4H)
    b1 = (b_ih1 + b_hh1).reshape(1, 4 * H)
    wih2_t = jnp.transpose(w_ih2)                    # (H, 4H)
    whh2_t = jnp.transpose(w_hh2)                    # (H, 4H)
    b2 = (b_ih2 + b_hh2).reshape(1, 4 * H)
    wh1 = jnp.transpose(head_w[:, :H])               # (H, V)
    wh2 = jnp.transpose(head_w[:, H:])               # (H, V)
    bh = head_b.reshape(1, V)

    flops = (
        2 * T * B * E * 4 * H            # layer-1 input projection
        + 2 * T * B * H * 4 * H          # layer-2 input projection
        + 2 * 2 * T * B * H * 4 * H      # recurrent h @ W_hh (2 layers)
        + 2 * T * B * 2 * H * V          # fused head
    )
    transcendentals = 2 * T * B * (4 * H + 2 * H)
    bytes_accessed = 4 * (
        T * B * E + E * 4 * H + 3 * H * 4 * H + 2 * 4 * H
        + 2 * H * V + V + T * B * V
    )

    return pl.pallas_call(
        elmo_fused_kernel,
        out_shape=jax.ShapeDtypeStruct((T, B, V), jnp.float32),
        in_specs=[_VMEM_SPEC] * 10,
        out_specs=_VMEM_SPEC,
        scratch_shapes=[
            pltpu.VMEM((T, B, 4 * H), jnp.float32),   # pre-gates (reused)
            pltpu.VMEM((T, B, H), jnp.float32),       # l1 hidden states
            pltpu.VMEM((T, B, H), jnp.float32),       # l2 hidden states
        ],
        cost_estimate=pl.CostEstimate(
            flops=flops,
            transcendentals=transcendentals,
            bytes_accessed=bytes_accessed,
        ),
    )(embed_tbe.astype(jnp.float32), wih1_t, whh1_t, b1,
      wih2_t, whh2_t, b2, wh1, wh2, bh)


@partial(jax.jit, static_argnames=("mode",))
def elmo_forward(params, input_data, mode):
    """Mirrors ELMo.forward(input_data, mode).  Returns (B, T, vocab) logits."""
    # Embedding gather done directly in time-major order (no transpose kernel).
    emb_tbe = jnp.take(params["embedding"], input_data.T, axis=0)   # (T, B, E)
    if mode == 1:
        out_tbv = _elmo_stack(emb_tbe, params["lstm_f1"], params["lstm_f2"],
                              params["lin1_w"], params["lin1_b"])
    elif mode == 2:
        out_tbv = _elmo_stack(emb_tbe, params["lstm_b1"], params["lstm_b2"],
                              params["lin2_w"], params["lin2_b"])
    else:
        raise ValueError("mode must be 1 or 2")
    return jnp.transpose(out_tbv, (1, 0, 2))                        # (B, T, V)


# --------------------------- pure-JAX reference -------------------------------

def _ref_lstm(x_btd, w_ih, w_hh, b_ih, b_hh):
    B, T, _ = x_btd.shape
    H = w_hh.shape[1]

    def step(carry, x_t):
        h, c = carry
        gates = x_t @ w_ih.T + h @ w_hh.T + b_ih + b_hh
        i = jax.nn.sigmoid(gates[:, 0 * H:1 * H])
        f = jax.nn.sigmoid(gates[:, 1 * H:2 * H])
        g = jnp.tanh(gates[:, 2 * H:3 * H])
        o = jax.nn.sigmoid(gates[:, 3 * H:4 * H])
        c_new = f * c + i * g
        h_new = o * jnp.tanh(c_new)
        return (h_new, c_new), h_new

    x_tbd = jnp.swapaxes(x_btd, 0, 1)
    init = (jnp.zeros((B, H), jnp.float32), jnp.zeros((B, H), jnp.float32))
    _, hs = jax.lax.scan(step, init, x_tbd)
    return jnp.swapaxes(hs, 0, 1)


@partial(jax.jit, static_argnames=("mode",))
def elmo_reference(params, input_data, mode):
    emb = jnp.take(params["embedding"], input_data, axis=0)
    if mode == 1:
        l1 = _ref_lstm(emb, *params["lstm_f1"])
        l2 = _ref_lstm(l1, *params["lstm_f2"])
        cat = jnp.concatenate([l1, l2], axis=-1)
        return cat @ params["lin1_w"].T + params["lin1_b"]
    else:
        l1 = _ref_lstm(emb, *params["lstm_b1"])
        l2 = _ref_lstm(l1, *params["lstm_b2"])
        cat = jnp.concatenate([l1, l2], axis=-1)
        return cat @ params["lin2_w"].T + params["lin2_b"]


# -------------------------------- param setup ---------------------------------

def make_lstm_params(key, in_dim, hidden_dim):
    k1, k2, k3, k4 = jax.random.split(key, 4)
    scale = 0.1
    w_ih = scale * jax.random.normal(k1, (4 * hidden_dim, in_dim), jnp.float32)
    w_hh = scale * jax.random.normal(k2, (4 * hidden_dim, hidden_dim), jnp.float32)
    b_ih = scale * jax.random.normal(k3, (4 * hidden_dim,), jnp.float32)
    b_hh = scale * jax.random.normal(k4, (4 * hidden_dim,), jnp.float32)
    return (w_ih, w_hh, b_ih, b_hh)


def make_params(key, vocab_size, embedding_dim, hidden_dim):
    keys = jax.random.split(key, 7)
    return {
        "embedding": 0.1 * jax.random.normal(
            keys[0], (vocab_size, embedding_dim), jnp.float32),
        "lstm_f1": make_lstm_params(keys[1], embedding_dim, hidden_dim),
        "lstm_f2": make_lstm_params(keys[2], hidden_dim, hidden_dim),
        "lstm_b1": make_lstm_params(keys[3], embedding_dim, hidden_dim),
        "lstm_b2": make_lstm_params(keys[4], hidden_dim, hidden_dim),
        "lin1_w": 0.1 * jax.random.normal(
            keys[5], (vocab_size, 2 * hidden_dim), jnp.float32),
        "lin1_b": jnp.zeros((vocab_size,), jnp.float32),
        "lin2_w": 0.1 * jax.random.normal(
            keys[6], (vocab_size, 2 * hidden_dim), jnp.float32),
        "lin2_b": jnp.zeros((vocab_size,), jnp.float32),
    }


# ----------------------------------- main --------------------------------------

if __name__ == "__main__":
    # Small, vreg-friendly demo shapes (seq_len = ngram_size = 6 from the spec;
    # B = 8 sublanes, E = H = 128 lanes, V = 256 lanes for dense stores).
    vocab_size = 256
    embedding_dim = 128
    hidden_dim = 128
    batch = 8
    seq_len = 6

    key = jax.random.PRNGKey(0)
    pkey, dkey = jax.random.split(key)
    params = make_params(pkey, vocab_size, embedding_dim, hidden_dim)
    input_data = jax.random.randint(
        dkey, (batch, seq_len), 0, vocab_size, dtype=jnp.int32)

    out_mode1 = elmo_forward(params, input_data, mode=1)   # (B, T, V)
    out_mode2 = elmo_forward(params, input_data, mode=2)
    jax.block_until_ready(out_mode1)
    jax.block_until_ready(out_mode2)

    assert out_mode1.shape == (batch, seq_len, vocab_size)
    assert out_mode2.shape == (batch, seq_len, vocab_size)
    assert jnp.all(jnp.isfinite(out_mode1)) and jnp.all(jnp.isfinite(out_mode2))

    # Correctness vs. a pure-JAX reference of the PyTorch module.
    ref1 = jax.block_until_ready(elmo_reference(params, input_data, mode=1))
    ref2 = jax.block_until_ready(elmo_reference(params, input_data, mode=2))
    assert jnp.allclose(out_mode1, ref1, atol=2e-2, rtol=2e-2)
    assert jnp.allclose(out_mode2, ref2, atol=2e-2, rtol=2e-2)

    print("KERNEL_OK")
</pallas_src>

<mosaic_0001>
module attributes {stable_mosaic.version = 11 : i64} {
  func.func @elmo_fused_kernel(%arg0: memref<6x8x128xf32, #tpu.memory_space<vmem>>, %arg1: memref<128x512xf32, #tpu.memory_space<vmem>>, %arg2: memref<128x512xf32, #tpu.memory_space<vmem>>, %arg3: memref<1x512xf32, #tpu.memory_space<vmem>>, %arg4: memref<128x512xf32, #tpu.memory_space<vmem>>, %arg5: memref<128x512xf32, #tpu.memory_space<vmem>>, %arg6: memref<1x512xf32, #tpu.memory_space<vmem>>, %arg7: memref<128x256xf32, #tpu.memory_space<vmem>>, %arg8: memref<128x256xf32, #tpu.memory_space<vmem>>, %arg9: memref<1x256xf32, #tpu.memory_space<vmem>>, %arg10: memref<6x8x256xf32, #tpu.memory_space<vmem>>, %arg11: memref<6x8x512xf32, #tpu.memory_space<vmem>>, %arg12: memref<6x8x128xf32, #tpu.memory_space<vmem>>, %arg13: memref<6x8x128xf32, #tpu.memory_space<vmem>>) attributes {dimension_semantics = [], scalar_prefetch = 0 : i64, scratch_operands = 3 : i64, tpu.core_type = #tpu.core_type<tc>} {
    %c0 = arith.constant 0 : index
    %c0_0 = arith.constant 0 : index
    %0 = vector.load %arg1[%c0, %c0_0] : memref<128x512xf32, #tpu.memory_space<vmem>>, vector<128x512xf32>
    %c0_1 = arith.constant 0 : index
    %c0_2 = arith.constant 0 : index
    %1 = vector.load %arg2[%c0_1, %c0_2] : memref<128x512xf32, #tpu.memory_space<vmem>>, vector<128x512xf32>
    %c0_3 = arith.constant 0 : index
    %c0_4 = arith.constant 0 : index
    %2 = vector.load %arg3[%c0_3, %c0_4] : memref<1x512xf32, #tpu.memory_space<vmem>>, vector<1x512xf32>
    %c0_5 = arith.constant 0 : index
    %c0_6 = arith.constant 0 : index
    %3 = vector.load %arg4[%c0_5, %c0_6] : memref<128x512xf32, #tpu.memory_space<vmem>>, vector<128x512xf32>
    %c0_7 = arith.constant 0 : index
    %c0_8 = arith.constant 0 : index
    %4 = vector.load %arg5[%c0_7, %c0_8] : memref<128x512xf32, #tpu.memory_space<vmem>>, vector<128x512xf32>
    %c0_9 = arith.constant 0 : index
    %c0_10 = arith.constant 0 : index
    %5 = vector.load %arg6[%c0_9, %c0_10] : memref<1x512xf32, #tpu.memory_space<vmem>>, vector<1x512xf32>
    %c0_11 = arith.constant 0 : index
    %c0_12 = arith.constant 0 : index
    %c0_13 = arith.constant 0 : index
    %6 = vector.load %arg0[%c0_11, %c0_12, %c0_13] : memref<6x8x128xf32, #tpu.memory_space<vmem>>, vector<6x8x128xf32>
    %7 = vector.shape_cast %6 : vector<6x8x128xf32> to vector<48x128xf32>
    %cst = arith.constant dense<0.000000e+00> : vector<48x512xf32>
    %8 = tpu.matmul %7, %0, %cst {dimension_numbers = #tpu.dot_dimension_numbers<[1], [0], [0], [1], [0, 0, 1, 1], [], []>} : vector<48x128xf32>, vector<128x512xf32>, vector<48x512xf32> -> vector<48x512xf32>
    %9 = vector.broadcast %2 : vector<1x512xf32> to vector<48x512xf32>
    %10 = arith.addf %8, %9 : vector<48x512xf32>
    %11 = vector.shape_cast %10 : vector<48x512xf32> to vector<6x8x512xf32>
    %c0_14 = arith.constant 0 : index
    %c0_15 = arith.constant 0 : index
    %c0_16 = arith.constant 0 : index
    %12 = vector.load %arg11[%c0_14, %c0_15, %c0_16] : memref<6x8x512xf32, #tpu.memory_space<vmem>>, vector<6x8x512xf32>
    tpu.vector_store %arg11[%c0_14, %c0_15, %c0_16], %11 {strides = array<i32>} : memref<6x8x512xf32, #tpu.memory_space<vmem>>, vector<6x8x512xf32>,
    %cst_17 = arith.constant 0.000000e+00 : f32
    %13 = vector.broadcast %cst_17 : f32 to vector<8x128xf32>
    %cst_18 = arith.constant 0.000000e+00 : f32
    %14 = vector.broadcast %cst_18 : f32 to vector<8x128xf32>
    %c0_i32 = arith.constant 0 : i32
    %15 = arith.index_cast %c0_i32 : i32 to index
    %c0_19 = arith.constant 0 : index
    %c0_20 = arith.constant 0 : index
    %16 = vector.load %arg11[%15, %c0_19, %c0_20] : memref<6x8x512xf32, #tpu.memory_space<vmem>>, vector<1x8x512xf32>
    %17 = vector.shape_cast %16 : vector<1x8x512xf32> to vector<8x512xf32>
    %cst_21 = arith.constant dense<0.000000e+00> : vector<8x512xf32>
    %18 = tpu.matmul %13, %1, %cst_21 {dimension_numbers = #tpu.dot_dimension_numbers<[1], [0], [0], [1], [0, 0, 1, 1], [], []>} : vector<8x128xf32>, vector<128x512xf32>, vector<8x512xf32> -> vector<8x512xf32>
    %19 = arith.addf %17, %18 : vector<8x512xf32>
    %20 = arith.negf %19 : vector<8x512xf32>
    %21 = math.exp %20 : vector<8x512xf32>
    %cst_22 = arith.constant 1.000000e+00 : f32
    %22 = vector.broadcast %cst_22 : f32 to vector<8x512xf32>
    %23 = arith.addf %22, %21 : vector<8x512xf32>
    %24 = arith.divf %22, %23 : vector<8x512xf32>
    %25 = vector.extract_strided_slice %24 {offsets = [0, 0], sizes = [8, 128], strides = [1, 1]} : vector<8x512xf32> to vector<8x128xf32>
    %26 = vector.extract_strided_slice %24 {offsets = [0, 128], sizes = [8, 128], strides = [1, 1]} : vector<8x512xf32> to vector<8x128xf32>
    %27 = vector.extract_strided_slice %24 {offsets = [0, 384], sizes = [8, 128], strides = [1, 1]} : vector<8x512xf32> to vector<8x128xf32>
    %28 = vector.extract_strided_slice %19 {offsets = [0, 256], sizes = [8, 128], strides = [1, 1]} : vector<8x512xf32> to vector<8x128xf32>
    %29 = math.tanh %28 : vector<8x128xf32>
    %30 = arith.mulf %26, %14 : vector<8x128xf32>
    %31 = arith.mulf %25, %29 : vector<8x128xf32>
    %32 = arith.addf %30, %31 : vector<8x128xf32>
    %33 = math.tanh %32 : vector<8x128xf32>
    %34 = arith.mulf %27, %33 : vector<8x128xf32>
    %35 = arith.index_cast %c0_i32 : i32 to index
    %c0_23 = arith.constant 0 : index
    %c0_24 = arith.constant 0 : index
    %36 = vector.load %arg12[%35, %c0_23, %c0_24] : memref<6x8x128xf32, #tpu.memory_space<vmem>>, vector<1x8x128xf32>
    %37 = vector.shape_cast %36 : vector<1x8x128xf32> to vector<8x128xf32>
    %38 = vector.shape_cast %34 : vector<8x128xf32> to vector<1x8x128xf32>
    tpu.vector_store %arg12[%35, %c0_23, %c0_24], %38 {strides = array<i32>} : memref<6x8x128xf32, #tpu.memory_space<vmem>>, vector<1x8x128xf32>,
    %c1_i32 = arith.constant 1 : i32
    %39 = arith.index_cast %c1_i32 : i32 to index
    %c0_25 = arith.constant 0 : index
    %c0_26 = arith.constant 0 : index
    %40 = vector.load %arg11[%39, %c0_25, %c0_26] : memref<6x8x512xf32, #tpu.memory_space<vmem>>, vector<1x8x512xf32>
    %41 = vector.shape_cast %40 : vector<1x8x512xf32> to vector<8x512xf32>
    %cst_27 = arith.constant dense<0.000000e+00> : vector<8x512xf32>
    %42 = tpu.matmul %34, %1, %cst_27 {dimension_numbers = #tpu.dot_dimension_numbers<[1], [0], [0], [1], [0, 0, 1, 1], [], []>} : vector<8x128xf32>, vector<128x512xf32>, vector<8x512xf32> -> vector<8x512xf32>
    %43 = arith.addf %41, %42 : vector<8x512xf32>
    %44 = arith.negf %43 : vector<8x512xf32>
    %45 = math.exp %44 : vector<8x512xf32>
    %cst_28 = arith.constant 1.000000e+00 : f32
    %46 = vector.broadcast %cst_28 : f32 to vector<8x512xf32>
    %47 = arith.addf %46, %45 : vector<8x512xf32>
    %48 = arith.divf %46, %47 : vector<8x512xf32>
    %49 = vector.extract_strided_slice %48 {offsets = [0, 0], sizes = [8, 128], strides = [1, 1]} : vector<8x512xf32> to vector<8x128xf32>
    %50 = vector.extract_strided_slice %48 {offsets = [0, 128], sizes = [8, 128], strides = [1, 1]} : vector<8x512xf32> to vector<8x128xf32>
    %51 = vector.extract_strided_slice %48 {offsets = [0, 384], sizes = [8, 128], strides = [1, 1]} : vector<8x512xf32> to vector<8x128xf32>
    %52 = vector.extract_strided_slice %43 {offsets = [0, 256], sizes = [8, 128], strides = [1, 1]} : vector<8x512xf32> to vector<8x128xf32>
    %53 = math.tanh %52 : vector<8x128xf32>
    %54 = arith.mulf %50, %32 : vector<8x128xf32>
    %55 = arith.mulf %49, %53 : vector<8x128xf32>
    %56 = arith.addf %54, %55 : vector<8x128xf32>
    %57 = math.tanh %56 : vector<8x128xf32>
    %58 = arith.mulf %51, %57 : vector<8x128xf32>
    %59 = arith.index_cast %c1_i32 : i32 to index
    %c0_29 = arith.constant 0 : index
    %c0_30 = arith.constant 0 : index
    %60 = vector.load %arg12[%59, %c0_29, %c0_30] : memref<6x8x128xf32, #tpu.memory_space<vmem>>, vector<1x8x128xf32>
    %61 = vector.shape_cast %60 : vector<1x8x128xf32> to vector<8x128xf32>
    %62 = vector.shape_cast %58 : vector<8x128xf32> to vector<1x8x128xf32>
    tpu.vector_store %arg12[%59, %c0_29, %c0_30], %62 {strides = array<i32>} : memref<6x8x128xf32, #tpu.memory_space<vmem>>, vector<1x8x128xf32>,
    %c2_i32 = arith.constant 2 : i32
    %63 = arith.index_cast %c2_i32 : i32 to index
    %c0_31 = arith.constant 0 : index
    %c0_32 = arith.constant 0 : index
    %64 = vector.load %arg11[%63, %c0_31, %c0_32] : memref<6x8x512xf32, #tpu.memory_space<vmem>>, vector<1x8x512xf32>
    %65 = vector.shape_cast %64 : vector<1x8x512xf32> to vector<8x512xf32>
    %cst_33 = arith.constant dense<0.000000e+00> : vector<8x512xf32>
    %66 = tpu.matmul %58, %1, %cst_33 {dimension_numbers = #tpu.dot_dimension_numbers<[1], [0], [0], [1], [0, 0, 1, 1], [], []>} : vector<8x128xf32>, vector<128x512xf32>, vector<8x512xf32> -> vector<8x512xf32>
    %67 = arith.addf %65, %66 : vector<8x512xf32>
    %68 = arith.negf %67 : vector<8x512xf32>
    %69 = math.exp %68 : vector<8x512xf32>
    %cst_34 = arith.constant 1.000000e+00 : f32
    %70 = vector.broadcast %cst_34 : f32 to vector<8x512xf32>
    %71 = arith.addf %70, %69 : vector<8x512xf32>
    %72 = arith.divf %70, %71 : vector<8x512xf32>
    %73 = vector.extract_strided_slice %72 {offsets = [0, 0], sizes = [8, 128], strides = [1, 1]} : vector<8x512xf32> to vector<8x128xf32>
    %74 = vector.extract_strided_slice %72 {offsets = [0, 128], sizes = [8, 128], strides = [1, 1]} : vector<8x512xf32> to vector<8x128xf32>
    %75 = vector.extract_strided_slice %72 {offsets = [0, 384], sizes = [8, 128], strides = [1, 1]} : vector<8x512xf32> to vector<8x128xf32>
    %76 = vector.extract_strided_slice %67 {offsets = [0, 256], sizes = [8, 128], strides = [1, 1]} : vector<8x512xf32> to vector<8x128xf32>
    %77 = math.tanh %76 : vector<8x128xf32>
    %78 = arith.mulf %74, %56 : vector<8x128xf32>
    %79 = arith.mulf %73, %77 : vector<8x128xf32>
    %80 = arith.addf %78, %79 : vector<8x128xf32>
    %81 = math.tanh %80 : vector<8x128xf32>
    %82 = arith.mulf %75, %81 : vector<8x128xf32>
    %83 = arith.index_cast %c2_i32 : i32 to index
    %c0_35 = arith.constant 0 : index
    %c0_36 = arith.constant 0 : index
    %84 = vector.load %arg12[%83, %c0_35, %c0_36] : memref<6x8x128xf32, #tpu.memory_space<vmem>>, vector<1x8x128xf32>
    %85 = vector.shape_cast %84 : vector<1x8x128xf32> to vector<8x128xf32>
    %86 = vector.shape_cast %82 : vector<8x128xf32> to vector<1x8x128xf32>
    tpu.vector_store %arg12[%83, %c0_35, %c0_36], %86 {strides = array<i32>} : memref<6x8x128xf32, #tpu.memory_space<vmem>>, vector<1x8x128xf32>,
    %c3_i32 = arith.constant 3 : i32
    %87 = arith.index_cast %c3_i32 : i32 to index
    %c0_37 = arith.constant 0 : index
    %c0_38 = arith.constant 0 : index
    %88 = vector.load %arg11[%87, %c0_37, %c0_38] : memref<6x8x512xf32, #tpu.memory_space<vmem>>, vector<1x8x512xf32>
    %89 = vector.shape_cast %88 : vector<1x8x512xf32> to vector<8x512xf32>
    %cst_39 = arith.constant dense<0.000000e+00> : vector<8x512xf32>
    %90 = tpu.matmul %82, %1, %cst_39 {dimension_numbers = #tpu.dot_dimension_numbers<[1], [0], [0], [1], [0, 0, 1, 1], [], []>} : vector<8x128xf32>, vector<128x512xf32>, vector<8x512xf32> -> vector<8x512xf32>
    %91 = arith.addf %89, %90 : vector<8x512xf32>
    %92 = arith.negf %91 : vector<8x512xf32>
    %93 = math.exp %92 : vector<8x512xf32>
    %cst_40 = arith.constant 1.000000e+00 : f32
    %94 = vector.broadcast %cst_40 : f32 to vector<8x512xf32>
    %95 = arith.addf %94, %93 : vector<8x512xf32>
    %96 = arith.divf %94, %95 : vector<8x512xf32>
    %97 = vector.extract_strided_slice %96 {offsets = [0, 0], sizes = [8, 128], strides = [1, 1]} : vector<8x512xf32> to vector<8x128xf32>
    %98 = vector.extract_strided_slice %96 {offsets = [0, 128], sizes = [8, 128], strides = [1, 1]} : vector<8x512xf32> to vector<8x128xf32>
    %99 = vector.extract_strided_slice %96 {offsets = [0, 384], sizes = [8, 128], strides = [1, 1]} : vector<8x512xf32> to vector<8x128xf32>
    %100 = vector.extract_strided_slice %91 {offsets = [0, 256], sizes = [8, 128], strides = [1, 1]} : vector<8x512xf32> to vector<8x128xf32>
    %101 = math.tanh %100 : vector<8x128xf32>
    %102 = arith.mulf %98, %80 : vector<8x128xf32>
    %103 = arith.mulf %97, %101 : vector<8x128xf32>
    %104 = arith.addf %102, %103 : vector<8x128xf32>
    %105 = math.tanh %104 : vector<8x128xf32>
    %106 = arith.mulf %99, %105 : vector<8x128xf32>
    %107 = arith.index_cast %c3_i32 : i32 to index
    %c0_41 = arith.constant 0 : index
    %c0_42 = arith.constant 0 : index
    %108 = vector.load %arg12[%107, %c0_41, %c0_42] : memref<6x8x128xf32, #tpu.memory_space<vmem>>, vector<1x8x128xf32>
    %109 = vector.shape_cast %108 : vector<1x8x128xf32> to vector<8x128xf32>
    %110 = vector.shape_cast %106 : vector<8x128xf32> to vector<1x8x128xf32>
    tpu.vector_store %arg12[%107, %c0_41, %c0_42], %110 {strides = array<i32>} : memref<6x8x128xf32, #tpu.memory_space<vmem>>, vector<1x8x128xf32>,
    %c4_i32 = arith.constant 4 : i32
    %111 = arith.index_cast %c4_i32 : i32 to index
    %c0_43 = arith.constant 0 : index
    %c0_44 = arith.constant 0 : index
    %112 = vector.load %arg11[%111, %c0_43, %c0_44] : memref<6x8x512xf32, #tpu.memory_space<vmem>>, vector<1x8x512xf32>
    %113 = vector.shape_cast %112 : vector<1x8x512xf32> to vector<8x512xf32>
    %cst_45 = arith.constant dense<0.000000e+00> : vector<8x512xf32>
    %114 = tpu.matmul %106, %1, %cst_45 {dimension_numbers = #tpu.dot_dimension_numbers<[1], [0], [0], [1], [0, 0, 1, 1], [], []>} : vector<8x128xf32>, vector<128x512xf32>, vector<8x512xf32> -> vector<8x512xf32>
    %115 = arith.addf %113, %114 : vector<8x512xf32>
    %116 = arith.negf %115 : vector<8x512xf32>
    %117 = math.exp %116 : vector<8x512xf32>
    %cst_46 = arith.constant 1.000000e+00 : f32
    %118 = vector.broadcast %cst_46 : f32 to vector<8x512xf32>
    %119 = arith.addf %118, %117 : vector<8x512xf32>
    %120 = arith.divf %118, %119 : vector<8x512xf32>
    %121 = vector.extract_strided_slice %120 {offsets = [0, 0], sizes = [8, 128], strides = [1, 1]} : vector<8x512xf32> to vector<8x128xf32>
    %122 = vector.extract_strided_slice %120 {offsets = [0, 128], sizes = [8, 128], strides = [1, 1]} : vector<8x512xf32> to vector<8x128xf32>
    %123 = vector.extract_strided_slice %120 {offsets = [0, 384], sizes = [8, 128], strides = [1, 1]} : vector<8x512xf32> to vector<8x128xf32>
    %124 = vector.extract_strided_slice %115 {offsets = [0, 256], sizes = [8, 128], strides = [1, 1]} : vector<8x512xf32> to vector<8x128xf32>
    %125 = math.tanh %124 : vector<8x128xf32>
    %126 = arith.mulf %122, %104 : vector<8x128xf32>
    %127 = arith.mulf %121, %125 : vector<8x128xf32>
    %128 = arith.addf %126, %127 : vector<8x128xf32>
    %129 = math.tanh %128 : vector<8x128xf32>
    %130 = arith.mulf %123, %129 : vector<8x128xf32>
    %131 = arith.index_cast %c4_i32 : i32 to index
    %c0_47 = arith.constant 0 : index
    %c0_48 = arith.constant 0 : index
    %132 = vector.load %arg12[%131, %c0_47, %c0_48] : memref<6x8x128xf32, #tpu.memory_space<vmem>>, vector<1x8x128xf32>
    %133 = vector.shape_cast %132 : vector<1x8x128xf32> to vector<8x128xf32>
    %134 = vector.shape_cast %130 : vector<8x128xf32> to vector<1x8x128xf32>
    tpu.vector_store %arg12[%131, %c0_47, %c0_48], %134 {strides = array<i32>} : memref<6x8x128xf32, #tpu.memory_space<vmem>>, vector<1x8x128xf32>,
    %c5_i32 = arith.constant 5 : i32
    %135 = arith.index_cast %c5_i32 : i32 to index
    %c0_49 = arith.constant 0 : index
    %c0_50 = arith.constant 0 : index
    %136 = vector.load %arg11[%135, %c0_49, %c0_50] : memref<6x8x512xf32, #tpu.memory_space<vmem>>, vector<1x8x512xf32>
    %137 = vector.shape_cast %136 : vector<1x8x512xf32> to vector<8x512xf32>
    %cst_51 = arith.constant dense<0.000000e+00> : vector<8x512xf32>
    %138 = tpu.matmul %130, %1, %cst_51 {dimension_numbers = #tpu.dot_dimension_numbers<[1], [0], [0], [1], [0, 0, 1, 1], [], []>} : vector<8x128xf32>, vector<128x512xf32>, vector<8x512xf32> -> vector<8x512xf32>
    %139 = arith.addf %137, %138 : vector<8x512xf32>
    %140 = arith.negf %139 : vector<8x512xf32>
    %141 = math.exp %140 : vector<8x512xf32>
    %cst_52 = arith.constant 1.000000e+00 : f32
    %142 = vector.broadcast %cst_52 : f32 to vector<8x512xf32>
    %143 = arith.addf %142, %141 : vector<8x512xf32>
    %144 = arith.divf %142, %143 : vector<8x512xf32>
    %145 = vector.extract_strided_slice %144 {offsets = [0, 0], sizes = [8, 128], strides = [1, 1]} : vector<8x512xf32> to vector<8x128xf32>
    %146 = vector.extract_strided_slice %144 {offsets = [0, 128], sizes = [8, 128], strides = [1, 1]} : vector<8x512xf32> to vector<8x128xf32>
    %147 = vector.extract_strided_slice %144 {offsets = [0, 384], sizes = [8, 128], strides = [1, 1]} : vector<8x512xf32> to vector<8x128xf32>
    %148 = vector.extract_strided_slice %139 {offsets = [0, 256], sizes = [8, 128], strides = [1, 1]} : vector<8x512xf32> to vector<8x128xf32>
    %149 = math.tanh %148 : vector<8x128xf32>
    %150 = arith.mulf %146, %128 : vector<8x128xf32>
    %151 = arith.mulf %145, %149 : vector<8x128xf32>
    %152 = arith.addf %150, %151 : vector<8x128xf32>
    %153 = math.tanh %152 : vector<8x128xf32>
    %154 = arith.mulf %147, %153 : vector<8x128xf32>
    %155 = arith.index_cast %c5_i32 : i32 to index
    %c0_53 = arith.constant 0 : index
    %c0_54 = arith.constant 0 : index
    %156 = vector.load %arg12[%155, %c0_53, %c0_54] : memref<6x8x128xf32, #tpu.memory_space<vmem>>, vector<1x8x128xf32>
    %157 = vector.shape_cast %156 : vector<1x8x128xf32> to vector<8x128xf32>
    %158 = vector.shape_cast %154 : vector<8x128xf32> to vector<1x8x128xf32>
    tpu.vector_store %arg12[%155, %c0_53, %c0_54], %158 {strides = array<i32>} : memref<6x8x128xf32, #tpu.memory_space<vmem>>, vector<1x8x128xf32>,
    %c6_i32 = arith.constant 6 : i32
    %c0_55 = arith.constant 0 : index
    %c0_56 = arith.constant 0 : index
    %c0_57 = arith.constant 0 : index
    %159 = vector.load %arg12[%c0_55, %c0_56, %c0_57] : memref<6x8x128xf32, #tpu.memory_space<vmem>>, vector<6x8x128xf32>
    %160 = vector.shape_cast %159 : vector<6x8x128xf32> to vector<48x128xf32>
    %cst_58 = arith.constant dense<0.000000e+00> : vector<48x512xf32>
    %161 = tpu.matmul %160, %3, %cst_58 {dimension_numbers = #tpu.dot_dimension_numbers<[1], [0], [0], [1], [0, 0, 1, 1], [], []>} : vector<48x128xf32>, vector<128x512xf32>, vector<48x512xf32> -> vector<48x512xf32>
    %162 = vector.broadcast %5 : vector<1x512xf32> to vector<48x512xf32>
    %163 = arith.addf %161, %162 : vector<48x512xf32>
    %164 = vector.shape_cast %163 : vector<48x512xf32> to vector<6x8x512xf32>
    %c0_59 = arith.constant 0 : index
    %c0_60 = arith.constant 0 : index
    %c0_61 = arith.constant 0 : index
    %165 = vector.load %arg11[%c0_59, %c0_60, %c0_61] : memref<6x8x512xf32, #tpu.memory_space<vmem>>, vector<6x8x512xf32>
    tpu.vector_store %arg11[%c0_59, %c0_60, %c0_61], %164 {strides = array<i32>} : memref<6x8x512xf32, #tpu.memory_space<vmem>>, vector<6x8x512xf32>,
    %cst_62 = arith.constant 0.000000e+00 : f32
    %166 = vector.broadcast %cst_62 : f32 to vector<8x128xf32>
    %cst_63 = arith.constant 0.000000e+00 : f32
    %167 = vector.broadcast %cst_63 : f32 to vector<8x128xf32>
    %c0_i32_64 = arith.constant 0 : i32
    %168 = arith.index_cast %c0_i32_64 : i32 to index
    %c0_65 = arith.constant 0 : index
    %c0_66 = arith.constant 0 : index
    %169 = vector.load %arg11[%168, %c0_65, %c0_66] : memref<6x8x512xf32, #tpu.memory_space<vmem>>, vector<1x8x512xf32>
    %170 = vector.shape_cast %169 : vector<1x8x512xf32> to vector<8x512xf32>
    %cst_67 = arith.constant dense<0.000000e+00> : vector<8x512xf32>
    %171 = tpu.matmul %166, %4, %cst_67 {dimension_numbers = #tpu.dot_dimension_numbers<[1], [0], [0], [1], [0, 0, 1, 1], [], []>} : vector<8x128xf32>, vector<128x512xf32>, vector<8x512xf32> -> vector<8x512xf32>
    %172 = arith.addf %170, %171 : vector<8x512xf32>
    %173 = arith.negf %172 : vector<8x512xf32>
    %174 = math.exp %173 : vector<8x512xf32>
    %cst_68 = arith.constant 1.000000e+00 : f32
    %175 = vector.broadcast %cst_68 : f32 to vector<8x512xf32>
    %176 = arith.addf %175, %174 : vector<8x512xf32>
    %177 = arith.divf %175, %176 : vector<8x512xf32>
    %178 = vector.extract_strided_slice %177 {offsets = [0, 0], sizes = [8, 128], strides = [1, 1]} : vector<8x512xf32> to vector<8x128xf32>
    %179 = vector.extract_strided_slice %177 {offsets = [0, 128], sizes = [8, 128], strides = [1, 1]} : vector<8x512xf32> to vector<8x128xf32>
    %180 = vector.extract_strided_slice %177 {offsets = [0, 384], sizes = [8, 128], strides = [1, 1]} : vector<8x512xf32> to vector<8x128xf32>
    %181 = vector.extract_strided_slice %172 {offsets = [0, 256], sizes = [8, 128], strides = [1, 1]} : vector<8x512xf32> to vector<8x128xf32>
    %182 = math.tanh %181 : vector<8x128xf32>
    %183 = arith.mulf %179, %167 : vector<8x128xf32>
    %184 = arith.mulf %178, %182 : vector<8x128xf32>
    %185 = arith.addf %183, %184 : vector<8x128xf32>
    %186 = math.tanh %185 : vector<8x128xf32>
    %187 = arith.mulf %180, %186 : vector<8x128xf32>
    %188 = arith.index_cast %c0_i32_64 : i32 to index
    %c0_69 = arith.constant 0 : index
    %c0_70 = arith.constant 0 : index
    %189 = vector.load %arg13[%188, %c0_69, %c0_70] : memref<6x8x128xf32, #tpu.memory_space<vmem>>, vector<1x8x128xf32>
    %190 = vector.shape_cast %189 : vector<1x8x128xf32> to vector<8x128xf32>
    %191 = vector.shape_cast %187 : vector<8x128xf32> to vector<1x8x128xf32>
    tpu.vector_store %arg13[%188, %c0_69, %c0_70], %191 {strides = array<i32>} : memref<6x8x128xf32, #tpu.memory_space<vmem>>, vector<1x8x128xf32>,
    %c1_i32_71 = arith.constant 1 : i32
    %192 = arith.index_cast %c1_i32_71 : i32 to index
    %c0_72 = arith.constant 0 : index
    %c0_73 = arith.constant 0 : index
    %193 = vector.load %arg11[%192, %c0_72, %c0_73] : memref<6x8x512xf32, #tpu.memory_space<vmem>>, vector<1x8x512xf32>
    %194 = vector.shape_cast %193 : vector<1x8x512xf32> to vector<8x512xf32>
    %cst_74 = arith.constant dense<0.000000e+00> : vector<8x512xf32>
    %195 = tpu.matmul %187, %4, %cst_74 {dimension_numbers = #tpu.dot_dimension_numbers<[1], [0], [0], [1], [0, 0, 1, 1], [], []>} : vector<8x128xf32>, vector<128x512xf32>, vector<8x512xf32> -> vector<8x512xf32>
    %196 = arith.addf %194, %195 : vector<8x512xf32>
    %197 = arith.negf %196 : vector<8x512xf32>
    %198 = math.exp %197 : vector<8x512xf32>
    %cst_75 = arith.constant 1.000000e+00 : f32
    %199 = vector.broadcast %cst_75 : f32 to vector<8x512xf32>
    %200 = arith.addf %199, %198 : vector<8x512xf32>
    %201 = arith.divf %199, %200 : vector<8x512xf32>
    %202 = vector.extract_strided_slice %201 {offsets = [0, 0], sizes = [8, 128], strides = [1, 1]} : vector<8x512xf32> to vector<8x128xf32>
    %203 = vector.extract_strided_slice %201 {offsets = [0, 128], sizes = [8, 128], strides = [1, 1]} : vector<8x512xf32> to vector<8x128xf32>
    %204 = vector.extract_strided_slice %201 {offsets = [0, 384], sizes = [8, 128], strides = [1, 1]} : vector<8x512xf32> to vector<8x128xf32>
    %205 = vector.extract_strided_slice %196 {offsets = [0, 256], sizes = [8, 128], strides = [1, 1]} : vector<8x512xf32> to vector<8x128xf32>
    %206 = math.tanh %205 : vector<8x128xf32>
    %207 = arith.mulf %203, %185 : vector<8x128xf32>
    %208 = arith.mulf %202, %206 : vector<8x128xf32>
    %209 = arith.addf %207, %208 : vector<8x128xf32>
    %210 = math.tanh %209 : vector<8x128xf32>
    %211 = arith.mulf %204, %210 : vector<8x128xf32>
    %212 = arith.index_cast %c1_i32_71 : i32 to index
    %c0_76 = arith.constant 0 : index
    %c0_77 = arith.constant 0 : index
    %213 = vector.load %arg13[%212, %c0_76, %c0_77] : memref<6x8x128xf32, #tpu.memory_space<vmem>>, vector<1x8x128xf32>
    %214 = vector.shape_cast %213 : vector<1x8x128xf32> to vector<8x128xf32>
    %215 = vector.shape_cast %211 : vector<8x128xf32> to vector<1x8x128xf32>
    tpu.vector_store %arg13[%212, %c0_76, %c0_77], %215 {strides = array<i32>} : memref<6x8x128xf32, #tpu.memory_space<vmem>>, vector<1x8x128xf32>,
    %c2_i32_78 = arith.constant 2 : i32
    %216 = arith.index_cast %c2_i32_78 : i32 to index
    %c0_79 = arith.constant 0 : index
    %c0_80 = arith.constant 0 : index
    %217 = vector.load %arg11[%216, %c0_79, %c0_80] : memref<6x8x512xf32, #tpu.memory_space<vmem>>, vector<1x8x512xf32>
    %218 = vector.shape_cast %217 : vector<1x8x512xf32> to vector<8x512xf32>
    %cst_81 = arith.constant dense<0.000000e+00> : vector<8x512xf32>
    %219 = tpu.matmul %211, %4, %cst_81 {dimension_numbers = #tpu.dot_dimension_numbers<[1], [0], [0], [1], [0, 0, 1, 1], [], []>} : vector<8x128xf32>, vector<128x512xf32>, vector<8x512xf32> -> vector<8x512xf32>
    %220 = arith.addf %218, %219 : vector<8x512xf32>
    %221 = arith.negf %220 : vector<8x512xf32>
    %222 = math.exp %221 : vector<8x512xf32>
    %cst_82 = arith.constant 1.000000e+00 : f32
    %223 = vector.broadcast %cst_82 : f32 to vector<8x512xf32>
    %224 = arith.addf %223, %222 : vector<8x512xf32>
    %225 = arith.divf %223, %224 : vector<8x512xf32>
    %226 = vector.extract_strided_slice %225 {offsets = [0, 0], sizes = [8, 128], strides = [1, 1]} : vector<8x512xf32> to vector<8x128xf32>
    %227 = vector.extract_strided_slice %225 {offsets = [0, 128], sizes = [8, 128], strides = [1, 1]} : vector<8x512xf32> to vector<8x128xf32>
    %228 = vector.extract_strided_slice %225 {offsets = [0, 384], sizes = [8, 128], strides = [1, 1]} : vector<8x512xf32> to vector<8x128xf32>
    %229 = vector.extract_strided_slice %220 {offsets = [0, 256], sizes = [8, 128], strides = [1, 1]} : vector<8x512xf32> to vector<8x128xf32>
    %230 = math.tanh %229 : vector<8x128xf32>
    %231 = arith.mulf %227, %209 : vector<8x128xf32>
    %232 = arith.mulf %226, %230 : vector<8x128xf32>
    %233 = arith.addf %231, %232 : vector<8x128xf32>
    %234 = math.tanh %233 : vector<8x128xf32>
    %235 = arith.mulf %228, %234 : vector<8x128xf32>
    %236 = arith.index_cast %c2_i32_78 : i32 to index
    %c0_83 = arith.constant 0 : index
    %c0_84 = arith.constant 0 : index
    %237 = vector.load %arg13[%236, %c0_83, %c0_84] : memref<6x8x128xf32, #tpu.memory_space<vmem>>, vector<1x8x128xf32>
    %238 = vector.shape_cast %237 : vector<1x8x128xf32> to vector<8x128xf32>
    %239 = vector.shape_cast %235 : vector<8x128xf32> to vector<1x8x128xf32>
    tpu.vector_store %arg13[%236, %c0_83, %c0_84], %239 {strides = array<i32>} : memref<6x8x128xf32, #tpu.memory_space<vmem>>, vector<1x8x128xf32>,
    %c3_i32_85 = arith.constant 3 : i32
    %240 = arith.index_cast %c3_i32_85 : i32 to index
    %c0_86 = arith.constant 0 : index
    %c0_87 = arith.constant 0 : index
    %241 = vector.load %arg11[%240, %c0_86, %c0_87] : memref<6x8x512xf32, #tpu.memory_space<vmem>>, vector<1x8x512xf32>
    %242 = vector.shape_cast %241 : vector<1x8x512xf32> to vector<8x512xf32>
    %cst_88 = arith.constant dense<0.000000e+00> : vector<8x512xf32>
    %243 = tpu.matmul %235, %4, %cst_88 {dimension_numbers = #tpu.dot_dimension_numbers<[1], [0], [0], [1], [0, 0, 1, 1], [], []>} : vector<8x128xf32>, vector<128x512xf32>, vector<8x512xf32> -> vector<8x512xf32>
    %244 = arith.addf %242, %243 : vector<8x512xf32>
    %245 = arith.negf %244 : vector<8x512xf32>
    %246 = math.exp %245 : vector<8x512xf32>
    %cst_89 = arith.constant 1.000000e+00 : f32
    %247 = vector.broadcast %cst_89 : f32 to vector<8x512xf32>
    %248 = arith.addf %247, %246 : vector<8x512xf32>
    %249 = arith.divf %247, %248 : vector<8x512xf32>
    %250 = vector.extract_strided_slice %249 {offsets = [0, 0], sizes = [8, 128], strides = [1, 1]} : vector<8x512xf32> to vector<8x128xf32>
    %251 = vector.extract_strided_slice %249 {offsets = [0, 128], sizes = [8, 128], strides = [1, 1]} : vector<8x512xf32> to vector<8x128xf32>
    %252 = vector.extract_strided_slice %249 {offsets = [0, 384], sizes = [8, 128], strides = [1, 1]} : vector<8x512xf32> to vector<8x128xf32>
    %253 = vector.extract_strided_slice %244 {offsets = [0, 256], sizes = [8, 128], strides = [1, 1]} : vector<8x512xf32> to vector<8x128xf32>
    %254 = math.tanh %253 : vector<8x128xf32>
    %255 = arith.mulf %251, %233 : vector<8x128xf32>
    %256 = arith.mulf %250, %254 : vector<8x128xf32>
    %257 = arith.addf %255, %256 : vector<8x128xf32>
    %258 = math.tanh %257 : vector<8x128xf32>
    %259 = arith.mulf %252, %258 : vector<8x128xf32>
    %260 = arith.index_cast %c3_i32_85 : i32 to index
    %c0_90 = arith.constant 0 : index
    %c0_91 = arith.constant 0 : index
    %261 = vector.load %arg13[%260, %c0_90, %c0_91] : memref<6x8x128xf32, #tpu.memory_space<vmem>>, vector<1x8x128xf32>
    %262 = vector.shape_cast %261 : vector<1x8x128xf32> to vector<8x128xf32>
    %263 = vector.shape_cast %259 : vector<8x128xf32> to vector<1x8x128xf32>
    tpu.vector_store %arg13[%260, %c0_90, %c0_91], %263 {strides = array<i32>} : memref<6x8x128xf32, #tpu.memory_space<vmem>>, vector<1x8x128xf32>,
    %c4_i32_92 = arith.constant 4 : i32
    %264 = arith.index_cast %c4_i32_92 : i32 to index
    %c0_93 = arith.constant 0 : index
    %c0_94 = arith.constant 0 : index
    %265 = vector.load %arg11[%264, %c0_93, %c0_94] : memref<6x8x512xf32, #tpu.memory_space<vmem>>, vector<1x8x512xf32>
    %266 = vector.shape_cast %265 : vector<1x8x512xf32> to vector<8x512xf32>
    %cst_95 = arith.constant dense<0.000000e+00> : vector<8x512xf32>
    %267 = tpu.matmul %259, %4, %cst_95 {dimension_numbers = #tpu.dot_dimension_numbers<[1], [0], [0], [1], [0, 0, 1, 1], [], []>} : vector<8x128xf32>, vector<128x512xf32>, vector<8x512xf32> -> vector<8x512xf32>
    %268 = arith.addf %266, %267 : vector<8x512xf32>
    %269 = arith.negf %268 : vector<8x512xf32>
    %270 = math.exp %269 : vector<8x512xf32>
    %cst_96 = arith.constant 1.000000e+00 : f32
    %271 = vector.broadcast %cst_96 : f32 to vector<8x512xf32>
    %272 = arith.addf %271, %270 : vector<8x512xf32>
    %273 = arith.divf %271, %272 : vector<8x512xf32>
    %274 = vector.extract_strided_slice %273 {offsets = [0, 0], sizes = [8, 128], strides = [1, 1]} : vector<8x512xf32> to vector<8x128xf32>
    %275 = vector.extract_strided_slice %273 {offsets = [0, 128], sizes = [8, 128], strides = [1, 1]} : vector<8x512xf32> to vector<8x128xf32>
    %276 = vector.extract_strided_slice %273 {offsets = [0, 384], sizes = [8, 128], strides = [1, 1]} : vector<8x512xf32> to vector<8x128xf32>
    %277 = vector.extract_strided_slice %268 {offsets = [0, 256], sizes = [8, 128], strides = [1, 1]} : vector<8x512xf32> to vector<8x128xf32>
    %278 = math.tanh %277 : vector<8x128xf32>
    %279 = arith.mulf %275, %257 : vector<8x128xf32>
    %280 = arith.mulf %274, %278 : vector<8x128xf32>
    %281 = arith.addf %279, %280 : vector<8x128xf32>
    %282 = math.tanh %281 : vector<8x128xf32>
    %283 = arith.mulf %276, %282 : vector<8x128xf32>
    %284 = arith.index_cast %c4_i32_92 : i32 to index
    %c0_97 = arith.constant 0 : index
    %c0_98 = arith.constant 0 : index
    %285 = vector.load %arg13[%284, %c0_97, %c0_98] : memref<6x8x128xf32, #tpu.memory_space<vmem>>, vector<1x8x128xf32>
    %286 = vector.shape_cast %285 : vector<1x8x128xf32> to vector<8x128xf32>
    %287 = vector.shape_cast %283 : vector<8x128xf32> to vector<1x8x128xf32>
    tpu.vector_store %arg13[%284, %c0_97, %c0_98], %287 {strides = array<i32>} : memref<6x8x128xf32, #tpu.memory_space<vmem>>, vector<1x8x128xf32>,
    %c5_i32_99 = arith.constant 5 : i32
    %288 = arith.index_cast %c5_i32_99 : i32 to index
    %c0_100 = arith.constant 0 : index
    %c0_101 = arith.constant 0 : index
    %289 = vector.load %arg11[%288, %c0_100, %c0_101] : memref<6x8x512xf32, #tpu.memory_space<vmem>>, vector<1x8x512xf32>
    %290 = vector.shape_cast %289 : vector<1x8x512xf32> to vector<8x512xf32>
    %cst_102 = arith.constant dense<0.000000e+00> : vector<8x512xf32>
    %291 = tpu.matmul %283, %4, %cst_102 {dimension_numbers = #tpu.dot_dimension_numbers<[1], [0], [0], [1], [0, 0, 1, 1], [], []>} : vector<8x128xf32>, vector<128x512xf32>, vector<8x512xf32> -> vector<8x512xf32>
    %292 = arith.addf %290, %291 : vector<8x512xf32>
    %293 = arith.negf %292 : vector<8x512xf32>
    %294 = math.exp %293 : vector<8x512xf32>
    %cst_103 = arith.constant 1.000000e+00 : f32
    %295 = vector.broadcast %cst_103 : f32 to vector<8x512xf32>
    %296 = arith.addf %295, %294 : vector<8x512xf32>
    %297 = arith.divf %295, %296 : vector<8x512xf32>
    %298 = vector.extract_strided_slice %297 {offsets = [0, 0], sizes = [8, 128], strides = [1, 1]} : vector<8x512xf32> to vector<8x128xf32>
    %299 = vector.extract_strided_slice %297 {offsets = [0, 128], sizes = [8, 128], strides = [1, 1]} : vector<8x512xf32> to vector<8x128xf32>
    %300 = vector.extract_strided_slice %297 {offsets = [0, 384], sizes = [8, 128], strides = [1, 1]} : vector<8x512xf32> to vector<8x128xf32>
    %301 = vector.extract_strided_slice %292 {offsets = [0, 256], sizes = [8, 128], strides = [1, 1]} : vector<8x512xf32> to vector<8x128xf32>
    %302 = math.tanh %301 : vector<8x128xf32>
    %303 = arith.mulf %299, %281 : vector<8x128xf32>
    %304 = arith.mulf %298, %302 : vector<8x128xf32>
    %305 = arith.addf %303, %304 : vector<8x128xf32>
    %306 = math.tanh %305 : vector<8x128xf32>
    %307 = arith.mulf %300, %306 : vector<8x128xf32>
    %308 = arith.index_cast %c5_i32_99 : i32 to index
    %c0_104 = arith.constant 0 : index
    %c0_105 = arith.constant 0 : index
    %309 = vector.load %arg13[%308, %c0_104, %c0_105] : memref<6x8x128xf32, #tpu.memory_space<vmem>>, vector<1x8x128xf32>
    %310 = vector.shape_cast %309 : vector<1x8x128xf32> to vector<8x128xf32>
    %311 = vector.shape_cast %307 : vector<8x128xf32> to vector<1x8x128xf32>
    tpu.vector_store %arg13[%308, %c0_104, %c0_105], %311 {strides = array<i32>} : memref<6x8x128xf32, #tpu.memory_space<vmem>>, vector<1x8x128xf32>,
    %c6_i32_106 = arith.constant 6 : i32
    %c0_107 = arith.constant 0 : index
    %c0_108 = arith.constant 0 : index
    %c0_109 = arith.constant 0 : index
    %312 = vector.load %arg13[%c0_107, %c0_108, %c0_109] : memref<6x8x128xf32, #tpu.memory_space<vmem>>, vector<6x8x128xf32>
    %313 = vector.shape_cast %312 : vector<6x8x128xf32> to vector<48x128xf32>
    %c0_110 = arith.constant 0 : index
    %c0_111 = arith.constant 0 : index
    %314 = vector.load %arg7[%c0_110, %c0_111] : memref<128x256xf32, #tpu.memory_space<vmem>>, vector<128x256xf32>
    %cst_112 = arith.constant dense<0.000000e+00> : vector<48x256xf32>
    %315 = tpu.matmul %160, %314, %cst_112 {dimension_numbers = #tpu.dot_dimension_numbers<[1], [0], [0], [1], [0, 0, 1, 1], [], []>} : vector<48x128xf32>, vector<128x256xf32>, vector<48x256xf32> -> vector<48x256xf32>
    %c0_113 = arith.constant 0 : index
    %c0_114 = arith.constant 0 : index
    %316 = vector.load %arg8[%c0_113, %c0_114] : memref<128x256xf32, #tpu.memory_space<vmem>>, vector<128x256xf32>
    %cst_115 = arith.constant dense<0.000000e+00> : vector<48x256xf32>
    %317 = tpu.matmul %313, %316, %cst_115 {dimension_numbers = #tpu.dot_dimension_numbers<[1], [0], [0], [1], [0, 0, 1, 1], [], []>} : vector<48x128xf32>, vector<128x256xf32>, vector<48x256xf32> -> vector<48x256xf32>
    %318 = arith.addf %315, %317 : vector<48x256xf32>
    %c0_116 = arith.constant 0 : index
    %c0_117 = arith.constant 0 : index
    %319 = vector.load %arg9[%c0_116, %c0_117] : memref<1x256xf32, #tpu.memory_space<vmem>>, vector<1x256xf32>
    %320 = vector.broadcast %319 : vector<1x256xf32> to vector<48x256xf32>
    %321 = arith.addf %318, %320 : vector<48x256xf32>
    %322 = vector.shape_cast %321 : vector<48x256xf32> to vector<6x8x256xf32>
    %c0_118 = arith.constant 0 : index
    %c0_119 = arith.constant 0 : index
    %c0_120 = arith.constant 0 : index
    %323 = vector.load %arg10[%c0_118, %c0_119, %c0_120] : memref<6x8x256xf32, #tpu.memory_space<vmem>>, vector<6x8x256xf32>
    tpu.vector_store %arg10[%c0_118, %c0_119, %c0_120], %322 {strides = array<i32>} : memref<6x8x256xf32, #tpu.memory_space<vmem>>, vector<6x8x256xf32>,
    return
  }
}

</mosaic_0001>

<bundles_post_ra>
// kernel: elmo_forward.1
= control target key start
LH: loop header
LB: loop body
LE: loop exit
PB: predicated region body
PF: predicated region fallthrough
CT: control target
= control target key end

     0   :  { %s6141_s0 = inlined_call_operand.vmem [shape: f32[6,8,128], index: 0, kind: input, shape index: {}]   ;;  %s6142_s1 = inlined_call_operand.vmem [shape: f32[128,512], index: 1, kind: input, shape index: {}]   ;;  %s6143_s2 = inlined_call_operand.vmem [shape: f32[128,512], index: 2, kind: input, shape index: {}]   ;;  %s6144_s3 = inlined_call_operand.vmem [shape: f32[1,512], index: 3, kind: input, shape index: {}]   ;;  %s6145_s4 = inlined_call_operand.vmem [shape: f32[128,512], index: 4, kind: input, shape index: {}]   ;;  %s6146_s5 = inlined_call_operand.vmem [shape: f32[128,512], index: 5, kind: input, shape index: {}]   ;;  %s6147_s6 = inlined_call_operand.vmem [shape: f32[1,512], index: 6, kind: input, shape index: {}]   ;;  %s6148_s7 = inlined_call_operand.vmem [shape: f32[128,256], index: 7, kind: input, shape index: {}]   ;;  %s6149_s8 = inlined_call_operand.vmem [shape: f32[128,256], index: 8, kind: input, shape index: {}]   ;;  %s6150_s9 = inlined_call_operand.vmem [shape: f32[1,256], index: 9, kind: input, shape index: {}]   ;;  %s6151_s10 = inlined_call_operand.hbm [shape: f32[6,8,256], index: 10, kind: output, shape index: {}]  }
   0x1   :  { %v96_v0 = vld [vmem:[%s6142_s1 + $0x1e0] sm:$0xff]  ;;  %v97_v1 = vld [vmem:[%s6142_s1 + $0x1e8] sm:$0xff]  ;;  %v98_v2 = vld [vmem:[%s6142_s1 + $0x1f0] sm:$0xff] }
   0x2   :  { %309 = vmatpush.msra.mxu0 %v96_v0  ;;  %344 = vmatpush.msra.mxu1 %v97_v1  ;;  %v99_v3 = vld [vmem:[%s6142_s1 + $0x1f8] sm:$0xff]  ;;  %v92_v4 = vld [vmem:[%s6142_s1 + $0x1c0] sm:$0xff]  ;;  %v93_v5 = vld [vmem:[%s6142_s1 + $0x1c8] sm:$0xff] }
   0x3   :  { %379 = vmatpush.msra.mxu2 %v98_v2  ;;  %414 = vmatpush.msra.mxu3 %v99_v3  ;;  %v94_v6 = vld [vmem:[%s6142_s1 + $0x1d0] sm:$0xff]  ;;  %v95_v7 = vld [vmem:[%s6142_s1 + $0x1d8] sm:$0xff]  ;;  %v88_v8 = vld [vmem:[%s6142_s1 + $0x1a0] sm:$0xff] }
   0x4   :  { %310 = vmatpush.msra.mxu0 %v92_v4  ;;  %345 = vmatpush.msra.mxu1 %v93_v5  ;;  %v89_v9 = vld [vmem:[%s6142_s1 + $0x1a8] sm:$0xff]  ;;  %v90_v10 = vld [vmem:[%s6142_s1 + $0x1b0] sm:$0xff]  ;;  %v91_v11 = vld [vmem:[%s6142_s1 + $0x1b8] sm:$0xff] }
   0x5   :  { %380 = vmatpush.msra.mxu2 %v94_v6  ;;  %415 = vmatpush.msra.mxu3 %v95_v7  ;;  %v84_v12 = vld [vmem:[%s6142_s1 + $0x180] sm:$0xff]  ;;  %v85_v13 = vld [vmem:[%s6142_s1 + $0x188] sm:$0xff]  ;;  %v86_v14 = vld [vmem:[%s6142_s1 + $0x190] sm:$0xff] }
   0x6   :  { %311 = vmatpush.msra.mxu0 %v88_v8  ;;  %346 = vmatpush.msra.mxu1 %v89_v9  ;;  %v87_v15 = vld [vmem:[%s6142_s1 + $0x198] sm:$0xff]  ;;  %v80_v16 = vld [vmem:[%s6142_s1 + $0x160] sm:$0xff]  ;;  %v81_v17 = vld [vmem:[%s6142_s1 + $0x168] sm:$0xff] }
   0x7   :  { %381 = vmatpush.msra.mxu2 %v90_v10  ;;  %416 = vmatpush.msra.mxu3 %v91_v11  ;;  %v82_v18 = vld [vmem:[%s6142_s1 + $0x170] sm:$0xff]  ;;  %v83_v19 = vld [vmem:[%s6142_s1 + $0x178] sm:$0xff]  ;;  %v76_v20 = vld [vmem:[%s6142_s1 + $0x140] sm:$0xff] }
   0x8   :  { %312 = vmatpush.msra.mxu0 %v84_v12  ;;  %347 = vmatpush.msra.mxu1 %v85_v13  ;;  %v77_v21 = vld [vmem:[%s6142_s1 + $0x148] sm:$0xff]  ;;  %v78_v22 = vld [vmem:[%s6142_s1 + $0x150] sm:$0xff]  ;;  %v79_v23 = vld [vmem:[%s6142_s1 + $0x158] sm:$0xff] }
   0x9   :  { %382 = vmatpush.msra.mxu2 %v86_v14  ;;  %417 = vmatpush.msra.mxu3 %v87_v15  ;;  %v72_v24 = vld [vmem:[%s6142_s1 + $0x120] sm:$0xff]  ;;  %v73_v25 = vld [vmem:[%s6142_s1 + $0x128] sm:$0xff]  ;;  %v74_v26 = vld [vmem:[%s6142_s1 + $0x130] sm:$0xff] }
   0xa   :  { %313 = vmatpush.msra.mxu0 %v80_v16  ;;  %348 = vmatpush.msra.mxu1 %v81_v17  ;;  %v75_v27 = vld [vmem:[%s6142_s1 + $0x138] sm:$0xff]  ;;  %v68_v28 = vld [vmem:[%s6142_s1 + $0x100] sm:$0xff]  ;;  %v69_v29 = vld [vmem:[%s6142_s1 + $0x108] sm:$0xff] }
   0xb   :  { %383 = vmatpush.msra.mxu2 %v82_v18  ;;  %418 = vmatpush.msra.mxu3 %v83_v19  ;;  %v70_v30 = vld [vmem:[%s6142_s1 + $0x110] sm:$0xff]  ;;  %v71_v31 = vld [vmem:[%s6142_s1 + $0x118] sm:$0xff]  ;;  %v64_v32 = vld [vmem:[%s6142_s1 + $0xe0] sm:$0xff] }
   0xc   :  { %314 = vmatpush.msra.mxu0 %v76_v20  ;;  %349 = vmatpush.msra.mxu1 %v77_v21  ;;  %v65_v33 = vld [vmem:[%s6142_s1 + $0xe8] sm:$0xff]  ;;  %v66_v34 = vld [vmem:[%s6142_s1 + $0xf0] sm:$0xff]  ;;  %v67_v35 = vld [vmem:[%s6142_s1 + $0xf8] sm:$0xff] }
   0xd   :  { %384 = vmatpush.msra.mxu2 %v78_v22  ;;  %419 = vmatpush.msra.mxu3 %v79_v23  ;;  %v60_v36 = vld [vmem:[%s6142_s1 + $0xc0] sm:$0xff]  ;;  %v61_v37 = vld [vmem:[%s6142_s1 + $0xc8] sm:$0xff]  ;;  %v62_v38 = vld [vmem:[%s6142_s1 + $0xd0] sm:$0xff] }
   0xe   :  { %315 = vmatpush.msra.mxu0 %v72_v24  ;;  %350 = vmatpush.msra.mxu1 %v73_v25  ;;  %v63_v39 = vld [vmem:[%s6142_s1 + $0xd8] sm:$0xff]  ;;  %v56_v40 = vld [vmem:[%s6142_s1 + $0xa0] sm:$0xff]  ;;  %v57_v41 = vld [vmem:[%s6142_s1 + $0xa8] sm:$0xff] }
   0xf   :  { %385 = vmatpush.msra.mxu2 %v74_v26  ;;  %420 = vmatpush.msra.mxu3 %v75_v27  ;;  %v58_v42 = vld [vmem:[%s6142_s1 + $0xb0] sm:$0xff]  ;;  %v59_v43 = vld [vmem:[%s6142_s1 + $0xb8] sm:$0xff]  ;;  %v52_v44 = vld [vmem:[%s6142_s1 + $0x80] sm:$0xff] }
  0x10   :  { %316 = vmatpush.msra.mxu0 %v68_v28  ;;  %351 = vmatpush.msra.mxu1 %v69_v29  ;;  %v53_v45 = vld [vmem:[%s6142_s1 + $0x88] sm:$0xff]  ;;  %v54_v46 = vld [vmem:[%s6142_s1 + $0x90] sm:$0xff]  ;;  %v55_v47 = vld [vmem:[%s6142_s1 + $0x98] sm:$0xff] }
  0x11   :  { %386 = vmatpush.msra.mxu2 %v70_v30  ;;  %421 = vmatpush.msra.mxu3 %v71_v31  ;;  %v48_v48 = vld [vmem:[%s6142_s1 + $0x60] sm:$0xff]  ;;  %v49_v49 = vld [vmem:[%s6142_s1 + $0x68] sm:$0xff]  ;;  %v50_v50 = vld [vmem:[%s6142_s1 + $0x70] sm:$0xff] }
  0x12   :  { %317 = vmatpush.msra.mxu0 %v64_v32  ;;  %352 = vmatpush.msra.mxu1 %v65_v33  ;;  %v51_v51 = vld [vmem:[%s6142_s1 + $0x78] sm:$0xff]  ;;  %v44_v52 = vld [vmem:[%s6142_s1 + $0x40] sm:$0xff]  ;;  %v45_v53 = vld [vmem:[%s6142_s1 + $0x48] sm:$0xff] }
  0x13   :  { %387 = vmatpush.msra.mxu2 %v66_v34  ;;  %422 = vmatpush.msra.mxu3 %v67_v35  ;;  %v46_v54 = vld [vmem:[%s6142_s1 + $0x50] sm:$0xff]  ;;  %v47_v55 = vld [vmem:[%s6142_s1 + $0x58] sm:$0xff]  ;;  %v40_v56 = vld [vmem:[%s6142_s1 + $0x20] sm:$0xff] }
  0x14   :  { %318 = vmatpush.msra.mxu0 %v60_v36  ;;  %353 = vmatpush.msra.mxu1 %v61_v37  ;;  %v41_v57 = vld [vmem:[%s6142_s1 + $0x28] sm:$0xff]  ;;  %v42_v58 = vld [vmem:[%s6142_s1 + $0x30] sm:$0xff]  ;;  %v43_v59 = vld [vmem:[%s6142_s1 + $0x38] sm:$0xff] }
  0x15   :  { %388 = vmatpush.msra.mxu2 %v62_v38  ;;  %423 = vmatpush.msra.mxu3 %v63_v39  ;;  %v36_v60 = vld [vmem:[%s6142_s1] sm:$0xff]  ;;  %v37_v61 = vld [vmem:[%s6142_s1 + $0x8] sm:$0xff]  ;;  %v38_v62 = vld [vmem:[%s6142_s1 + $0x10] sm:$0xff] }
  0x16   :  { %319 = vmatpush.msra.mxu0 %v56_v40  ;;  %354 = vmatpush.msra.mxu1 %v57_v41  ;;  %v39_v63 = vld [vmem:[%s6142_s1 + $0x18] sm:$0xff]  ;;  %v294_v0 = vld [vmem:[%s6141_s0] sm:$0xff]  ;;  %v3397_v2 = vld [vmem:[%s6143_s2 + $0x1e8] sm:$0xff] }
  0x17   :  { %389 = vmatpush.msra.mxu2 %v58_v42  ;;  %424 = vmatpush.msra.mxu3 %v59_v43  ;;  %v3392_v1 = vld [vmem:[%s6143_s2 + $0x1e0] sm:$0xff]  ;;  %v3402_v3 = vld [vmem:[%s6143_s2 + $0x1f8] sm:$0xff]  ;;  %v3407_v4 = vld [vmem:[%s6143_s2 + $0x1f0] sm:$0xff] }
  0x18   :  { %320 = vmatpush.msra.mxu0 %v52_v44  ;;  %355 = vmatpush.msra.mxu1 %v53_v45  ;;  %v3412_v5 = vld [vmem:[%s6143_s2 + $0x1c0] sm:$0xff]  ;;  %v3417_v6 = vld [vmem:[%s6143_s2 + $0x1c8] sm:$0xff]  ;;  %v3424_v7 = vld [vmem:[%s6143_s2 + $0x1d8] sm:$0xff] }
  0x19   :  { %390 = vmatpush.msra.mxu2 %v54_v46  ;;  %425 = vmatpush.msra.mxu3 %v55_v47  ;;  %v3429_v8 = vld [vmem:[%s6143_s2 + $0x1d0] sm:$0xff]  ;;  %v3435_v9 = vld [vmem:[%s6143_s2 + $0x1a0] sm:$0xff]  ;;  %v3440_v10 = vld [vmem:[%s6143_s2 + $0x1a8] sm:$0xff] }
  0x1a   :  { %321 = vmatpush.msra.mxu0 %v48_v48  ;;  %356 = vmatpush.msra.mxu1 %v49_v49  ;;  %v3448_v11 = vld [vmem:[%s6143_s2 + $0x1b8] sm:$0xff]  ;;  %v3453_v12 = vld [vmem:[%s6143_s2 + $0x1b0] sm:$0xff]  ;;  %v295_v13 = vld [vmem:[%s6141_s0 + $0x8] sm:$0xff] }
  0x1b   :  { %391 = vmatpush.msra.mxu2 %v50_v50  ;;  %426 = vmatpush.msra.mxu3 %v51_v51  ;;  %v3465_v14 = vld [vmem:[%s6143_s2 + $0x180] sm:$0xff]  ;;  %v3470_v15 = vld [vmem:[%s6143_s2 + $0x188] sm:$0xff] }
  0x1c   :  { %322 = vmatpush.msra.mxu0 %v44_v52  ;;  %357 = vmatpush.msra.mxu1 %v45_v53 }
  0x1d   :  { %392 = vmatpush.msra.mxu2 %v46_v54  ;;  %427 = vmatpush.msra.mxu3 %v47_v55 }
  0x1e   :  { %323 = vmatpush.msra.mxu0 %v40_v56  ;;  %358 = vmatpush.msra.mxu1 %v41_v57 }
  0x1f   :  { %393 = vmatpush.msra.mxu2 %v42_v58  ;;  %428 = vmatpush.msra.mxu3 %v43_v59 }
  0x20   :  { %324 = vmatpush.msra.mxu0 %v36_v60  ;;  %359 = vmatpush.msra.mxu1 %v37_v61 }
  0x21   :  { %394 = vmatpush.msra.mxu2 %v38_v62  ;;  %429 = vmatpush.msra.mxu3 %v39_v63 }
  0x22   :  { %325 = vmatmul.f32.vlgmr.msra.gmra.mxu0 %v294_v0  ;;  %360 = vmatmul.f32.vlgmr.msra.gmra.mxu1 %v294_v0 }
  0x23   :  { %395 = vmatmul.f32.vlgmr.msra.gmra.mxu2 %v294_v0  ;;  %430 = vmatmul.f32.vlgmr.msra.gmra.mxu3 %v294_v0 }
  0x24   :  { %477 = vmatpush.msrb.mxu0 %v3392_v1  ;;  %497 = vmatpush.msrb.mxu1 %v3397_v2 }
  0x25   :  { %537 = vmatpush.msrb.mxu3 %v3402_v3  ;;  %517 = vmatpush.msrb.mxu2 %v3407_v4 }
  0x26   :  { %478 = vmatpush.msrb.mxu0 %v3412_v5  ;;  %498 = vmatpush.msrb.mxu1 %v3417_v6 }
  0x27   :  { %538 = vmatpush.msrb.mxu3 %v3424_v7  ;;  %518 = vmatpush.msrb.mxu2 %v3429_v8 }
  0x28   :  { %479 = vmatpush.msrb.mxu0 %v3435_v9  ;;  %499 = vmatpush.msrb.mxu1 %v3440_v10 }
  0x29   :  { %539 = vmatpush.msrb.mxu3 %v3448_v11  ;;  %519 = vmatpush.msrb.mxu2 %v3453_v12 }
  0x2a   :  { %15 = vsyncpa [#allocation6], 0  ;;  %328 = vmatmul.f32.gmra.mxu0 %v295_v13  ;;  %363 = vmatmul.f32.gmra.mxu1 %v295_v13  ;;  %v3477_v16 = vld [vmem:[%s6143_s2 + $0x198] sm:$0xff]  ;;  %v3482_v17 = vld [vmem:[%s6143_s2 + $0x190] sm:$0xff]  ;;  %s2737_s11 = sshll.u32 %s6151_s10, 4  ;;  %s3138_s12 = smov 16   ;;  %s2738_s11 = int_to_ptr.hbm [resolvable:$true] %s2737_s11 }
  0x2b   :  { %398 = vmatmul.f32.gmra.mxu2 %v295_v13  ;;  %433 = vmatmul.f32.gmra.mxu3 %v295_v13  ;;  %v3487_v18 = vld [vmem:[%s6143_s2 + $0x160] sm:$0xff]  ;;  %v3492_v19 = vld [vmem:[%s6143_s2 + $0x168] sm:$0xff]  ;;  %v3499_v20 = vld [vmem:[%s6143_s2 + $0x178] sm:$0xff] }
  0x2c   :  { %480 = vmatpush.msrb.mxu0 %v3465_v14  ;;  %500 = vmatpush.msrb.mxu1 %v3470_v15  ;;  %v3504_v21 = vld [vmem:[%s6143_s2 + $0x170] sm:$0xff]  ;;  %v3510_v22 = vld [vmem:[%s6143_s2 + $0x140] sm:$0xff]  ;;  %v3515_v23 = vld [vmem:[%s6143_s2 + $0x148] sm:$0xff] }
  0x2d   :  { %540 = vmatpush.msrb.mxu3 %v3477_v16  ;;  %520 = vmatpush.msrb.mxu2 %v3482_v17  ;;  %v3523_v24 = vld [vmem:[%s6143_s2 + $0x158] sm:$0xff]  ;;  %v3528_v25 = vld [vmem:[%s6143_s2 + $0x150] sm:$0xff]  ;;  %v3540_v27 = vld [vmem:[%s6143_s2 + $0x120] sm:$0xff] }
  0x2e   :  { %481 = vmatpush.msrb.mxu0 %v3487_v18  ;;  %501 = vmatpush.msrb.mxu1 %v3492_v19  ;;  %v296_v26 = vld [vmem:[%s6141_s0 + $0x10] sm:$0xff]  ;;  %v3545_v28 = vld [vmem:[%s6143_s2 + $0x128] sm:$0xff]  ;;  %v3552_v29 = vld [vmem:[%s6143_s2 + $0x138] sm:$0xff] }
  0x2f   :  { %541 = vmatpush.msrb.mxu3 %v3499_v20  ;;  %521 = vmatpush.msrb.mxu2 %v3504_v21  ;;  %v3557_v30 = vld [vmem:[%s6143_s2 + $0x130] sm:$0xff]  ;;  %v3562_v31 = vld [vmem:[%s6143_s2 + $0x100] sm:$0xff]  ;;  %v3567_v32 = vld [vmem:[%s6143_s2 + $0x108] sm:$0xff] }
  0x30   :  { %482 = vmatpush.msrb.mxu0 %v3510_v22  ;;  %502 = vmatpush.msrb.mxu1 %v3515_v23  ;;  %v3574_v33 = vld [vmem:[%s6143_s2 + $0x118] sm:$0xff]  ;;  %v3579_v34 = vld [vmem:[%s6143_s2 + $0x110] sm:$0xff]  ;;  %v3585_v35 = vld [vmem:[%s6143_s2 + $0xe0] sm:$0xff] }
  0x31   :  { %542 = vmatpush.msrb.mxu3 %v3523_v24  ;;  %522 = vmatpush.msrb.mxu2 %v3528_v25  ;;  %v3590_v36 = vld [vmem:[%s6143_s2 + $0xe8] sm:$0xff]  ;;  %v3598_v37 = vld [vmem:[%s6143_s2 + $0xf8] sm:$0xff]  ;;  %v3603_v38 = vld [vmem:[%s6143_s2 + $0xf0] sm:$0xff] }
  0x32   :  { %331 = vmatmul.f32.gmra.mxu0 %v296_v26  ;;  %366 = vmatmul.f32.gmra.mxu1 %v296_v26  ;;  %v297_v39 = vld [vmem:[%s6141_s0 + $0x18] sm:$0xff]  ;;  %v3615_v40 = vld [vmem:[%s6143_s2 + $0xc0] sm:$0xff]  ;;  %v3620_v41 = vld [vmem:[%s6143_s2 + $0xc8] sm:$0xff] }
  0x33   :  { %401 = vmatmul.f32.gmra.mxu2 %v296_v26  ;;  %436 = vmatmul.f32.gmra.mxu3 %v296_v26  ;;  %v3627_v42 = vld [vmem:[%s6143_s2 + $0xd8] sm:$0xff]  ;;  %v3632_v43 = vld [vmem:[%s6143_s2 + $0xd0] sm:$0xff]  ;;  %v3637_v44 = vld [vmem:[%s6143_s2 + $0xa0] sm:$0xff] }
  0x34   :  { %483 = vmatpush.msrb.mxu0 %v3540_v27  ;;  %503 = vmatpush.msrb.mxu1 %v3545_v28  ;;  %6337 = vst [vmem:[#allocation8_spill] sm:$0xff] %v3627_v42  ;;  %v3642_v45 = vld [vmem:[%s6143_s2 + $0xa8] sm:$0xff]  ;;  %v3649_v46 = vld [vmem:[%s6143_s2 + $0xb8] sm:$0xff]  ;;  %v3654_v47 = vld [vmem:[%s6143_s2 + $0xb0] sm:$0xff] }
  0x35   :  { %543 = vmatpush.msrb.mxu3 %v3552_v29  ;;  %523 = vmatpush.msrb.mxu2 %v3557_v30  ;;  %6338 = vst [vmem:[#allocation9_spill] sm:$0xff] %v3632_v43  ;;  %v3660_v48 = vld [vmem:[%s6143_s2 + $0x80] sm:$0xff]  ;;  %v3665_v49 = vld [vmem:[%s6143_s2 + $0x88] sm:$0xff]  ;;  %v3673_v50 = vld [vmem:[%s6143_s2 + $0x98] sm:$0xff] }
  0x36   :  { %484 = vmatpush.msrb.mxu0 %v3562_v31  ;;  %504 = vmatpush.msrb.mxu1 %v3567_v32  ;;  %6339 = vst [vmem:[#allocation10_spill] sm:$0xff] %v3637_v44  ;;  %v3678_v51 = vld [vmem:[%s6143_s2 + $0x90] sm:$0xff]  ;;  %v298_v52 = vld [vmem:[%s6141_s0 + $0x20] sm:$0xff]  ;;  %v3695_v54 = vld [vmem:[%s6143_s2 + $0x68] sm:$0xff] }
  0x37   :  { %544 = vmatpush.msrb.mxu3 %v3574_v33  ;;  %524 = vmatpush.msrb.mxu2 %v3579_v34  ;;  %6340 = vst [vmem:[#allocation11_spill] sm:$0xff] %v3642_v45  ;;  %v3690_v53 = vld [vmem:[%s6143_s2 + $0x60] sm:$0xff]  ;;  %v3702_v55 = vld [vmem:[%s6143_s2 + $0x70] sm:$0xff]  ;;  %v3707_v56 = vld [vmem:[%s6143_s2 + $0x78] sm:$0xff] }
  0x38   :  { %485 = vmatpush.msrb.mxu0 %v3585_v35  ;;  %505 = vmatpush.msrb.mxu1 %v3590_v36  ;;  %6341 = vst [vmem:[#allocation12_spill] sm:$0xff] %v3649_v46  ;;  %v3712_v57 = vld [vmem:[%s6143_s2 + $0x40] sm:$0xff]  ;;  %v3717_v58 = vld [vmem:[%s6143_s2 + $0x48] sm:$0xff]  ;;  %v3724_v59 = vld [vmem:[%s6143_s2 + $0x50] sm:$0xff] }
  0x39   :  { %545 = vmatpush.msrb.mxu3 %v3598_v37  ;;  %525 = vmatpush.msrb.mxu2 %v3603_v38  ;;  %6342 = vst [vmem:[#allocation13_spill] sm:$0xff] %v3654_v47  ;;  %v3729_v60 = vld [vmem:[%s6143_s2 + $0x58] sm:$0xff]  ;;  %v3736_v61 = vld [vmem:[%s6143_s2 + $0x20] sm:$0xff]  ;;  %v3741_v62 = vld [vmem:[%s6143_s2 + $0x28] sm:$0xff] }
  0x3a   :  { %334 = vmatmul.f32.gmra.mxu0 %v297_v39  ;;  %369 = vmatmul.f32.gmra.mxu1 %v297_v39  ;;  %6343 = vst [vmem:[#allocation14_spill] sm:$0xff] %v3660_v48  ;;  %v3748_v63 = vld [vmem:[%s6143_s2 + $0x30] sm:$0xff]  ;;  %v3753_v0 = vld [vmem:[%s6143_s2 + $0x38] sm:$0xff]  ;;  %v299_v13 = vld [vmem:[%s6141_s0 + $0x28] sm:$0xff] }
  0x3b   :  { %404 = vmatmul.f32.gmra.mxu2 %v297_v39  ;;  %439 = vmatmul.f32.gmra.mxu3 %v297_v39  ;;  %6344 = vst [vmem:[#allocation15_spill] sm:$0xff] %v3665_v49  ;;  %v3765_v26 = vld [vmem:[%s6143_s2] sm:$0xff]  ;;  %v3770_v39 = vld [vmem:[%s6143_s2 + $0x8] sm:$0xff] }
  0x3c   :  { %486 = vmatpush.msrb.mxu0 %v3615_v40  ;;  %506 = vmatpush.msrb.mxu1 %v3620_v41  ;;  %6345 = vst [vmem:[#allocation16_spill] sm:$0xff] %v3673_v50 }
  0x3d   :  { %546 = vmatpush.msrb.mxu3 %v3627_v42  ;;  %526 = vmatpush.msrb.mxu2 %v3632_v43  ;;  %6346 = vst [vmem:[#allocation17_spill] sm:$0xff] %v3678_v51 }
  0x3e   :  { %487 = vmatpush.msrb.mxu0 %v3637_v44  ;;  %507 = vmatpush.msrb.mxu1 %v3642_v45  ;;  %6347 = vst [vmem:[#allocation18_spill] sm:$0xff] %v3690_v53 }
  0x3f   :  { %547 = vmatpush.msrb.mxu3 %v3649_v46  ;;  %527 = vmatpush.msrb.mxu2 %v3654_v47  ;;  %6348 = vst [vmem:[#allocation19_spill] sm:$0xff] %v3695_v54 }
  0x40   :  { %488 = vmatpush.msrb.mxu0 %v3660_v48  ;;  %508 = vmatpush.msrb.mxu1 %v3665_v49  ;;  %6349 = vst [vmem:[#allocation20_spill] sm:$0xff] %v3702_v55 }
  0x41   :  { %548 = vmatpush.msrb.mxu3 %v3673_v50  ;;  %528 = vmatpush.msrb.mxu2 %v3678_v51  ;;  %6350 = vst [vmem:[#allocation21_spill] sm:$0xff] %v3707_v56 }
  0x42   :  { %337 = vmatmul.f32.gmra.mxu0 %v298_v52  ;;  %372 = vmatmul.f32.gmra.mxu1 %v298_v52  ;;  %6351 = vst [vmem:[#allocation22_spill] sm:$0xff] %v3712_v57 }
  0x43   :  { %407 = vmatmul.f32.gmra.mxu2 %v298_v52  ;;  %442 = vmatmul.f32.gmra.mxu3 %v298_v52  ;;  %6352 = vst [vmem:[#allocation23_spill] sm:$0xff] %v3717_v58  ;;  %v3777_v52 = vld [vmem:[%s6143_s2 + $0x10] sm:$0xff] }
  0x44   :  { %489 = vmatpush.msrb.mxu0 %v3690_v53  ;;  %509 = vmatpush.msrb.mxu1 %v3695_v54  ;;  %6353 = vst [vmem:[#allocation24_spill] sm:$0xff] %v3724_v59 }
  0x45   :  { %6354 = vst [vmem:[#allocation25_spill] sm:$0xff] %v3729_v60  ;;  %529 = vmatpush.msrb.mxu2 %v3702_v55  ;;  %549 = vmatpush.msrb.mxu3 %v3707_v56 }
  0x46   :  { %6355 = vst [vmem:[#allocation26_spill] sm:$0xff] %v3736_v61  ;;  %490 = vmatpush.msrb.mxu0 %v3712_v57  ;;  %510 = vmatpush.msrb.mxu1 %v3717_v58 }
  0x47   :  { %6356 = vst [vmem:[#allocation27_spill] sm:$0xff] %v3741_v62  ;;  %530 = vmatpush.msrb.mxu2 %v3724_v59  ;;  %550 = vmatpush.msrb.mxu3 %v3729_v60 }
  0x48   :  { %6357 = vst [vmem:[#allocation28_spill] sm:$0xff] %v3748_v63  ;;  %491 = vmatpush.msrb.mxu0 %v3736_v61  ;;  %511 = vmatpush.msrb.mxu1 %v3741_v62  ;;  %v3782_v62 = vld [vmem:[%s6143_s2 + $0x18] sm:$0xff] }
  0x49   :  { %6358 = vst [vmem:[#allocation29_spill] sm:$0xff] %v3753_v0  ;;  %531 = vmatpush.msrb.mxu2 %v3748_v63  ;;  %551 = vmatpush.msrb.mxu3 %v3753_v0 }
  0x4a   :  { %6359 = vst [vmem:[#allocation30_spill] sm:$0xff] %v3765_v26  ;;  %340 = vmatmul.f32.gmra.mxu0 %v299_v13  ;;  %375 = vmatmul.f32.gmra.mxu1 %v299_v13 }
  0x4b   :  { %6360 = vst [vmem:[#allocation31_spill] sm:$0xff] %v3770_v39  ;;  %410 = vmatmul.f32.gmra.mxu2 %v299_v13  ;;  %445 = vmatmul.f32.gmra.mxu3 %v299_v13  ;;  %v6154_v13 = vmov 0.0  }
  0x4c   :  { %6361 = vst [vmem:[#allocation32_spill] sm:$0xff] %v3777_v52  ;;  %492 = vmatpush.msrb.mxu0 %v3765_v26  ;;  %512 = vmatpush.msrb.mxu1 %v3770_v39 }
  0x4d   :  { %6362 = vst [vmem:[#allocation33_spill] sm:$0xff] %v3782_v62  ;;  %532 = vmatpush.msrb.mxu2 %v3777_v52  ;;  %552 = vmatpush.msrb.mxu3 %v3782_v62 }
  0x4e   :  { %630 = vmatpush.msra.mxu0 %v3392_v1  ;;  %650 = vmatpush.msra.mxu1 %v3397_v2 }
  0x4f   :  { %670 = vmatpush.msra.mxu2 %v3407_v4  ;;  %690 = vmatpush.msra.mxu3 %v3402_v3 }
  0x50   :  { %631 = vmatpush.msra.mxu0 %v3412_v5  ;;  %651 = vmatpush.msra.mxu1 %v3417_v6 }
  0x51   :  { %671 = vmatpush.msra.mxu2 %v3429_v8  ;;  %691 = vmatpush.msra.mxu3 %v3424_v7 }
  0x52   :  { %493 = vmatmul.f32.vlgmr.msrb.gmra.mxu0 %v6154_v13  ;;  %513 = vmatmul.f32.vlgmr.msrb.gmra.mxu1 %v6154_v13 }
  0x53   :  { %533 = vmatmul.f32.vlgmr.msrb.gmra.mxu2 %v6154_v13  ;;  %553 = vmatmul.f32.vlgmr.msrb.gmra.mxu3 %v6154_v13  ;;  %v6363_v13 = vld [vmem:[#allocation27_spill] sm:$0xff] }
  0x54   :  { %632 = vmatpush.msra.mxu0 %v3435_v9  ;;  %652 = vmatpush.msra.mxu1 %v3440_v10 }
  0x55   :  { %672 = vmatpush.msra.mxu2 %v3453_v12  ;;  %692 = vmatpush.msra.mxu3 %v3448_v11 }
  0x56   :  { %633 = vmatpush.msra.mxu0 %v3465_v14  ;;  %653 = vmatpush.msra.mxu1 %v3470_v15 }
  0x57   :  { %673 = vmatpush.msra.mxu2 %v3482_v17  ;;  %693 = vmatpush.msra.mxu3 %v3477_v16 }
  0x58   :  { %634 = vmatpush.msra.mxu0 %v3487_v18  ;;  %654 = vmatpush.msra.mxu1 %v3492_v19 }
  0x59   :  { %674 = vmatpush.msra.mxu2 %v3504_v21  ;;  %694 = vmatpush.msra.mxu3 %v3499_v20 }
  0x5a   :  { %635 = vmatpush.msra.mxu0 %v3510_v22  ;;  %655 = vmatpush.msra.mxu1 %v3515_v23 }
  0x5b   :  { %675 = vmatpush.msra.mxu2 %v3528_v25  ;;  %695 = vmatpush.msra.mxu3 %v3523_v24 }
  0x5c   :  { %636 = vmatpush.msra.mxu0 %v3540_v27  ;;  %656 = vmatpush.msra.mxu1 %v3545_v28 }
  0x5d   :  { %676 = vmatpush.msra.mxu2 %v3557_v30  ;;  %696 = vmatpush.msra.mxu3 %v3552_v29 }
  0x5e   :  { %637 = vmatpush.msra.mxu0 %v3562_v31  ;;  %657 = vmatpush.msra.mxu1 %v3567_v32 }
  0x5f   :  { %677 = vmatpush.msra.mxu2 %v3579_v34  ;;  %697 = vmatpush.msra.mxu3 %v3574_v33 }
  0x60   :  { %638 = vmatpush.msra.mxu0 %v3585_v35  ;;  %658 = vmatpush.msra.mxu1 %v3590_v36 }
  0x61   :  { %678 = vmatpush.msra.mxu2 %v3603_v38  ;;  %698 = vmatpush.msra.mxu3 %v3598_v37 }
  0x62   :  { %639 = vmatpush.msra.mxu0 %v3615_v40  ;;  %659 = vmatpush.msra.mxu1 %v3620_v41 }
  0x63   :  { %679 = vmatpush.msra.mxu2 %v3632_v43  ;;  %699 = vmatpush.msra.mxu3 %v3627_v42 }
  0x64   :  { %640 = vmatpush.msra.mxu0 %v3637_v44  ;;  %660 = vmatpush.msra.mxu1 %v3642_v45 }
  0x65   :  { %680 = vmatpush.msra.mxu2 %v3654_v47  ;;  %700 = vmatpush.msra.mxu3 %v3649_v46 }
  0x66   :  { %641 = vmatpush.msra.mxu0 %v3660_v48  ;;  %661 = vmatpush.msra.mxu1 %v3665_v49 }
  0x67   :  { %681 = vmatpush.msra.mxu2 %v3678_v51  ;;  %701 = vmatpush.msra.mxu3 %v3673_v50 }
  0x68   :  { %642 = vmatpush.msra.mxu0 %v3690_v53  ;;  %662 = vmatpush.msra.mxu1 %v3695_v54 }
  0x69   :  { %682 = vmatpush.msra.mxu2 %v3702_v55  ;;  %702 = vmatpush.msra.mxu3 %v3707_v56 }
  0x6a   :  { %643 = vmatpush.msra.mxu0 %v3712_v57  ;;  %663 = vmatpush.msra.mxu1 %v3717_v58 }
  0x6b   :  { %683 = vmatpush.msra.mxu2 %v3724_v59  ;;  %703 = vmatpush.msra.mxu3 %v3729_v60 }
  0x6c   :  { %644 = vmatpush.msra.mxu0 %v3736_v61  ;;  %664 = vmatpush.msra.mxu1 %v6363_v13 }
  0x6d   :  { %684 = vmatpush.msra.mxu2 %v3748_v63  ;;  %704 = vmatpush.msra.mxu3 %v3753_v0 }
  0x6e   :  { %645 = vmatpush.msra.mxu0 %v3765_v26  ;;  %665 = vmatpush.msra.mxu1 %v3770_v39 }
  0x6f   :  { %685 = vmatpush.msra.mxu2 %v3777_v52  ;;  %705 = vmatpush.msra.mxu3 %v3782_v62 }
  0x70   :  { %784 = vmatpush.msrb.mxu0 %v3392_v1  ;;  %804 = vmatpush.msrb.mxu1 %v3397_v2 }
  0x71   :  { %824 = vmatpush.msrb.mxu2 %v3407_v4  ;;  %844 = vmatpush.msrb.mxu3 %v3402_v3 }
  0x72   :  { %785 = vmatpush.msrb.mxu0 %v3412_v5  ;;  %805 = vmatpush.msrb.mxu1 %v3417_v6 }
  0x73   :  { %825 = vmatpush.msrb.mxu2 %v3429_v8  ;;  %845 = vmatpush.msrb.mxu3 %v3424_v7 }
  0x74   :  { %786 = vmatpush.msrb.mxu0 %v3435_v9  ;;  %806 = vmatpush.msrb.mxu1 %v3440_v10 }
  0x75   :  { %826 = vmatpush.msrb.mxu2 %v3453_v12  ;;  %846 = vmatpush.msrb.mxu3 %v3448_v11 }
  0x76   :  { %787 = vmatpush.msrb.mxu0 %v3465_v14  ;;  %807 = vmatpush.msrb.mxu1 %v3470_v15 }
  0x77   :  { %827 = vmatpush.msrb.mxu2 %v3482_v17  ;;  %847 = vmatpush.msrb.mxu3 %v3477_v16 }
  0x78   :  { %788 = vmatpush.msrb.mxu0 %v3487_v18  ;;  %808 = vmatpush.msrb.mxu1 %v3492_v19 }
  0x79   :  { %828 = vmatpush.msrb.mxu2 %v3504_v21  ;;  %848 = vmatpush.msrb.mxu3 %v3499_v20 }
  0x7a   :  { %789 = vmatpush.msrb.mxu0 %v3510_v22  ;;  %809 = vmatpush.msrb.mxu1 %v3515_v23 }
  0x7b   :  { %829 = vmatpush.msrb.mxu2 %v3528_v25  ;;  %849 = vmatpush.msrb.mxu3 %v3523_v24 }
  0x7c   :  { %790 = vmatpush.msrb.mxu0 %v3540_v27  ;;  %810 = vmatpush.msrb.mxu1 %v3545_v28 }
  0x7d   :  { %830 = vmatpush.msrb.mxu2 %v3557_v30  ;;  %850 = vmatpush.msrb.mxu3 %v3552_v29 }
  0x7e   :  { %791 = vmatpush.msrb.mxu0 %v3562_v31  ;;  %811 = vmatpush.msrb.mxu1 %v3567_v32 }
  0x7f   :  { %831 = vmatpush.msrb.mxu2 %v3579_v34  ;;  %851 = vmatpush.msrb.mxu3 %v3574_v33 }
  0x80   :  { %792 = vmatpush.msrb.mxu0 %v3585_v35  ;;  %812 = vmatpush.msrb.mxu1 %v3590_v36 }
  0x81   :  { %832 = vmatpush.msrb.mxu2 %v3603_v38  ;;  %852 = vmatpush.msrb.mxu3 %v3598_v37 }
  0x82   :  { %793 = vmatpush.msrb.mxu0 %v3615_v40  ;;  %813 = vmatpush.msrb.mxu1 %v3620_v41 }
  0x83   :  { %833 = vmatpush.msrb.mxu2 %v3632_v43  ;;  %853 = vmatpush.msrb.mxu3 %v3627_v42 }
  0x84   :  { %794 = vmatpush.msrb.mxu0 %v3637_v44  ;;  %814 = vmatpush.msrb.mxu1 %v3642_v45 }
  0x85   :  { %834 = vmatpush.msrb.mxu2 %v3654_v47  ;;  %854 = vmatpush.msrb.mxu3 %v3649_v46 }
  0x86   :  { %795 = vmatpush.msrb.mxu0 %v3660_v48  ;;  %815 = vmatpush.msrb.mxu1 %v3665_v49 }
  0x87   :  { %835 = vmatpush.msrb.mxu2 %v3678_v51  ;;  %855 = vmatpush.msrb.mxu3 %v3673_v50 }
  0x88   :  { %796 = vmatpush.msrb.mxu0 %v3690_v53  ;;  %816 = vmatpush.msrb.mxu1 %v3695_v54 }
  0x89   :  { %836 = vmatpush.msrb.mxu2 %v3702_v55  ;;  %856 = vmatpush.msrb.mxu3 %v3707_v56 }
  0x8a   :  { %797 = vmatpush.msrb.mxu0 %v3712_v57  ;;  %817 = vmatpush.msrb.mxu1 %v3717_v58 }
  0x8b   :  { %837 = vmatpush.msrb.mxu2 %v3724_v59  ;;  %857 = vmatpush.msrb.mxu3 %v3729_v60 }
  0x8c   :  { %798 = vmatpush.msrb.mxu0 %v3736_v61  ;;  %818 = vmatpush.msrb.mxu1 %v6363_v13 }
  0x8d   :  { %838 = vmatpush.msrb.mxu2 %v3748_v63  ;;  %858 = vmatpush.msrb.mxu3 %v3753_v0 }
  0x8e   :  { %799 = vmatpush.msrb.mxu0 %v3765_v26  ;;  %819 = vmatpush.msrb.mxu1 %v3770_v39 }
  0x8f   :  { %839 = vmatpush.msrb.mxu2 %v3777_v52  ;;  %859 = vmatpush.msrb.mxu3 %v3782_v62 }
  0x9f   :  { %v326_v58 = vpop.f32.mrf.mxu0  ;;  %v361_v59 = vpop.f32.mrf.mxu1 }
  0xa6   :  { %v396_v57 = vpop.f32.mrf.mxu2  ;;  %v431_v60 = vpop.f32.mrf.mxu3 }
  0xa7   :  { %v3920_v56 = vpop.f32.mrf.mxu0  ;;  %v3922_v61 = vpop.f32.mrf.mxu1 }
  0xa8   :  { %6364 = vst [vmem:[#allocation34_spill] sm:$0xff] %v3920_v56 }
  0xa9   :  { %6365 = vst [vmem:[#allocation35_spill] sm:$0xff] %v3922_v61 }
  0xae   :  { %v3924_v13 = vpop.f32.mrf.mxu2  ;;  %v3926_v63 = vpop.f32.mrf.mxu3 }
  0xaf   :  { %6366 = vst [vmem:[#allocation36_spill] sm:$0xff] %v3924_v13  ;;  %v3928_v0 = vpop.f32.mrf.mxu0  ;;  %v3930_v26 = vpop.f32.mrf.mxu1 }
  0xb0   :  { %6367 = vst [vmem:[#allocation37_spill] sm:$0xff] %v3926_v63 }
  0xb1   :  { %6368 = vst [vmem:[#allocation38_spill] sm:$0xff] %v3928_v0 }
  0xb2   :  { %6369 = vst [vmem:[#allocation39_spill] sm:$0xff] %v3930_v26 }
  0xb6   :  { %v3932_v39 = vpop.f32.mrf.mxu3  ;;  %v3938_v55 = vpop.f32.mrf.mxu2 }
  0xb7   :  { %6370 = vst [vmem:[#allocation40_spill] sm:$0xff] %v3932_v39  ;;  %v3934_v52 = vpop.f32.mrf.mxu0  ;;  %v3936_v62 = vpop.f32.mrf.mxu1  ;;  %v164_v39 = vld [vmem:[%s6144_s3] sm:$0xf] }
  0xb8   :  { %6371 = vst [vmem:[#allocation41_spill] sm:$0xff] %v3934_v52  ;;  %v3967_v51 = vperm.slane %v164_v39, 3 }
  0xb9   :  { %6372 = vst [vmem:[#allocation42_spill] sm:$0xff] %v3936_v62  ;;  %v3957_v62 = vperm.slane %v164_v39, 0 }
  0xba   :  { %6373 = vst [vmem:[#allocation43_spill] sm:$0xff] %v3938_v55  ;;  %v3959_v55 = vperm.slane %v164_v39, 1  ;;  %v432_v49 = vadd.f32 %v431_v60, %v3967_v51 }
  0xbb   :  { %6381 = vst [vmem:[#allocation51_spill] sm:$0xff] %v3957_v62 }
  0xbc   :  { %6382 = vst [vmem:[#allocation52_spill] sm:$0xff] %v3959_v55 }
  0xbd   :  { %6385 = vst [vmem:[#allocation55_spill] sm:$0xff] %v3967_v51 }
  0xbe   :  { %v3940_v54 = vpop.f32.mrf.mxu3  ;;  %v3946_v13 = vpop.f32.mrf.mxu2 }
  0xbf   :  { %6374 = vst [vmem:[#allocation44_spill] sm:$0xff] %v3940_v54  ;;  %v3942_v56 = vpop.f32.mrf.mxu0  ;;  %v3944_v61 = vpop.f32.mrf.mxu1 }
  0xc0   :  { %6375 = vst [vmem:[#allocation45_spill] sm:$0xff] %v3942_v56  ;;  %v362_v56 = vadd.f32 %v361_v59, %v3959_v55 }
  0xc1   :  { %6376 = vst [vmem:[#allocation46_spill] sm:$0xff] %v3944_v61  ;;  %v327_v61 = vadd.f32 %v326_v58, %v3957_v62 }
  0xc2   :  { %6377 = vst [vmem:[#allocation47_spill] sm:$0xff] %v3946_v13 }
  0xc6   :  { %v3948_v63 = vpop.f32.mrf.mxu3  ;;  %v3961_v54 = vpop.f32.mrf.mxu2 }
  0xc7   :  { %6378 = vst [vmem:[#allocation48_spill] sm:$0xff] %v3948_v63  ;;  %v3953_v26 = vpop.f32.mrf.mxu0  ;;  %v3955_v52 = vpop.f32.mrf.mxu1 }
  0xc8   :  { %6379 = vst [vmem:[#allocation49_spill] sm:$0xff] %v3953_v26 }
  0xc9   :  { %6380 = vst [vmem:[#allocation50_spill] sm:$0xff] %v3955_v52 }
  0xca   :  { %6383 = vst [vmem:[#allocation53_spill] sm:$0xff] %v3961_v54 }
  0xce   :  { %v3965_v13 = vpop.f32.mrf.mxu3  ;;  %v3970_v48 = vpop.f32.mrf.mxu2 }
  0xcf   :  { %6384 = vst [vmem:[#allocation54_spill] sm:$0xff] %v3965_v13  ;;  %v494_v63 = vpop.f32.mrf.mxu0  ;;  %v514_v0 = vpop.f32.mrf.mxu1 }
  0xd0   :  { %v557_v53 = vadd.f32 %v494_v63, %v327_v61  ;;  %v558_v50 = vadd.f32 %v514_v0, %v362_v56  ;;  %6386 = vst [vmem:[#allocation56_spill] sm:$0xff] %v3970_v48  ;;  %v3972_v61 = vperm.slane %v164_v39, 2 }
  0xd2   :  { %v2749_v26 = vmul.f32 -1.442695, %v557_v53  ;;  %v2750_v52 = vmul.f32 -1.442695, %v558_v50  ;;  %6387 = vst [vmem:[#allocation57_spill] sm:$0xff] %v3972_v61  ;;  %v397_v56 = vadd.f32 %v396_v57, %v3972_v61 }
  0xd4   :  { %2789 = vpow2.f32 %v2749_v26 }
  0xd5   :  { %2791 = vpow2.f32 %v2750_v52 }
  0xd6   :  { %v554_v54 = vpop.f32.mrf.mxu3  ;;  %v534_v53 = vpop.f32.mrf.mxu2 }
  0xd7   :  { %v560_v58 = vadd.f32 %v554_v54, %v432_v49  ;;  %v559_v0 = vadd.f32 %v534_v53, %v397_v56 }
  0xd9   :  { %v2751_v62 = vmul.f32 -1.442695, %v560_v58 }
  0xda   :  { %v2790_v59 = vpop.eup %2789 }
  0xdb   :  { %v2792_v55 = vpop.eup %2791  ;;  %v570_v13 = vadd.f32 1.0, %v2790_v59  ;;  %2793 = vpow2.f32 %v2751_v62 }
  0xdc   :  { %v571_v46 = vadd.f32 1.0, %v2792_v55 }
  0xdd   :  { %2795 = vrcp.f32 %v570_v13  ;;  %v584_v59 = vand.u32 2147483648, %v570_v13  ;;  %v582_v39 = vand.u32 2147483647, %v570_v13  ;;  %vm578_vm2 = vweird.f32 %v570_v13 }
  0xde   :  { %2797 = vrcp.f32 %v571_v46  ;;  %v599_v55 = vand.u32 2147483648, %v571_v46  ;;  %v597_v51 = vand.u32 2147483647, %v571_v46  ;;  %vm593_vm3 = vweird.f32 %v571_v46 }
  0xdf   :  { %v585_v53 = vor.u32 1.1754944e-38, %v584_v59  ;;  %vm583_vm5 = vcmp.eq.f32.partialorder %v582_v39, 8.507059e+37 }
  0xe0   :  { %v600_v61 = vor.u32 1.1754944e-38, %v599_v55  ;;  %vm598_vm7 = vcmp.eq.f32.partialorder %v597_v51, 8.507059e+37 }
  0xe1   :  { %v2794_v50 = vpop.eup %2793 }
  0xe2   :  { %v572_v60 = vadd.f32 1.0, %v2794_v50 }
  0xe3   :  { %v2796_v63 = vpop.eup %2795 }
  0xe4   :  { %v2798_v26 = vpop.eup %2797  ;;  %v574_v52 = vmul.f32 %v2796_v63, %v570_v13  ;;  %2799 = vrcp.f32 %v572_v60  ;;  %vm579_vm0 = vweird.f32 %v2796_v63  ;;  %vm608_vm9 = vweird.f32 %v572_v60 }
  0xe5   :  { %v589_v49 = vmul.f32 %v2798_v26, %v571_v46  ;;  %2801 = vtanh.f32 %v559_v0  ;;  %vm594_vm1 = vweird.f32 %v2798_v26  ;;  %vm580_vm4 = vmor %vm578_vm2, %vm579_vm0  ;;  %v612_v13 = vand.u32 2147483647, %v572_v60 }
  0xe6   :  { %v575_v54 = vsub.f32 1.0, %v574_v52  ;;  %vm595_vm6 = vmor %vm593_vm3, %vm594_vm1 }
  0xe7   :  { %v590_v58 = vsub.f32 1.0, %v589_v49  ;;  %vm613_vm11 = vcmp.eq.f32.partialorder %v612_v13, 8.507059e+37 }
  0xe8   :  { %v576_v62 = vmul.f32 %v2796_v63, %v575_v54 }
  0xe9   :  { %v591_v48 = vmul.f32 %v2798_v26, %v590_v58 }
  0xea   :  { %v2800_v47 = vpop.eup %2799  ;;  %v577_v57 = vadd.f32 %v2796_v63, %v576_v62 }
  0xeb   :  { %v592_v50 = vadd.f32 %v2798_v26, %v591_v48  ;;  %v604_v56 = vmul.f32 %v2800_v47, %v572_v60  ;;  %v2802_v0 = vpop.eup %2801  ;;  %vm609_vm8 = vweird.f32 %v2800_v47  ;;  %v614_v48 = vand.u32 2147483648, %v572_v60 }
  0xec   :  { %v581_v52 = vsel %vm580_vm4, %v2796_v63, %v577_v57  ;;  %vm610_vm10 = vmor %vm608_vm9, %vm609_vm8 }
  0xed   :  { %v586_v49 = vsel %vm583_vm5, %v585_v53, %v581_v52  ;;  %v596_v54 = vsel %vm595_vm6, %v2798_v26, %v592_v50  ;;  %v605_v45 = vsub.f32 1.0, %v604_v56  ;;  %v615_v59 = vor.u32 1.1754944e-38, %v614_v48  ;;  %v6419_v52 = vld [vmem:[#allocation55_spill] sm:$0xff] }
  0xee   :  { %v601_v58 = vsel %vm598_vm7, %v600_v61, %v596_v54  ;;  %v620_v44 = vmul.f32 %v2802_v0, %v586_v49  ;;  %v6420_v0 = vld [vmem:[#allocation37_spill] sm:$0xff] }
  0xef   :  { %v619_v42 = vmul.f32 0.0, %v601_v58  ;;  %v606_v43 = vmul.f32 %v2800_v47, %v605_v45  ;;  %v6417_v45 = vld [vmem:[#allocation52_spill] sm:$0xff]  ;;  %v435_v49 = vadd.f32 %v6420_v0, %v6419_v52 }
  0xf1   :  { %v3975_v62 = vadd.f32 %v620_v44, %v619_v42  ;;  %v607_v46 = vadd.f32 %v2800_v47, %v606_v43  ;;  %v6415_v42 = vld [vmem:[#allocation51_spill] sm:$0xff]  ;;  %v6416_v43 = vld [vmem:[#allocation34_spill] sm:$0xff] }
  0xf2   :  { %v330_v44 = vadd.f32 %v6416_v43, %v6415_v42  ;;  %v6421_v43 = vld [vmem:[#allocation57_spill] sm:$0xff] }
  0xf3   :  { %2803 = vtanh.f32 %v3975_v62  ;;  %v611_v63 = vsel %vm610_vm10, %v2800_v47, %v607_v46  ;;  %v6418_v47 = vld [vmem:[#allocation35_spill] sm:$0xff] }
  0xf4   :  { %v616_v51 = vsel %vm613_vm11, %v615_v59, %v611_v63  ;;  %v365_v61 = vadd.f32 %v6418_v47, %v6417_v45 }
  0xf9   :  { %v2804_v26 = vpop.eup %2803 }
  0xfa   :  { %v3978_v55 = vmul.f32 %v2804_v26, %v616_v51 }
  0xfc   :  { %6388 = vst [vmem:[#allocation58_spill] sm:$0xff] %v3978_v55  ;;  %646 = vmatmul.f32.vlgmr.msra.gmra.mxu0 %v3978_v55  ;;  %666 = vmatmul.f32.vlgmr.msra.gmra.mxu1 %v3978_v55 }
  0xfd   :  { %686 = vmatmul.f32.vlgmr.msra.gmra.mxu2 %v3978_v55  ;;  %706 = vmatmul.f32.vlgmr.msra.gmra.mxu3 %v3978_v55 }
  0xfe   :  { %938 = vmatpush.msra.mxu0 %v3392_v1  ;;  %958 = vmatpush.msra.mxu1 %v3397_v2  ;;  %v6389_v1 = vld [vmem:[#allocation9_spill] sm:$0xff]  ;;  %v6390_v2 = vld [vmem:[#allocation8_spill] sm:$0xff] }
  0xff   :  { %978 = vmatpush.msra.mxu2 %v3407_v4  ;;  %998 = vmatpush.msra.mxu3 %v3402_v3  ;;  %v6391_v3 = vld [vmem:[#allocation10_spill] sm:$0xff]  ;;  %v6392_v4 = vld [vmem:[#allocation11_spill] sm:$0xff] }
 0x100   :  { %939 = vmatpush.msra.mxu0 %v3412_v5  ;;  %959 = vmatpush.msra.mxu1 %v3417_v6  ;;  %v6393_v5 = vld [vmem:[#allocation13_spill] sm:$0xff]  ;;  %v6394_v6 = vld [vmem:[#allocation12_spill] sm:$0xff] }
 0x101   :  { %979 = vmatpush.msra.mxu2 %v3429_v8  ;;  %999 = vmatpush.msra.mxu3 %v3424_v7  ;;  %v6395_v7 = vld [vmem:[#allocation14_spill] sm:$0xff]  ;;  %v6396_v8 = vld [vmem:[#allocation15_spill] sm:$0xff] }
 0x102   :  { %940 = vmatpush.msra.mxu0 %v3435_v9  ;;  %960 = vmatpush.msra.mxu1 %v3440_v10  ;;  %v6397_v9 = vld [vmem:[#allocation17_spill] sm:$0xff]  ;;  %v6398_v10 = vld [vmem:[#allocation16_spill] sm:$0xff] }
 0x103   :  { %980 = vmatpush.msra.mxu2 %v3453_v12  ;;  %1000 = vmatpush.msra.mxu3 %v3448_v11  ;;  %v6399_v11 = vld [vmem:[#allocation18_spill] sm:$0xff]  ;;  %v6400_v12 = vld [vmem:[#allocation19_spill] sm:$0xff] }
 0x104   :  { %941 = vmatpush.msra.mxu0 %v3465_v14  ;;  %961 = vmatpush.msra.mxu1 %v3470_v15  ;;  %v6401_v14 = vld [vmem:[#allocation20_spill] sm:$0xff]  ;;  %v6402_v15 = vld [vmem:[#allocation21_spill] sm:$0xff] }
 0x105   :  { %981 = vmatpush.msra.mxu2 %v3482_v17  ;;  %1001 = vmatpush.msra.mxu3 %v3477_v16  ;;  %v6403_v16 = vld [vmem:[#allocation22_spill] sm:$0xff]  ;;  %v6404_v17 = vld [vmem:[#allocation23_spill] sm:$0xff] }
 0x106   :  { %942 = vmatpush.msra.mxu0 %v3487_v18  ;;  %962 = vmatpush.msra.mxu1 %v3492_v19  ;;  %v6405_v18 = vld [vmem:[#allocation24_spill] sm:$0xff]  ;;  %v6406_v19 = vld [vmem:[#allocation25_spill] sm:$0xff] }
 0x107   :  { %982 = vmatpush.msra.mxu2 %v3504_v21  ;;  %1002 = vmatpush.msra.mxu3 %v3499_v20  ;;  %v6407_v20 = vld [vmem:[#allocation26_spill] sm:$0xff]  ;;  %v6408_v21 = vld [vmem:[#allocation27_spill] sm:$0xff] }
 0x108   :  { %943 = vmatpush.msra.mxu0 %v3510_v22  ;;  %963 = vmatpush.msra.mxu1 %v3515_v23  ;;  %v6409_v22 = vld [vmem:[#allocation28_spill] sm:$0xff]  ;;  %v6410_v23 = vld [vmem:[#allocation29_spill] sm:$0xff] }
 0x109   :  { %983 = vmatpush.msra.mxu2 %v3528_v25  ;;  %1003 = vmatpush.msra.mxu3 %v3523_v24  ;;  %v6411_v24 = vld [vmem:[#allocation30_spill] sm:$0xff]  ;;  %v6412_v25 = vld [vmem:[#allocation31_spill] sm:$0xff] }
 0x10a   :  { %944 = vmatpush.msra.mxu0 %v3540_v27  ;;  %964 = vmatpush.msra.mxu1 %v3545_v28  ;;  %v6413_v27 = vld [vmem:[#allocation32_spill] sm:$0xff]  ;;  %v6414_v28 = vld [vmem:[#allocation33_spill] sm:$0xff] }
 0x10b   :  { %984 = vmatpush.msra.mxu2 %v3557_v30  ;;  %1004 = vmatpush.msra.mxu3 %v3552_v29 }
 0x10c   :  { %945 = vmatpush.msra.mxu0 %v3562_v31  ;;  %965 = vmatpush.msra.mxu1 %v3567_v32 }
 0x10d   :  { %985 = vmatpush.msra.mxu2 %v3579_v34  ;;  %1005 = vmatpush.msra.mxu3 %v3574_v33 }
 0x10e   :  { %946 = vmatpush.msra.mxu0 %v3585_v35  ;;  %966 = vmatpush.msra.mxu1 %v3590_v36 }
 0x10f   :  { %986 = vmatpush.msra.mxu2 %v3603_v38  ;;  %1006 = vmatpush.msra.mxu3 %v3598_v37 }
 0x110   :  { %947 = vmatpush.msra.mxu0 %v3615_v40  ;;  %967 = vmatpush.msra.mxu1 %v3620_v41 }
 0x111   :  { %987 = vmatpush.msra.mxu2 %v6389_v1  ;;  %1007 = vmatpush.msra.mxu3 %v6390_v2 }
 0x112   :  { %948 = vmatpush.msra.mxu0 %v6391_v3  ;;  %968 = vmatpush.msra.mxu1 %v6392_v4 }
 0x113   :  { %988 = vmatpush.msra.mxu2 %v6393_v5  ;;  %1008 = vmatpush.msra.mxu3 %v6394_v6 }
 0x114   :  { %949 = vmatpush.msra.mxu0 %v6395_v7  ;;  %969 = vmatpush.msra.mxu1 %v6396_v8 }
 0x115   :  { %989 = vmatpush.msra.mxu2 %v6397_v9  ;;  %1009 = vmatpush.msra.mxu3 %v6398_v10 }
 0x116   :  { %950 = vmatpush.msra.mxu0 %v6399_v11  ;;  %970 = vmatpush.msra.mxu1 %v6400_v12 }
 0x117   :  { %990 = vmatpush.msra.mxu2 %v6401_v14  ;;  %1010 = vmatpush.msra.mxu3 %v6402_v15 }
 0x118   :  { %951 = vmatpush.msra.mxu0 %v6403_v16  ;;  %971 = vmatpush.msra.mxu1 %v6404_v17 }
 0x119   :  { %991 = vmatpush.msra.mxu2 %v6405_v18  ;;  %1011 = vmatpush.msra.mxu3 %v6406_v19 }
 0x11a   :  { %952 = vmatpush.msra.mxu0 %v6407_v20  ;;  %972 = vmatpush.msra.mxu1 %v6408_v21 }
 0x11b   :  { %992 = vmatpush.msra.mxu2 %v6409_v22  ;;  %1012 = vmatpush.msra.mxu3 %v6410_v23 }
 0x11c   :  { %953 = vmatpush.msra.mxu0 %v6411_v24  ;;  %973 = vmatpush.msra.mxu1 %v6412_v25 }
 0x11d   :  { %993 = vmatpush.msra.mxu2 %v6413_v27  ;;  %1013 = vmatpush.msra.mxu3 %v6414_v28 }
 0x179   :  { %v647_v60 = vpop.f32.mrf.mxu0  ;;  %v667_v39 = vpop.f32.mrf.mxu1 }
 0x17a   :  { %v710_v57 = vadd.f32 %v647_v60, %v330_v44  ;;  %v711_v53 = vadd.f32 %v667_v39, %v365_v61  ;;  %v6422_v44 = vld [vmem:[#allocation36_spill] sm:$0xff] }
 0x17b   :  { %v400_v47 = vadd.f32 %v6422_v44, %v6421_v43 }
 0x17c   :  { %v2752_v50 = vmul.f32 -1.442695, %v710_v57  ;;  %v2753_v56 = vmul.f32 -1.442695, %v711_v53 }
 0x17e   :  { %2805 = vpow2.f32 %v2752_v50 }
 0x17f   :  { %2807 = vpow2.f32 %v2753_v56 }
 0x180   :  { %v707_v54 = vpop.f32.mrf.mxu3  ;;  %v687_v26 = vpop.f32.mrf.mxu2 }
 0x181   :  { %v713_v58 = vadd.f32 %v707_v54, %v435_v49  ;;  %v712_v39 = vadd.f32 %v687_v26, %v400_v47 }
 0x183   :  { %v2754_v46 = vmul.f32 -1.442695, %v713_v58 }
 0x184   :  { %v2806_v48 = vpop.eup %2805 }
 0x185   :  { %v2808_v13 = vpop.eup %2807  ;;  %v723_v63 = vadd.f32 1.0, %v2806_v48  ;;  %2809 = vpow2.f32 %v2754_v46 }
 0x186   :  { %v724_v59 = vadd.f32 1.0, %v2808_v13 }
 0x187   :  { %2811 = vrcp.f32 %v723_v63  ;;  %v737_v49 = vand.u32 2147483648, %v723_v63  ;;  %v735_v46 = vand.u32 2147483647, %v723_v63  ;;  %vm731_vm14 = vweird.f32 %v723_v63 }
 0x188   :  { %2813 = vrcp.f32 %v724_v59  ;;  %v752_v54 = vand.u32 2147483648, %v724_v59  ;;  %v750_v13 = vand.u32 2147483647, %v724_v59  ;;  %vm746_vm15 = vweird.f32 %v724_v59 }
 0x189   :  { %v738_v26 = vor.u32 1.1754944e-38, %v737_v49  ;;  %vm736_vm2 = vcmp.eq.f32.partialorder %v735_v46, 8.507059e+37 }
 0x18a   :  { %vm751_vm3 = vcmp.eq.f32.partialorder %v750_v13, 8.507059e+37 }
 0x18b   :  { %v2810_v51 = vpop.eup %2809 }
 0x18c   :  { %v725_v61 = vadd.f32 1.0, %v2810_v51 }
 0x18d   :  { %v2812_v60 = vpop.eup %2811 }
 0x18e   :  { %v2814_v57 = vpop.eup %2813  ;;  %v727_v53 = vmul.f32 %v2812_v60, %v723_v63  ;;  %2815 = vrcp.f32 %v725_v61  ;;  %vm732_vm12 = vweird.f32 %v2812_v60  ;;  %v767_v49 = vand.u32 2147483648, %v725_v61 }
 0x18f   :  { %v742_v50 = vmul.f32 %v2814_v57, %v724_v59  ;;  %2817 = vtanh.f32 %v712_v39  ;;  %vm747_vm13 = vweird.f32 %v2814_v57  ;;  %vm733_vm0 = vmor %vm731_vm14, %vm732_vm12  ;;  %vm761_vm5 = vweird.f32 %v725_v61 }
 0x190   :  { %v728_v56 = vsub.f32 1.0, %v727_v53  ;;  %vm748_vm1 = vmor %vm746_vm15, %vm747_vm13  ;;  %v753_v53 = vor.u32 1.1754944e-38, %v752_v54  ;;  %v768_v46 = vor.u32 1.1754944e-38, %v767_v49  ;;  %v4177_v49 = vld [vmem:[%s6143_s2 + $0x170] sm:$0xff] }
 0x191   :  { %v743_v0 = vsub.f32 1.0, %v742_v50 }
 0x192   :  { %v729_v58 = vmul.f32 %v2812_v60, %v728_v56 }
 0x193   :  { %v744_v48 = vmul.f32 %v2814_v57, %v743_v0 }
 0x194   :  { %v2816_v55 = vpop.eup %2815  ;;  %v730_v44 = vadd.f32 %v2812_v60, %v729_v58 }
 0x195   :  { %v745_v51 = vadd.f32 %v2814_v57, %v744_v48  ;;  %v757_v47 = vmul.f32 %v2816_v55, %v725_v61  ;;  %v2818_v39 = vpop.eup %2817  ;;  %vm762_vm4 = vweird.f32 %v2816_v55 }
 0x196   :  { %v734_v50 = vsel %vm733_vm0, %v2812_v60, %v730_v44  ;;  %v765_v60 = vand.u32 2147483647, %v725_v61  ;;  %vm763_vm6 = vmor %vm761_vm5, %vm762_vm4  ;;  %v4105_v61 = vld [vmem:[%s6143_s2 + $0x1d0] sm:$0xff]  ;;  %v4111_v44 = vld [vmem:[%s6143_s2 + $0x1d8] sm:$0xff] }
 0x197   :  { %v739_v43 = vsel %vm736_vm2, %v738_v26, %v734_v50  ;;  %v749_v56 = vsel %vm748_vm1, %v2814_v57, %v745_v51  ;;  %v758_v52 = vsub.f32 1.0, %v757_v47  ;;  %v4117_v26 = vld [vmem:[%s6143_s2 + $0x1a0] sm:$0xff]  ;;  %v4123_v51 = vld [vmem:[%s6143_s2 + $0x1a8] sm:$0xff]  ;;  %v4129_v47 = vld [vmem:[%s6143_s2 + $0x1b0] sm:$0xff] }
 0x198   :  { %v754_v0 = vsel %vm751_vm3, %v753_v53, %v749_v56  ;;  %v773_v45 = vmul.f32 %v2818_v39, %v739_v43  ;;  %vm766_vm7 = vcmp.eq.f32.partialorder %v765_v60, 8.507059e+37  ;;  %v4099_v43 = vld [vmem:[%s6143_s2 + $0x1c8] sm:$0xff]  ;;  %v4135_v53 = vld [vmem:[%s6143_s2 + $0x1b8] sm:$0xff]  ;;  %v4141_v50 = vld [vmem:[%s6143_s2 + $0x180] sm:$0xff] }
 0x199   :  { %v772_v42 = vmul.f32 %v754_v0, %v3975_v62  ;;  %v759_v58 = vmul.f32 %v2816_v55, %v758_v52  ;;  %v4069_v62 = vld [vmem:[%s6143_s2 + $0x1e0] sm:$0xff]  ;;  %v4147_v39 = vld [vmem:[%s6143_s2 + $0x188] sm:$0xff]  ;;  %v4153_v56 = vld [vmem:[%s6143_s2 + $0x190] sm:$0xff] }
 0x19a   :  { %v4093_v52 = vld [vmem:[%s6143_s2 + $0x1c0] sm:$0xff]  ;;  %v4159_v0 = vld [vmem:[%s6143_s2 + $0x198] sm:$0xff] }
 0x19b   :  { %v4057_v63 = vadd.f32 %v773_v45, %v772_v42  ;;  %v760_v59 = vadd.f32 %v2816_v55, %v759_v58  ;;  %v4081_v42 = vld [vmem:[%s6143_s2 + $0x1f0] sm:$0xff]  ;;  %v4087_v45 = vld [vmem:[%s6143_s2 + $0x1f8] sm:$0xff]  ;;  %v4165_v58 = vld [vmem:[%s6143_s2 + $0x160] sm:$0xff] }
 0x19c   :  { %v4183_v60 = vld [vmem:[%s6143_s2 + $0x178] sm:$0xff] }
 0x19d   :  { %2819 = vtanh.f32 %v4057_v63  ;;  %v764_v54 = vsel %vm763_vm6, %v2816_v55, %v760_v59  ;;  %v4075_v55 = vld [vmem:[%s6143_s2 + $0x1e8] sm:$0xff] }
 0x19e   :  { %v769_v48 = vsel %vm766_vm7, %v768_v46, %v764_v54  ;;  %v4171_v59 = vld [vmem:[%s6143_s2 + $0x168] sm:$0xff]  ;;  %v4189_v54 = vld [vmem:[%s6143_s2 + $0x140] sm:$0xff] }
 0x19f   :  { %v4195_v46 = vld [vmem:[%s6143_s2 + $0x148] sm:$0xff] }
 0x1a0   :  { %6424 = vst [vmem:[#allocation8_spill] sm:$0xff] %v4195_v46 }
 0x1a3   :  { %v2820_v57 = vpop.eup %2819 }
 0x1a4   :  { %v4060_v13 = vmul.f32 %v2820_v57, %v769_v48  ;;  %v4201_v57 = vld [vmem:[%s6143_s2 + $0x150] sm:$0xff]  ;;  %v4207_v48 = vld [vmem:[%s6143_s2 + $0x158] sm:$0xff] }
 0x1a6   :  { %6423 = vst [vmem:[#allocation9_spill] sm:$0xff] %v4060_v13  ;;  %800 = vmatmul.f32.vlgmr.msrb.gmra.mxu0 %v4060_v13  ;;  %820 = vmatmul.f32.vlgmr.msrb.gmra.mxu1 %v4060_v13 }
 0x1a7   :  { %840 = vmatmul.f32.vlgmr.msrb.gmra.mxu2 %v4060_v13  ;;  %860 = vmatmul.f32.vlgmr.msrb.gmra.mxu3 %v4060_v13  ;;  %v4213_v13 = vld [vmem:[%s6143_s2 + $0x120] sm:$0xff] }
 0x1a8   :  { %1092 = vmatpush.msrb.mxu0 %v4069_v62  ;;  %1112 = vmatpush.msrb.mxu1 %v4075_v55 }
 0x1a9   :  { %1132 = vmatpush.msrb.mxu2 %v4081_v42  ;;  %1152 = vmatpush.msrb.mxu3 %v4087_v45 }
 0x1aa   :  { %1093 = vmatpush.msrb.mxu0 %v4093_v52  ;;  %1113 = vmatpush.msrb.mxu1 %v4099_v43 }
 0x1ab   :  { %1133 = vmatpush.msrb.mxu2 %v4105_v61  ;;  %1153 = vmatpush.msrb.mxu3 %v4111_v44 }
 0x1ac   :  { %1094 = vmatpush.msrb.mxu0 %v4117_v26  ;;  %1114 = vmatpush.msrb.mxu1 %v4123_v51 }
 0x1ad   :  { %1134 = vmatpush.msrb.mxu2 %v4129_v47  ;;  %1154 = vmatpush.msrb.mxu3 %v4135_v53 }
 0x1ae   :  { %1095 = vmatpush.msrb.mxu0 %v4141_v50  ;;  %1115 = vmatpush.msrb.mxu1 %v4147_v39 }
 0x1af   :  { %1135 = vmatpush.msrb.mxu2 %v4153_v56  ;;  %1155 = vmatpush.msrb.mxu3 %v4159_v0 }
 0x1b0   :  { %1096 = vmatpush.msrb.mxu0 %v4165_v58  ;;  %1116 = vmatpush.msrb.mxu1 %v4171_v59 }
 0x1b1   :  { %1136 = vmatpush.msrb.mxu2 %v4177_v49  ;;  %1156 = vmatpush.msrb.mxu3 %v4183_v60 }
 0x1b2   :  { %1097 = vmatpush.msrb.mxu0 %v4189_v54  ;;  %1117 = vmatpush.msrb.mxu1 %v4195_v46  ;;  %v4219_v46 = vld [vmem:[%s6143_s2 + $0x128] sm:$0xff] }
 0x1b3   :  { %1137 = vmatpush.msrb.mxu2 %v4201_v57  ;;  %1157 = vmatpush.msrb.mxu3 %v4207_v48 }
 0x1b4   :  { %1098 = vmatpush.msrb.mxu0 %v4213_v13  ;;  %1118 = vmatpush.msrb.mxu1 %v4219_v46 }
 0x1b5   :  { %1138 = vmatpush.msrb.mxu2 %v3557_v30  ;;  %1158 = vmatpush.msrb.mxu3 %v3552_v29  ;;  %v6425_v29 = vld [vmem:[#allocation51_spill] sm:$0xff]  ;;  %v6426_v30 = vld [vmem:[#allocation38_spill] sm:$0xff] }
 0x1b6   :  { %1099 = vmatpush.msrb.mxu0 %v3562_v31  ;;  %1119 = vmatpush.msrb.mxu1 %v3567_v32  ;;  %v333_v31 = vadd.f32 %v6426_v30, %v6425_v29  ;;  %v6427_v32 = vld [vmem:[#allocation52_spill] sm:$0xff] }
 0x1b7   :  { %1139 = vmatpush.msrb.mxu2 %v3579_v34  ;;  %1159 = vmatpush.msrb.mxu3 %v3574_v33  ;;  %v6428_v33 = vld [vmem:[#allocation39_spill] sm:$0xff] }
 0x1b8   :  { %1100 = vmatpush.msrb.mxu0 %v3585_v35  ;;  %1120 = vmatpush.msrb.mxu1 %v3590_v36  ;;  %v368_v34 = vadd.f32 %v6428_v33, %v6427_v32 }
 0x1b9   :  { %1140 = vmatpush.msrb.mxu2 %v3603_v38  ;;  %1160 = vmatpush.msrb.mxu3 %v3598_v37 }
 0x1ba   :  { %1101 = vmatpush.msrb.mxu0 %v3615_v40  ;;  %1121 = vmatpush.msrb.mxu1 %v3620_v41 }
 0x1bb   :  { %1141 = vmatpush.msrb.mxu2 %v6389_v1  ;;  %1161 = vmatpush.msrb.mxu3 %v6390_v2  ;;  %v6429_v1 = vld [vmem:[#allocation55_spill] sm:$0xff]  ;;  %v6430_v2 = vld [vmem:[#allocation40_spill] sm:$0xff] }
 0x1bc   :  { %1102 = vmatpush.msrb.mxu0 %v6391_v3  ;;  %1122 = vmatpush.msrb.mxu1 %v6392_v4  ;;  %v438_v3 = vadd.f32 %v6430_v2, %v6429_v1 }
 0x1bd   :  { %1142 = vmatpush.msrb.mxu2 %v6393_v5  ;;  %1162 = vmatpush.msrb.mxu3 %v6394_v6 }
 0x1be   :  { %1103 = vmatpush.msrb.mxu0 %v6395_v7  ;;  %1123 = vmatpush.msrb.mxu1 %v6396_v8 }
 0x1bf   :  { %1143 = vmatpush.msrb.mxu2 %v6397_v9  ;;  %1163 = vmatpush.msrb.mxu3 %v6398_v10 }
 0x1c0   :  { %1104 = vmatpush.msrb.mxu0 %v6399_v11  ;;  %1124 = vmatpush.msrb.mxu1 %v6400_v12 }
 0x1c1   :  { %1144 = vmatpush.msrb.mxu2 %v6401_v14  ;;  %1164 = vmatpush.msrb.mxu3 %v6402_v15  ;;  %v6431_v14 = vld [vmem:[#allocation57_spill] sm:$0xff]  ;;  %v6432_v15 = vld [vmem:[#allocation43_spill] sm:$0xff] }
 0x1c2   :  { %1105 = vmatpush.msrb.mxu0 %v6403_v16  ;;  %1125 = vmatpush.msrb.mxu1 %v6404_v17  ;;  %v403_v16 = vadd.f32 %v6432_v15, %v6431_v14 }
 0x1c3   :  { %1145 = vmatpush.msrb.mxu2 %v6405_v18  ;;  %1165 = vmatpush.msrb.mxu3 %v6406_v19 }
 0x1c4   :  { %1106 = vmatpush.msrb.mxu0 %v6407_v20  ;;  %1126 = vmatpush.msrb.mxu1 %v6408_v21 }
 0x1c5   :  { %1146 = vmatpush.msrb.mxu2 %v6409_v22  ;;  %1166 = vmatpush.msrb.mxu3 %v6410_v23 }
 0x1c6   :  { %1107 = vmatpush.msrb.mxu0 %v6411_v24  ;;  %1127 = vmatpush.msrb.mxu1 %v6412_v25 }
 0x1c7   :  { %1147 = vmatpush.msrb.mxu2 %v6413_v27  ;;  %1167 = vmatpush.msrb.mxu3 %v6414_v28 }
 0x223   :  { %v801_v35 = vpop.f32.mrf.mxu0  ;;  %v821_v36 = vpop.f32.mrf.mxu1 }
 0x224   :  { %v864_v37 = vadd.f32 %v801_v35, %v333_v31  ;;  %v865_v38 = vadd.f32 %v821_v36, %v368_v34 }
 0x226   :  { %v2755_v40 = vmul.f32 -1.442695, %v864_v37  ;;  %v2756_v41 = vmul.f32 -1.442695, %v865_v38 }
 0x228   :  { %2821 = vpow2.f32 %v2755_v40 }
 0x229   :  { %2823 = vpow2.f32 %v2756_v41 }
 0x22a   :  { %v861_v4 = vpop.f32.mrf.mxu3  ;;  %v841_v11 = vpop.f32.mrf.mxu2 }
 0x22b   :  { %v867_v5 = vadd.f32 %v861_v4, %v438_v3  ;;  %v866_v19 = vadd.f32 %v841_v11, %v403_v16 }
 0x22d   :  { %v2757_v6 = vmul.f32 -1.442695, %v867_v5 }
 0x22e   :  { %v2822_v7 = vpop.eup %2821 }
 0x22f   :  { %v2824_v8 = vpop.eup %2823  ;;  %v877_v9 = vadd.f32 1.0, %v2822_v7  ;;  %2825 = vpow2.f32 %v2757_v6 }
 0x230   :  { %v878_v10 = vadd.f32 1.0, %v2824_v8 }
 0x231   :  { %2827 = vrcp.f32 %v877_v9  ;;  %v891_v25 = vand.u32 2147483648, %v877_v9  ;;  %v889_v30 = vand.u32 2147483647, %v877_v9  ;;  %vm885_vm10 = vweird.f32 %v877_v9 }
 0x232   :  { %2829 = vrcp.f32 %v878_v10  ;;  %v906_v27 = vand.u32 2147483648, %v878_v10  ;;  %v904_v33 = vand.u32 2147483647, %v878_v10  ;;  %vm900_vm11 = vweird.f32 %v878_v10 }
 0x233   :  { %v892_v36 = vor.u32 1.1754944e-38, %v891_v25  ;;  %vm890_vm14 = vcmp.eq.f32.partialorder %v889_v30, 8.507059e+37  ;;  %v3036_v25 = vld [vmem:[%s6143_s2 + $0x58] sm:$0xff]  ;;  %v3039_v30 = vld [vmem:[%s6143_s2 + $0x30] sm:$0xff] }
 0x234   :  { %v907_v40 = vor.u32 1.1754944e-38, %v906_v27  ;;  %vm905_vm15 = vcmp.eq.f32.partialorder %v904_v33, 8.507059e+37  ;;  %v3037_v27 = vld [vmem:[%s6143_s2 + $0x20] sm:$0xff] }
 0x235   :  { %v2826_v12 = vpop.eup %2825  ;;  %v3041_v33 = vld [vmem:[%s6143_s2] sm:$0xff] }
 0x236   :  { %v879_v17 = vadd.f32 1.0, %v2826_v12 }
 0x237   :  { %v2828_v18 = vpop.eup %2827 }
 0x238   :  { %v2830_v20 = vpop.eup %2829  ;;  %v881_v21 = vmul.f32 %v2828_v18, %v877_v9  ;;  %2831 = vrcp.f32 %v879_v17  ;;  %vm886_vm8 = vweird.f32 %v2828_v18  ;;  %v921_v12 = vand.u32 2147483648, %v879_v17 }
 0x239   :  { %v896_v22 = vmul.f32 %v2830_v20, %v878_v10  ;;  %2833 = vtanh.f32 %v866_v19  ;;  %vm901_vm9 = vweird.f32 %v2830_v20  ;;  %vm887_vm12 = vmor %vm885_vm10, %vm886_vm8  ;;  %vm915_vm1 = vweird.f32 %v879_v17 }
 0x23a   :  { %v882_v23 = vsub.f32 1.0, %v881_v21  ;;  %vm902_vm13 = vmor %vm900_vm11, %vm901_vm9  ;;  %v919_v15 = vand.u32 2147483647, %v879_v17 }
 0x23b   :  { %v897_v24 = vsub.f32 1.0, %v896_v22  ;;  %v3033_v22 = vld [vmem:[%s6143_s2 + $0x40] sm:$0xff] }
 0x23c   :  { %v883_v28 = vmul.f32 %v2828_v18, %v882_v23  ;;  %vm920_vm3 = vcmp.eq.f32.partialorder %v919_v15, 8.507059e+37  ;;  %v3034_v23 = vld [vmem:[%s6143_s2 + $0x48] sm:$0xff] }
 0x23d   :  { %v898_v31 = vmul.f32 %v2830_v20, %v897_v24  ;;  %v3035_v24 = vld [vmem:[%s6143_s2 + $0x50] sm:$0xff] }
 0x23e   :  { %v2832_v34 = vpop.eup %2831  ;;  %v884_v35 = vadd.f32 %v2828_v18, %v883_v28  ;;  %v3038_v28 = vld [vmem:[%s6143_s2 + $0x28] sm:$0xff] }
 0x23f   :  { %v899_v37 = vadd.f32 %v2830_v20, %v898_v31  ;;  %v911_v38 = vmul.f32 %v2832_v34, %v879_v17  ;;  %v2834_v2 = vpop.eup %2833  ;;  %vm916_vm0 = vweird.f32 %v2832_v34  ;;  %v3032_v17 = vld [vmem:[%s6143_s2 + $0x78] sm:$0xff] }
 0x240   :  { %v888_v41 = vsel %vm887_vm12, %v2828_v18, %v884_v35  ;;  %vm917_vm2 = vmor %vm915_vm1, %vm916_vm0  ;;  %v922_v18 = vor.u32 1.1754944e-38, %v921_v12  ;;  %v3040_v31 = vld [vmem:[%s6143_s2 + $0x38] sm:$0xff]  ;;  %v3043_v35 = vld [vmem:[%s6143_s2 + $0x10] sm:$0xff] }
 0x241   :  { %v893_v3 = vsel %vm890_vm14, %v892_v36, %v888_v41  ;;  %v903_v4 = vsel %vm902_vm13, %v2830_v20, %v899_v37  ;;  %v912_v5 = vsub.f32 1.0, %v911_v38  ;;  %v3044_v36 = vld [vmem:[%s6143_s2 + $0x18] sm:$0xff]  ;;  %v6435_v37 = vld [vmem:[#allocation41_spill] sm:$0xff] }
 0x242   :  { %v908_v6 = vsel %vm905_vm15, %v907_v40, %v903_v4  ;;  %v927_v7 = vmul.f32 %v2834_v2, %v893_v3  ;;  %v336_v38 = vadd.f32 %v6435_v37, %v6425_v29  ;;  %v6436_v40 = vld [vmem:[#allocation42_spill] sm:$0xff] }
 0x243   :  { %v926_v8 = vmul.f32 %v908_v6, %v4057_v63  ;;  %v913_v11 = vmul.f32 %v2832_v34, %v912_v5  ;;  %v6434_v63 = vld [vmem:[#allocation8_spill] sm:$0xff]  ;;  %v371_v41 = vadd.f32 %v6436_v40, %v6427_v32 }
 0x245   :  { %v4269_v9 = vadd.f32 %v927_v7, %v926_v8  ;;  %v914_v10 = vadd.f32 %v2832_v34, %v913_v11  ;;  %v6437_v8 = vld [vmem:[#allocation44_spill] sm:$0xff] }
 0x246   :  { %v441_v11 = vadd.f32 %v6437_v8, %v6429_v1  ;;  %v217_v8 = vld [vmem:[%s6145_s4 + $0x1a0] sm:$0xff] }
 0x247   :  { %2835 = vtanh.f32 %v4269_v9  ;;  %v918_v16 = vsel %vm917_vm2, %v2832_v34, %v914_v10  ;;  %v3042_v34 = vld [vmem:[%s6143_s2 + $0x8] sm:$0xff] }
 0x248   :  { %v923_v20 = vsel %vm920_vm3, %v922_v18, %v918_v16 }
 0x24d   :  { %v2836_v19 = vpop.eup %2835 }
 0x24e   :  { %v4272_v21 = vmul.f32 %v2836_v19, %v923_v20 }
 0x250   :  { %6433 = vst [vmem:[#allocation10_spill] sm:$0xff] %v4272_v21  ;;  %954 = vmatmul.f32.vlgmr.msra.gmra.mxu0 %v4272_v21  ;;  %974 = vmatmul.f32.vlgmr.msra.gmra.mxu1 %v4272_v21 }
 0x251   :  { %994 = vmatmul.f32.vlgmr.msra.gmra.mxu2 %v4272_v21  ;;  %1014 = vmatmul.f32.vlgmr.msra.gmra.mxu3 %v4272_v21 }
 0x252   :  { %1246 = vmatpush.msra.mxu0 %v4069_v62  ;;  %1266 = vmatpush.msra.mxu1 %v4075_v55  ;;  %v3007_v62 = vld [vmem:[%s6143_s2 + $0x130] sm:$0xff]  ;;  %v3008_v55 = vld [vmem:[%s6143_s2 + $0x138] sm:$0xff] }
 0x253   :  { %1286 = vmatpush.msra.mxu2 %v4081_v42  ;;  %1306 = vmatpush.msra.mxu3 %v4087_v45  ;;  %v3009_v42 = vld [vmem:[%s6143_s2 + $0x100] sm:$0xff]  ;;  %v3011_v45 = vld [vmem:[%s6143_s2 + $0x110] sm:$0xff] }
 0x254   :  { %1247 = vmatpush.msra.mxu0 %v4093_v52  ;;  %1267 = vmatpush.msra.mxu1 %v4099_v43  ;;  %v3012_v52 = vld [vmem:[%s6143_s2 + $0x118] sm:$0xff]  ;;  %v3013_v43 = vld [vmem:[%s6143_s2 + $0xe0] sm:$0xff] }
 0x255   :  { %1287 = vmatpush.msra.mxu2 %v4105_v61  ;;  %1307 = vmatpush.msra.mxu3 %v4111_v44  ;;  %v3014_v61 = vld [vmem:[%s6143_s2 + $0xe8] sm:$0xff]  ;;  %v3015_v44 = vld [vmem:[%s6143_s2 + $0xf0] sm:$0xff] }
 0x256   :  { %1248 = vmatpush.msra.mxu0 %v4117_v26  ;;  %1268 = vmatpush.msra.mxu1 %v4123_v51  ;;  %v3016_v26 = vld [vmem:[%s6143_s2 + $0xf8] sm:$0xff]  ;;  %v3017_v51 = vld [vmem:[%s6143_s2 + $0xc0] sm:$0xff] }
 0x257   :  { %1288 = vmatpush.msra.mxu2 %v4129_v47  ;;  %1308 = vmatpush.msra.mxu3 %v4135_v53  ;;  %v3018_v47 = vld [vmem:[%s6143_s2 + $0xc8] sm:$0xff]  ;;  %v3019_v53 = vld [vmem:[%s6143_s2 + $0xd0] sm:$0xff] }
 0x258   :  { %1249 = vmatpush.msra.mxu0 %v4141_v50  ;;  %1269 = vmatpush.msra.mxu1 %v4147_v39  ;;  %v3020_v50 = vld [vmem:[%s6143_s2 + $0xd8] sm:$0xff]  ;;  %v3021_v39 = vld [vmem:[%s6143_s2 + $0xa0] sm:$0xff] }
 0x259   :  { %1289 = vmatpush.msra.mxu2 %v4153_v56  ;;  %1309 = vmatpush.msra.mxu3 %v4159_v0  ;;  %v3022_v56 = vld [vmem:[%s6143_s2 + $0xa8] sm:$0xff]  ;;  %v3023_v0 = vld [vmem:[%s6143_s2 + $0xb0] sm:$0xff] }
 0x25a   :  { %1250 = vmatpush.msra.mxu0 %v4165_v58  ;;  %1270 = vmatpush.msra.mxu1 %v4171_v59  ;;  %v3024_v58 = vld [vmem:[%s6143_s2 + $0xb8] sm:$0xff]  ;;  %v3025_v59 = vld [vmem:[%s6143_s2 + $0x80] sm:$0xff] }
 0x25b   :  { %1290 = vmatpush.msra.mxu2 %v4177_v49  ;;  %1310 = vmatpush.msra.mxu3 %v4183_v60  ;;  %v3026_v49 = vld [vmem:[%s6143_s2 + $0x88] sm:$0xff]  ;;  %v3027_v60 = vld [vmem:[%s6143_s2 + $0x90] sm:$0xff] }
 0x25c   :  { %1251 = vmatpush.msra.mxu0 %v4189_v54  ;;  %1271 = vmatpush.msra.mxu1 %v6434_v63  ;;  %v3028_v54 = vld [vmem:[%s6143_s2 + $0x98] sm:$0xff] }
 0x25d   :  { %1291 = vmatpush.msra.mxu2 %v4201_v57  ;;  %1311 = vmatpush.msra.mxu3 %v4207_v48  ;;  %v3030_v57 = vld [vmem:[%s6143_s2 + $0x68] sm:$0xff]  ;;  %v3031_v48 = vld [vmem:[%s6143_s2 + $0x70] sm:$0xff] }
 0x25e   :  { %1252 = vmatpush.msra.mxu0 %v4213_v13  ;;  %1272 = vmatpush.msra.mxu1 %v4219_v46  ;;  %v3010_v13 = vld [vmem:[%s6143_s2 + $0x108] sm:$0xff]  ;;  %v3029_v46 = vld [vmem:[%s6143_s2 + $0x60] sm:$0xff] }
 0x25f   :  { %1292 = vmatpush.msra.mxu2 %v3007_v62  ;;  %1312 = vmatpush.msra.mxu3 %v3008_v55  ;;  %v6438_v55 = vld [vmem:[#allocation47_spill] sm:$0xff] }
 0x260   :  { %1253 = vmatpush.msra.mxu0 %v3009_v42  ;;  %1273 = vmatpush.msra.mxu1 %v3010_v13  ;;  %v406_v42 = vadd.f32 %v6438_v55, %v6431_v14  ;;  %v6440_v55 = vld [vmem:[#allocation45_spill] sm:$0xff] }
 0x261   :  { %1293 = vmatpush.msra.mxu2 %v3011_v45  ;;  %1313 = vmatpush.msra.mxu3 %v3012_v52 }
 0x262   :  { %1254 = vmatpush.msra.mxu0 %v3013_v43  ;;  %1274 = vmatpush.msra.mxu1 %v3014_v61 }
 0x263   :  { %1294 = vmatpush.msra.mxu2 %v3015_v44  ;;  %1314 = vmatpush.msra.mxu3 %v3016_v26 }
 0x264   :  { %1255 = vmatpush.msra.mxu0 %v3017_v51  ;;  %1275 = vmatpush.msra.mxu1 %v3018_v47 }
 0x265   :  { %1295 = vmatpush.msra.mxu2 %v3019_v53  ;;  %1315 = vmatpush.msra.mxu3 %v3020_v50 }
 0x266   :  { %1256 = vmatpush.msra.mxu0 %v3021_v39  ;;  %1276 = vmatpush.msra.mxu1 %v3022_v56 }
 0x267   :  { %1296 = vmatpush.msra.mxu2 %v3023_v0  ;;  %1316 = vmatpush.msra.mxu3 %v3024_v58 }
 0x268   :  { %1257 = vmatpush.msra.mxu0 %v3025_v59  ;;  %1277 = vmatpush.msra.mxu1 %v3026_v49 }
 0x269   :  { %1297 = vmatpush.msra.mxu2 %v3027_v60  ;;  %1317 = vmatpush.msra.mxu3 %v3028_v54 }
 0x26a   :  { %1258 = vmatpush.msra.mxu0 %v3029_v46  ;;  %1278 = vmatpush.msra.mxu1 %v3030_v57 }
 0x26b   :  { %1298 = vmatpush.msra.mxu2 %v3031_v48  ;;  %1318 = vmatpush.msra.mxu3 %v3032_v17 }
 0x26c   :  { %1259 = vmatpush.msra.mxu0 %v3033_v22  ;;  %1279 = vmatpush.msra.mxu1 %v3034_v23 }
 0x26d   :  { %1299 = vmatpush.msra.mxu2 %v3035_v24  ;;  %1319 = vmatpush.msra.mxu3 %v3036_v25 }
 0x26e   :  { %1260 = vmatpush.msra.mxu0 %v3037_v27  ;;  %1280 = vmatpush.msra.mxu1 %v3038_v28 }
 0x26f   :  { %1300 = vmatpush.msra.mxu2 %v3039_v30  ;;  %1320 = vmatpush.msra.mxu3 %v3040_v31 }
 0x270   :  { %1261 = vmatpush.msra.mxu0 %v3041_v33  ;;  %1281 = vmatpush.msra.mxu1 %v3042_v34 }
 0x271   :  { %1301 = vmatpush.msra.mxu2 %v3043_v35  ;;  %1321 = vmatpush.msra.mxu3 %v3044_v36 }
 0x2cd   :  { %v955_v2 = vpop.f32.mrf.mxu0  ;;  %v975_v3 = vpop.f32.mrf.mxu1 }
 0x2ce   :  { %v1018_v4 = vadd.f32 %v955_v2, %v336_v38  ;;  %v1019_v5 = vadd.f32 %v975_v3, %v371_v41  ;;  %v226_v41 = vld [vmem:[%s6145_s4 + $0x1e8] sm:$0xff]  ;;  %v227_v2 = vld [vmem:[%s6145_s4 + $0x1f0] sm:$0xff]  ;;  %v228_v3 = vld [vmem:[%s6145_s4 + $0x1f8] sm:$0xff] }
 0x2d0   :  { %v2758_v6 = vmul.f32 -1.442695, %v1018_v4  ;;  %v2759_v7 = vmul.f32 -1.442695, %v1019_v5  ;;  %v221_v4 = vld [vmem:[%s6145_s4 + $0x1c0] sm:$0xff]  ;;  %v222_v5 = vld [vmem:[%s6145_s4 + $0x1c8] sm:$0xff] }
 0x2d2   :  { %2837 = vpow2.f32 %v2758_v6  ;;  %v223_v6 = vld [vmem:[%s6145_s4 + $0x1d0] sm:$0xff] }
 0x2d3   :  { %2839 = vpow2.f32 %v2759_v7  ;;  %v224_v7 = vld [vmem:[%s6145_s4 + $0x1d8] sm:$0xff] }
 0x2d4   :  { %v1015_v10 = vpop.f32.mrf.mxu3  ;;  %v995_v63 = vpop.f32.mrf.mxu2 }
 0x2d5   :  { %v1021_v12 = vadd.f32 %v1015_v10, %v441_v11  ;;  %v1020_v52 = vadd.f32 %v995_v63, %v406_v42  ;;  %v218_v11 = vld [vmem:[%s6145_s4 + $0x1a8] sm:$0xff]  ;;  %v219_v10 = vld [vmem:[%s6145_s4 + $0x1b0] sm:$0xff]  ;;  %v339_v42 = vadd.f32 %v6440_v55, %v6425_v29 }
 0x2d6   :  { %v210_v63 = vld [vmem:[%s6145_s4 + $0x168] sm:$0xff] }
 0x2d7   :  { %v2760_v15 = vmul.f32 -1.442695, %v1021_v12  ;;  %v220_v12 = vld [vmem:[%s6145_s4 + $0x1b8] sm:$0xff] }
 0x2d8   :  { %v2838_v16 = vpop.eup %2837 }
 0x2d9   :  { %v2840_v18 = vpop.eup %2839  ;;  %v1031_v19 = vadd.f32 1.0, %v2838_v16  ;;  %2841 = vpow2.f32 %v2760_v15  ;;  %v213_v15 = vld [vmem:[%s6145_s4 + $0x180] sm:$0xff]  ;;  %v214_v16 = vld [vmem:[%s6145_s4 + $0x188] sm:$0xff] }
 0x2da   :  { %v1032_v20 = vadd.f32 1.0, %v2840_v18  ;;  %v215_v18 = vld [vmem:[%s6145_s4 + $0x190] sm:$0xff] }
 0x2db   :  { %2843 = vrcp.f32 %v1031_v19  ;;  %v1045_v47 = vand.u32 2147483648, %v1031_v19  ;;  %v1043_v39 = vand.u32 2147483647, %v1031_v19  ;;  %vm1039_vm6 = vweird.f32 %v1031_v19 }
 0x2dc   :  { %2845 = vrcp.f32 %v1032_v20  ;;  %v1060_v53 = vand.u32 2147483648, %v1032_v20  ;;  %v1058_v0 = vand.u32 2147483647, %v1032_v20  ;;  %vm1054_vm7 = vweird.f32 %v1032_v20 }
 0x2dd   :  { %v1046_v49 = vor.u32 1.1754944e-38, %v1045_v47  ;;  %vm1044_vm10 = vcmp.eq.f32.partialorder %v1043_v39, 8.507059e+37  ;;  %v201_v39 = vld [vmem:[%s6145_s4 + $0x120] sm:$0xff] }
 0x2de   :  { %v1061_v46 = vor.u32 1.1754944e-38, %v1060_v53  ;;  %vm1059_vm11 = vcmp.eq.f32.partialorder %v1058_v0, 8.507059e+37  ;;  %v203_v0 = vld [vmem:[%s6145_s4 + $0x130] sm:$0xff] }
 0x2df   :  { %v2842_v62 = vpop.eup %2841 }
 0x2e0   :  { %v1033_v13 = vadd.f32 1.0, %v2842_v62  ;;  %v211_v62 = vld [vmem:[%s6145_s4 + $0x170] sm:$0xff] }
 0x2e1   :  { %v2844_v45 = vpop.eup %2843 }
 0x2e2   :  { %v2846_v43 = vpop.eup %2845  ;;  %v1035_v61 = vmul.f32 %v2844_v45, %v1031_v19  ;;  %2847 = vrcp.f32 %v1033_v13  ;;  %vm1040_vm4 = vweird.f32 %v2844_v45  ;;  %v1075_v33 = vand.u32 2147483648, %v1033_v13  ;;  %v216_v19 = vld [vmem:[%s6145_s4 + $0x198] sm:$0xff] }
 0x2e3   :  { %v1050_v44 = vmul.f32 %v2846_v43, %v1032_v20  ;;  %2849 = vtanh.f32 %v1020_v52  ;;  %vm1055_vm5 = vweird.f32 %v2846_v43  ;;  %vm1041_vm8 = vmor %vm1039_vm6, %vm1040_vm4  ;;  %vm1069_vm13 = vweird.f32 %v1033_v13  ;;  %v209_v20 = vld [vmem:[%s6145_s4 + $0x160] sm:$0xff]  ;;  %v212_v52 = vld [vmem:[%s6145_s4 + $0x178] sm:$0xff] }
 0x2e4   :  { %v1036_v26 = vsub.f32 1.0, %v1035_v61  ;;  %vm1056_vm9 = vmor %vm1054_vm7, %vm1055_vm5  ;;  %v1073_v34 = vand.u32 2147483647, %v1033_v13  ;;  %v1076_v36 = vor.u32 1.1754944e-38, %v1075_v33  ;;  %v190_v33 = vld [vmem:[%s6145_s4 + $0xc8] sm:$0xff] }
 0x2e5   :  { %v1051_v51 = vsub.f32 1.0, %v1050_v44  ;;  %v205_v44 = vld [vmem:[%s6145_s4 + $0x140] sm:$0xff] }
 0x2e6   :  { %v1037_v50 = vmul.f32 %v2844_v45, %v1036_v26  ;;  %vm1074_vm15 = vcmp.eq.f32.partialorder %v1073_v34, 8.507059e+37  ;;  %v206_v26 = vld [vmem:[%s6145_s4 + $0x148] sm:$0xff]  ;;  %v191_v34 = vld [vmem:[%s6145_s4 + $0xd0] sm:$0xff] }
 0x2e7   :  { %v1052_v56 = vmul.f32 %v2846_v43, %v1051_v51  ;;  %v207_v51 = vld [vmem:[%s6145_s4 + $0x150] sm:$0xff] }
 0x2e8   :  { %v2848_v58 = vpop.eup %2847  ;;  %v1038_v59 = vadd.f32 %v2844_v45, %v1037_v50  ;;  %v208_v50 = vld [vmem:[%s6145_s4 + $0x158] sm:$0xff] }
 0x2e9   :  { %v1053_v60 = vadd.f32 %v2846_v43, %v1052_v56  ;;  %v1065_v54 = vmul.f32 %v2848_v58, %v1033_v13  ;;  %v2850_v48 = vpop.eup %2849  ;;  %vm1070_vm12 = vweird.f32 %v2848_v58  ;;  %v6441_v13 = vld [vmem:[#allocation46_spill] sm:$0xff]  ;;  %v202_v56 = vld [vmem:[%s6145_s4 + $0x128] sm:$0xff] }
 0x2ea   :  { %v1042_v57 = vsel %vm1041_vm8, %v2844_v45, %v1038_v59  ;;  %vm1071_vm14 = vmor %vm1069_vm13, %vm1070_vm12  ;;  %v374_v45 = vadd.f32 %v6441_v13, %v6427_v32  ;;  %v171_v13 = vld [vmem:[%s6145_s4 + $0x30] sm:$0xff] }
 0x2eb   :  { %v1047_v17 = vsel %vm1044_vm10, %v1046_v49, %v1042_v57  ;;  %v1057_v22 = vsel %vm1056_vm9, %v2846_v43, %v1053_v60  ;;  %v1066_v23 = vsub.f32 1.0, %v1065_v54  ;;  %v204_v49 = vld [vmem:[%s6145_s4 + $0x138] sm:$0xff]  ;;  %v197_v60 = vld [vmem:[%s6145_s4 + $0x100] sm:$0xff]  ;;  %v198_v54 = vld [vmem:[%s6145_s4 + $0x108] sm:$0xff] }
 0x2ec   :  { %v1062_v24 = vsel %vm1059_vm11, %v1061_v46, %v1057_v22  ;;  %v1081_v25 = vmul.f32 %v2850_v48, %v1047_v17  ;;  %v199_v46 = vld [vmem:[%s6145_s4 + $0x110] sm:$0xff]  ;;  %v200_v57 = vld [vmem:[%s6145_s4 + $0x118] sm:$0xff]  ;;  %v6442_v48 = vld [vmem:[#allocation48_spill] sm:$0xff] }
 0x2ed   :  { %v1080_v27 = vmul.f32 %v1062_v24, %v4269_v9  ;;  %v1067_v28 = vmul.f32 %v2848_v58, %v1066_v23  ;;  %v225_v9 = vld [vmem:[%s6145_s4 + $0x1e0] sm:$0xff]  ;;  %v444_v17 = vadd.f32 %v6442_v48, %v6429_v1  ;;  %v194_v23 = vld [vmem:[%s6145_s4 + $0xe8] sm:$0xff]  ;;  %v195_v24 = vld [vmem:[%s6145_s4 + $0xf0] sm:$0xff] }
 0x2ee   :  { %v193_v22 = vld [vmem:[%s6145_s4 + $0xe0] sm:$0xff] }
 0x2ef   :  { %v4427_v30 = vadd.f32 %v1081_v25, %v1080_v27  ;;  %v1068_v31 = vadd.f32 %v2848_v58, %v1067_v28  ;;  %v196_v27 = vld [vmem:[%s6145_s4 + $0xf8] sm:$0xff] }
 0x2f1   :  { %2851 = vtanh.f32 %v4427_v30  ;;  %v1072_v35 = vsel %vm1071_vm14, %v2848_v58, %v1068_v31  ;;  %v189_v31 = vld [vmem:[%s6145_s4 + $0xc0] sm:$0xff] }
 0x2f2   :  { %v1077_v38 = vsel %vm1074_vm15, %v1076_v36, %v1072_v35  ;;  %v192_v35 = vld [vmem:[%s6145_s4 + $0xd8] sm:$0xff] }
 0x2f7   :  { %v2852_v37 = vpop.eup %2851 }
 0x2f8   :  { %v4430_v40 = vmul.f32 %v2852_v37, %v1077_v38  ;;  %v185_v37 = vld [vmem:[%s6145_s4 + $0xa0] sm:$0xff]  ;;  %v186_v38 = vld [vmem:[%s6145_s4 + $0xa8] sm:$0xff] }
 0x2fa   :  { %6439 = vst [vmem:[#allocation11_spill] sm:$0xff] %v4430_v40  ;;  %1108 = vmatmul.f32.vlgmr.msrb.gmra.mxu0 %v4430_v40  ;;  %1128 = vmatmul.f32.vlgmr.msrb.gmra.mxu1 %v4430_v40 }
 0x2fb   :  { %1148 = vmatmul.f32.vlgmr.msrb.gmra.mxu2 %v4430_v40  ;;  %1168 = vmatmul.f32.vlgmr.msrb.gmra.mxu3 %v4430_v40 }
 0x2fc   :  { %1410 = vmatpush.msrb.mxu0 %v225_v9  ;;  %1445 = vmatpush.msrb.mxu1 %v226_v41  ;;  %v187_v9 = vld [vmem:[%s6145_s4 + $0xb0] sm:$0xff] }
 0x2fd   :  { %1480 = vmatpush.msrb.mxu2 %v227_v2  ;;  %1515 = vmatpush.msrb.mxu3 %v228_v3  ;;  %v188_v2 = vld [vmem:[%s6145_s4 + $0xb8] sm:$0xff]  ;;  %v181_v3 = vld [vmem:[%s6145_s4 + $0x80] sm:$0xff] }
 0x2fe   :  { %1411 = vmatpush.msrb.mxu0 %v221_v4  ;;  %1446 = vmatpush.msrb.mxu1 %v222_v5  ;;  %v182_v4 = vld [vmem:[%s6145_s4 + $0x88] sm:$0xff] }
 0x2ff   :  { %1481 = vmatpush.msrb.mxu2 %v223_v6  ;;  %1516 = vmatpush.msrb.mxu3 %v224_v7  ;;  %v183_v7 = vld [vmem:[%s6145_s4 + $0x90] sm:$0xff] }
 0x300   :  { %1412 = vmatpush.msrb.mxu0 %v217_v8  ;;  %1447 = vmatpush.msrb.mxu1 %v218_v11  ;;  %v184_v8 = vld [vmem:[%s6145_s4 + $0x98] sm:$0xff] }
 0x301   :  { %1482 = vmatpush.msrb.mxu2 %v219_v10  ;;  %1517 = vmatpush.msrb.mxu3 %v220_v12  ;;  %v177_v10 = vld [vmem:[%s6145_s4 + $0x60] sm:$0xff]  ;;  %v178_v12 = vld [vmem:[%s6145_s4 + $0x68] sm:$0xff] }
 0x302   :  { %1413 = vmatpush.msrb.mxu0 %v213_v15  ;;  %1448 = vmatpush.msrb.mxu1 %v214_v16  ;;  %v179_v15 = vld [vmem:[%s6145_s4 + $0x70] sm:$0xff]  ;;  %v180_v16 = vld [vmem:[%s6145_s4 + $0x78] sm:$0xff] }
 0x303   :  { %1483 = vmatpush.msrb.mxu2 %v215_v18  ;;  %1518 = vmatpush.msrb.mxu3 %v216_v19  ;;  %v173_v18 = vld [vmem:[%s6145_s4 + $0x40] sm:$0xff]  ;;  %v174_v19 = vld [vmem:[%s6145_s4 + $0x48] sm:$0xff] }
 0x304   :  { %1414 = vmatpush.msrb.mxu0 %v209_v20  ;;  %1449 = vmatpush.msrb.mxu1 %v210_v63  ;;  %v175_v20 = vld [vmem:[%s6145_s4 + $0x50] sm:$0xff]  ;;  %v176_v63 = vld [vmem:[%s6145_s4 + $0x58] sm:$0xff] }
 0x305   :  { %1484 = vmatpush.msrb.mxu2 %v211_v62  ;;  %1519 = vmatpush.msrb.mxu3 %v212_v52  ;;  %v169_v62 = vld [vmem:[%s6145_s4 + $0x20] sm:$0xff] }
 0x306   :  { %1415 = vmatpush.msrb.mxu0 %v205_v44  ;;  %1450 = vmatpush.msrb.mxu1 %v206_v26  ;;  %v165_v44 = vld [vmem:[%s6145_s4] sm:$0xff]  ;;  %v166_v26 = vld [vmem:[%s6145_s4 + $0x8] sm:$0xff] }
 0x307   :  { %1485 = vmatpush.msrb.mxu2 %v207_v51  ;;  %1520 = vmatpush.msrb.mxu3 %v208_v50 }
 0x308   :  { %1416 = vmatpush.msrb.mxu0 %v201_v39  ;;  %1451 = vmatpush.msrb.mxu1 %v202_v56 }
 0x309   :  { %1486 = vmatpush.msrb.mxu2 %v203_v0  ;;  %1521 = vmatpush.msrb.mxu3 %v204_v49 }
 0x30a   :  { %1417 = vmatpush.msrb.mxu0 %v197_v60  ;;  %1452 = vmatpush.msrb.mxu1 %v198_v54 }
 0x30b   :  { %1487 = vmatpush.msrb.mxu2 %v199_v46  ;;  %1522 = vmatpush.msrb.mxu3 %v200_v57 }
 0x30c   :  { %1418 = vmatpush.msrb.mxu0 %v193_v22  ;;  %1453 = vmatpush.msrb.mxu1 %v194_v23 }
 0x30d   :  { %1488 = vmatpush.msrb.mxu2 %v195_v24  ;;  %1523 = vmatpush.msrb.mxu3 %v196_v27 }
 0x30e   :  { %1419 = vmatpush.msrb.mxu0 %v189_v31  ;;  %1454 = vmatpush.msrb.mxu1 %v190_v33 }
 0x30f   :  { %1489 = vmatpush.msrb.mxu2 %v191_v34  ;;  %1524 = vmatpush.msrb.mxu3 %v192_v35 }
 0x310   :  { %1420 = vmatpush.msrb.mxu0 %v185_v37  ;;  %1455 = vmatpush.msrb.mxu1 %v186_v38 }
 0x311   :  { %1490 = vmatpush.msrb.mxu2 %v187_v9  ;;  %1525 = vmatpush.msrb.mxu3 %v188_v2 }
 0x312   :  { %1421 = vmatpush.msrb.mxu0 %v181_v3  ;;  %1456 = vmatpush.msrb.mxu1 %v182_v4 }
 0x313   :  { %1491 = vmatpush.msrb.mxu2 %v183_v7  ;;  %1526 = vmatpush.msrb.mxu3 %v184_v8 }
 0x314   :  { %1422 = vmatpush.msrb.mxu0 %v177_v10  ;;  %1457 = vmatpush.msrb.mxu1 %v178_v12  ;;  %v6446_v12 = vld [vmem:[#allocation9_spill] sm:$0xff] }
 0x315   :  { %1492 = vmatpush.msrb.mxu2 %v179_v15  ;;  %1527 = vmatpush.msrb.mxu3 %v180_v16  ;;  %v4683_v15 = vld [vmem:[%s6146_s5 + $0x1e0] sm:$0xff]  ;;  %v4688_v16 = vld [vmem:[%s6146_s5 + $0x1e8] sm:$0xff] }
 0x316   :  { %1423 = vmatpush.msrb.mxu0 %v173_v18  ;;  %1458 = vmatpush.msrb.mxu1 %v174_v19  ;;  %6447 = vst [vmem:[#allocation12_spill] sm:$0xff] %v4688_v16  ;;  %v4695_v18 = vld [vmem:[%s6146_s5 + $0x1f8] sm:$0xff]  ;;  %v4700_v19 = vld [vmem:[%s6146_s5 + $0x1f0] sm:$0xff] }
 0x317   :  { %1493 = vmatpush.msrb.mxu2 %v175_v20  ;;  %1528 = vmatpush.msrb.mxu3 %v176_v63  ;;  %6448 = vst [vmem:[#allocation14_spill] sm:$0xff] %v4695_v18  ;;  %v4707_v20 = vld [vmem:[%s6146_s5 + $0x1c0] sm:$0xff]  ;;  %v4712_v63 = vld [vmem:[%s6146_s5 + $0x1c8] sm:$0xff] }
 0x318   :  { %1424 = vmatpush.msrb.mxu0 %v169_v62  ;;  %v4717_v62 = vld [vmem:[%s6146_s5 + $0x1d8] sm:$0xff] }
 0x319   :  { %1494 = vmatpush.msrb.mxu2 %v171_v13  ;;  %6449 = vst [vmem:[#allocation15_spill] sm:$0xff] %v4717_v62  ;;  %v4734_v13 = vld [vmem:[%s6146_s5 + $0x1a8] sm:$0xff] }
 0x31a   :  { %1425 = vmatpush.msrb.mxu0 %v165_v44  ;;  %6451 = vst [vmem:[#allocation16_spill] sm:$0xff] %v4734_v13  ;;  %v4764_v44 = vld [vmem:[%s6146_s5 + $0x198] sm:$0xff] }
 0x377   :  { %v1109_v43 = vpop.f32.mrf.mxu0  ;;  %v1129_v61 = vpop.f32.mrf.mxu1 }
 0x378   :  { %v1172_v47 = vadd.f32 %v1109_v43, %v339_v42  ;;  %v1173_v53 = vadd.f32 %v1129_v61, %v374_v45  ;;  %v170_v42 = vld [vmem:[%s6145_s4 + $0x28] sm:$0xff]  ;;  %v172_v45 = vld [vmem:[%s6145_s4 + $0x38] sm:$0xff] }
 0x379   :  { %v6443_v43 = vld [vmem:[#allocation53_spill] sm:$0xff]  ;;  %1459 = vmatpush.msrb.mxu1 %v170_v42  ;;  %1529 = vmatpush.msrb.mxu3 %v172_v45  ;;  %v4729_v42 = vld [vmem:[%s6146_s5 + $0x1a0] sm:$0xff]  ;;  %v4740_v45 = vld [vmem:[%s6146_s5 + $0x1b8] sm:$0xff] }
 0x37a   :  { %v2761_v58 = vmul.f32 -1.442695, %v1172_v47  ;;  %v2762_v59 = vmul.f32 -1.442695, %v1173_v53  ;;  %v409_v61 = vadd.f32 %v6443_v43, %v6431_v14  ;;  %v167_v47 = vld [vmem:[%s6145_s4 + $0x10] sm:$0xff]  ;;  %v168_v53 = vld [vmem:[%s6145_s4 + $0x18] sm:$0xff] }
 0x37b   :  { %1460 = vmatpush.msrb.mxu1 %v166_v26  ;;  %1495 = vmatpush.msrb.mxu2 %v167_v47  ;;  %6450 = vst [vmem:[#allocation17_spill] sm:$0xff] %v4729_v42  ;;  %v4753_v43 = vld [vmem:[%s6146_s5 + $0x180] sm:$0xff]  ;;  %v4772_v26 = vld [vmem:[%s6146_s5 + $0x190] sm:$0xff]  ;;  %v4782_v47 = vld [vmem:[%s6146_s5 + $0x168] sm:$0xff]  ;;  %s3137_s4 = smov 256  }
 0x37c   :  { %2853 = vpow2.f32 %v2761_v58  ;;  %1530 = vmatpush.msrb.mxu3 %v168_v53  ;;  %v4788_v53 = vld [vmem:[%s6146_s5 + $0x178] sm:$0xff] }
 0x37d   :  { %2855 = vpow2.f32 %v2762_v59 }
 0x37e   :  { %v1169_v25 = vpop.f32.mrf.mxu3  ;;  %v1149_v55 = vpop.f32.mrf.mxu2 }
 0x37f   :  { %v1175_v28 = vadd.f32 %v1169_v25, %v444_v17  ;;  %v1174_v39 = vadd.f32 %v1149_v55, %v409_v61  ;;  %v4724_v55 = vld [vmem:[%s6146_s5 + $0x1d0] sm:$0xff]  ;;  %v4758_v61 = vld [vmem:[%s6146_s5 + $0x188] sm:$0xff] }
 0x381   :  { %v2763_v36 = vmul.f32 -1.442695, %v1175_v28 }
 0x382   :  { %v2854_v41 = vpop.eup %2853 }
 0x383   :  { %v2856_v5 = vpop.eup %2855  ;;  %v4580_v6 = vadd.f32 1.0, %v2854_v41  ;;  %2857 = vpow2.f32 %v2763_v36 }
 0x384   :  { %v4588_v11 = vadd.f32 1.0, %v2856_v5 }
 0x385   :  { %2859 = vrcp.f32 %v4580_v6  ;;  %v1199_v60 = vand.u32 2147483648, %v4580_v6  ;;  %v1197_v57 = vand.u32 2147483647, %v4580_v6  ;;  %vm1193_vm2 = vweird.f32 %v4580_v6 }
 0x386   :  { %2861 = vrcp.f32 %v4588_v11  ;;  %v1214_v54 = vand.u32 2147483648, %v4588_v11  ;;  %v1212_v17 = vand.u32 2147483647, %v4588_v11  ;;  %vm1208_vm3 = vweird.f32 %v4588_v11 }
 0x387   :  { %v1200_v24 = vor.u32 1.1754944e-38, %v1199_v60  ;;  %vm1198_vm6 = vcmp.eq.f32.partialorder %v1197_v57, 8.507059e+37  ;;  %v4805_v60 = vld [vmem:[%s6146_s5 + $0x140] sm:$0xff]  ;;  %v4824_v57 = vld [vmem:[%s6146_s5 + $0x150] sm:$0xff] }
 0x388   :  { %v1215_v28 = vor.u32 1.1754944e-38, %v1214_v54  ;;  %vm1213_vm7 = vcmp.eq.f32.partialorder %v1212_v17, 8.507059e+37  ;;  %v4834_v17 = vld [vmem:[%s6146_s5 + $0x128] sm:$0xff] }
 0x389   :  { %v2858_v52 = vpop.eup %2857 }
 0x38a   :  { %v1187_v51 = vadd.f32 1.0, %v2858_v52  ;;  %v4748_v52 = vld [vmem:[%s6146_s5 + $0x1b0] sm:$0xff] }
 0x38b   :  { %v2860_v50 = vpop.eup %2859 }
 0x38c   :  { %v2862_v56 = vpop.eup %2861  ;;  %v1189_v0 = vmul.f32 %v2860_v50, %v4580_v6  ;;  %2863 = vrcp.f32 %v1187_v51  ;;  %vm1194_vm0 = vweird.f32 %v2860_v50  ;;  %v1229_v4 = vand.u32 2147483648, %v1187_v51 }
 0x38d   :  { %v1204_v58 = vmul.f32 %v2862_v56, %v4588_v11  ;;  %2865 = vtanh.f32 %v1174_v39  ;;  %vm1209_vm1 = vweird.f32 %v2862_v56  ;;  %vm1195_vm4 = vmor %vm1193_vm2, %vm1194_vm0  ;;  %vm1223_vm9 = vweird.f32 %v1187_v51 }
 0x38e   :  { %v1190_v59 = vsub.f32 1.0, %v1189_v0  ;;  %vm1210_vm5 = vmor %vm1208_vm3, %vm1209_vm1  ;;  %v1227_v5 = vand.u32 2147483647, %v1187_v51  ;;  %v1230_v7 = vor.u32 1.1754944e-38, %v1229_v4 }
 0x38f   :  { %v1205_v49 = vsub.f32 1.0, %v1204_v58  ;;  %v4800_v58 = vld [vmem:[%s6146_s5 + $0x170] sm:$0xff] }
 0x390   :  { %v1191_v46 = vmul.f32 %v2860_v50, %v1190_v59  ;;  %vm1228_vm11 = vcmp.eq.f32.partialorder %v1227_v5, 8.507059e+37  ;;  %v4913_v5 = vld [vmem:[%s6146_s5 + $0xa0] sm:$0xff] }
 0x391   :  { %v1206_v48 = vmul.f32 %v2862_v56, %v1205_v49  ;;  %6456 = vst [vmem:[#allocation19_spill] sm:$0xff] %v4913_v5 }
 0x392   :  { %v2864_v22 = vpop.eup %2863  ;;  %v1192_v23 = vadd.f32 %v2860_v50, %v1191_v46 }
 0x393   :  { %v1207_v25 = vadd.f32 %v2862_v56, %v1206_v48  ;;  %v1219_v27 = vmul.f32 %v2864_v22, %v1187_v51  ;;  %v2866_v33 = vpop.eup %2865  ;;  %vm1224_vm8 = vweird.f32 %v2864_v22  ;;  %v4777_v51 = vld [vmem:[%s6146_s5 + $0x160] sm:$0xff] }
 0x394   :  { %v1196_v31 = vsel %vm1195_vm4, %v2860_v50, %v1192_v23  ;;  %vm1225_vm10 = vmor %vm1223_vm9, %vm1224_vm8  ;;  %v6452_v50 = vld [vmem:[#allocation49_spill] sm:$0xff]  ;;  %v4829_v48 = vld [vmem:[%s6146_s5 + $0x120] sm:$0xff] }
 0x395   :  { %v1201_v34 = vsel %vm1198_vm6, %v1200_v24, %v1196_v31  ;;  %v1211_v35 = vsel %vm1210_vm5, %v2862_v56, %v1207_v25  ;;  %v1220_v36 = vsub.f32 1.0, %v1219_v27  ;;  %v342_v39 = vadd.f32 %v6452_v50, %v6425_v29  ;;  %v6453_v56 = vld [vmem:[#allocation50_spill] sm:$0xff]  ;;  %v4810_v29 = vld [vmem:[%s6146_s5 + $0x148] sm:$0xff]  ;;  %v4853_v27 = vld [vmem:[%s6146_s5 + $0x100] sm:$0xff] }
 0x396   :  { %v1216_v37 = vsel %vm1213_vm7, %v1215_v28, %v1211_v35  ;;  %v1235_v38 = vmul.f32 %v2866_v33, %v1201_v34  ;;  %v377_v0 = vadd.f32 %v6453_v56, %v6427_v32  ;;  %v4816_v32 = vld [vmem:[%s6146_s5 + $0x158] sm:$0xff]  ;;  %v4848_v25 = vld [vmem:[%s6146_s5 + $0x130] sm:$0xff]  ;;  %v4858_v28 = vld [vmem:[%s6146_s5 + $0x108] sm:$0xff] }
 0x397   :  { %v1234_v9 = vmul.f32 %v1216_v37, %v4427_v30  ;;  %v1221_v41 = vmul.f32 %v2864_v22, %v1220_v36  ;;  %v6445_v30 = vld [vmem:[#allocation58_spill] sm:$0xff]  ;;  %v4864_v31 = vld [vmem:[%s6146_s5 + $0xe0] sm:$0xff]  ;;  %v4872_v33 = vld [vmem:[%s6146_s5 + $0xe8] sm:$0xff] }
 0x398   :  { %v4877_v34 = vld [vmem:[%s6146_s5 + $0x118] sm:$0xff]  ;;  %v6454_v35 = vld [vmem:[#allocation54_spill] sm:$0xff]  ;;  %v4885_v37 = vld [vmem:[%s6146_s5 + $0xc0] sm:$0xff] }
 0x399   :  { %v4651_v2 = vadd.f32 %v1235_v38, %v1234_v9  ;;  %v1222_v3 = vadd.f32 %v2864_v22, %v1221_v41  ;;  %v447_v36 = vadd.f32 %v6454_v35, %v6429_v1  ;;  %v4890_v38 = vld [vmem:[%s6146_s5 + $0xc8] sm:$0xff]  ;;  %v4895_v9 = vld [vmem:[%s6146_s5 + $0xf8] sm:$0xff]  ;;  %v4902_v1 = vld [vmem:[%s6146_s5 + $0x110] sm:$0xff] }
 0x39a   :  { %v4947_v56 = vld [vmem:[%s6146_s5 + $0x88] sm:$0xff] }
 0x39b   :  { %2867 = vtanh.f32 %v4651_v2  ;;  %v1226_v6 = vsel %vm1225_vm10, %v2864_v22, %v1222_v3  ;;  %v4840_v22 = vld [vmem:[%s6146_s5 + $0x138] sm:$0xff]  ;;  %6461 = vst [vmem:[#allocation24_spill] sm:$0xff] %v4947_v56 }
 0x39c   :  { %v1231_v11 = vsel %vm1228_vm11, %v1230_v7, %v1226_v6  ;;  %v4907_v3 = vld [vmem:[%s6146_s5 + $0xd8] sm:$0xff]  ;;  %v4918_v6 = vld [vmem:[%s6146_s5 + $0xa8] sm:$0xff]  ;;  %v4924_v7 = vld [vmem:[%s6146_s5 + $0xf0] sm:$0xff] }
 0x39d   :  { %6455 = vst [vmem:[#allocation18_spill] sm:$0xff] %v4907_v3 }
 0x39e   :  { %6457 = vst [vmem:[#allocation20_spill] sm:$0xff] %v4918_v6 }
 0x3a1   :  { %v2868_v8 = vpop.eup %2867 }
 0x3a2   :  { %v4654_v10 = vmul.f32 %v2868_v8, %v1231_v11  ;;  %v4931_v8 = vld [vmem:[%s6146_s5 + $0xd0] sm:$0xff]  ;;  %v4936_v11 = vld [vmem:[%s6146_s5 + $0xb8] sm:$0xff] }
 0x3a3   :  { %6458 = vst [vmem:[#allocation21_spill] sm:$0xff] %v4931_v8 }
 0x3a4   :  { %6444 = vst [vmem:[#allocation13_spill] sm:$0xff] %v4654_v10  ;;  %1262 = vmatmul.f32.vlgmr.msra.gmra.mxu0 %v4654_v10  ;;  %1282 = vmatmul.f32.vlgmr.msra.gmra.mxu1 %v4654_v10 }
 0x3a5   :  { %1302 = vmatmul.f32.vlgmr.msra.gmra.mxu2 %v4654_v10  ;;  %1322 = vmatmul.f32.vlgmr.msra.gmra.mxu3 %v4654_v10  ;;  %6459 = vst [vmem:[#allocation22_spill] sm:$0xff] %v4936_v11 }
 0x3a6   :  { %1578 = vmatpush.msra.mxu0 %v4683_v15  ;;  %1598 = vmatpush.msra.mxu1 %v4688_v16 }
 0x3a7   :  { %1638 = vmatpush.msra.mxu3 %v4695_v18  ;;  %1618 = vmatpush.msra.mxu2 %v4700_v19 }
 0x3a8   :  { %1579 = vmatpush.msra.mxu0 %v4707_v20  ;;  %1599 = vmatpush.msra.mxu1 %v4712_v63 }
 0x3a9   :  { %1639 = vmatpush.msra.mxu3 %v4717_v62  ;;  %1619 = vmatpush.msra.mxu2 %v4724_v55 }
 0x3aa   :  { %1580 = vmatpush.msra.mxu0 %v4729_v42  ;;  %1600 = vmatpush.msra.mxu1 %v4734_v13 }
 0x3ab   :  { %1640 = vmatpush.msra.mxu3 %v4740_v45  ;;  %1620 = vmatpush.msra.mxu2 %v4748_v52 }
 0x3ac   :  { %1426 = vmatmul.f32.vlgmr.msrb.gmra.mxu0 %v6445_v30  ;;  %1461 = vmatmul.f32.vlgmr.msrb.gmra.mxu1 %v6445_v30 }
 0x3ad   :  { %1496 = vmatmul.f32.vlgmr.msrb.gmra.mxu2 %v6445_v30  ;;  %1531 = vmatmul.f32.vlgmr.msrb.gmra.mxu3 %v6445_v30 }
 0x3ae   :  { %1581 = vmatpush.msra.mxu0 %v4753_v43  ;;  %1601 = vmatpush.msra.mxu1 %v4758_v61 }
 0x3af   :  { %1641 = vmatpush.msra.mxu3 %v4764_v44  ;;  %1621 = vmatpush.msra.mxu2 %v4772_v26 }
 0x3b0   :  { %1582 = vmatpush.msra.mxu0 %v4777_v51  ;;  %1602 = vmatpush.msra.mxu1 %v4782_v47 }
 0x3b1   :  { %1642 = vmatpush.msra.mxu3 %v4788_v53  ;;  %1622 = vmatpush.msra.mxu2 %v4800_v58 }
 0x3b2   :  { %1583 = vmatpush.msra.mxu0 %v4805_v60  ;;  %1603 = vmatpush.msra.mxu1 %v4810_v29 }
 0x3b3   :  { %1643 = vmatpush.msra.mxu3 %v4816_v32  ;;  %1623 = vmatpush.msra.mxu2 %v4824_v57 }
 0x3b4   :  { %1429 = vmatmul.f32.gmra.mxu0 %v6446_v12  ;;  %1464 = vmatmul.f32.gmra.mxu1 %v6446_v12 }
 0x3b5   :  { %1499 = vmatmul.f32.gmra.mxu2 %v6446_v12  ;;  %1534 = vmatmul.f32.gmra.mxu3 %v6446_v12  ;;  %v5033_v12 = vld [vmem:[%s6146_s5 + $0x58] sm:$0xff] }
 0x3b6   :  { %1584 = vmatpush.msra.mxu0 %v4829_v48  ;;  %1604 = vmatpush.msra.mxu1 %v4834_v17  ;;  %6474 = vst [vmem:[#allocation36_spill] sm:$0xff] %v5033_v12 }
 0x3b7   :  { %1644 = vmatpush.msra.mxu3 %v4840_v22  ;;  %1624 = vmatpush.msra.mxu2 %v4848_v25 }
 0x3b8   :  { %1585 = vmatpush.msra.mxu0 %v4853_v27  ;;  %1605 = vmatpush.msra.mxu1 %v4858_v28 }
 0x3b9   :  { %1645 = vmatpush.msra.mxu3 %v4877_v34  ;;  %1625 = vmatpush.msra.mxu2 %v4902_v1 }
 0x3ba   :  { %1586 = vmatpush.msra.mxu0 %v4864_v31  ;;  %1606 = vmatpush.msra.mxu1 %v4872_v33 }
 0x3bb   :  { %1646 = vmatpush.msra.mxu3 %v4895_v9  ;;  %1626 = vmatpush.msra.mxu2 %v4924_v7 }
 0x3bc   :  { %1432 = vmatmul.f32.gmra.mxu0 %v4272_v21  ;;  %1467 = vmatmul.f32.gmra.mxu1 %v4272_v21 }
 0x3bd   :  { %1502 = vmatmul.f32.gmra.mxu2 %v4272_v21  ;;  %1537 = vmatmul.f32.gmra.mxu3 %v4272_v21  ;;  %v5028_v21 = vld [vmem:[%s6146_s5 + $0x50] sm:$0xff] }
 0x3be   :  { %1587 = vmatpush.msra.mxu0 %v4885_v37  ;;  %1607 = vmatpush.msra.mxu1 %v4890_v38  ;;  %6473 = vst [vmem:[#allocation37_spill] sm:$0xff] %v5028_v21 }
 0x3bf   :  { %1647 = vmatpush.msra.mxu3 %v4907_v3  ;;  %1627 = vmatpush.msra.mxu2 %v4931_v8 }
 0x3c0   :  { %1588 = vmatpush.msra.mxu0 %v4913_v5  ;;  %1608 = vmatpush.msra.mxu1 %v4918_v6 }
 0x3c1   :  { %1648 = vmatpush.msra.mxu3 %v4936_v11 }
 0x3c2   :  { %1609 = vmatpush.msra.mxu1 %v4947_v56 }
 0x3c4   :  { %1435 = vmatmul.f32.gmra.mxu0 %v4430_v40  ;;  %1470 = vmatmul.f32.gmra.mxu1 %v4430_v40 }
 0x3c5   :  { %1505 = vmatmul.f32.gmra.mxu2 %v4430_v40  ;;  %1540 = vmatmul.f32.gmra.mxu3 %v4430_v40 }
 0x3cc   :  { %1438 = vmatmul.f32.gmra.mxu0 %v4654_v10  ;;  %1473 = vmatmul.f32.gmra.mxu1 %v4654_v10 }
 0x3cd   :  { %1508 = vmatmul.f32.gmra.mxu2 %v4654_v10  ;;  %1543 = vmatmul.f32.gmra.mxu3 %v4654_v10  ;;  %v5021_v10 = vld [vmem:[%s6146_s5 + $0x28] sm:$0xff] }
 0x3ce   :  { %6472 = vst [vmem:[#allocation35_spill] sm:$0xff] %v5021_v10 }
 0x421   :  { %v1263_v59 = vpop.f32.mrf.mxu0  ;;  %v1283_v49 = vpop.f32.mrf.mxu1 }
 0x422   :  { %v1326_v54 = vadd.f32 %v1263_v59, %v342_v39  ;;  %v1327_v46 = vadd.f32 %v1283_v49, %v377_v0  ;;  %v4942_v39 = vld [vmem:[%s6146_s5 + $0x80] sm:$0xff]  ;;  %v4955_v59 = vld [vmem:[%s6146_s5 + $0xb0] sm:$0xff]  ;;  %v4960_v49 = vld [vmem:[%s6146_s5 + $0x98] sm:$0xff] }
 0x423   :  { %6460 = vst [vmem:[#allocation23_spill] sm:$0xff] %v4942_v39  ;;  %1589 = vmatpush.msra.mxu0 %v4942_v39  ;;  %1628 = vmatpush.msra.mxu2 %v4955_v59 }
 0x424   :  { %v2764_v23 = vmul.f32 -1.442695, %v1326_v54  ;;  %v2765_v24 = vmul.f32 -1.442695, %v1327_v46  ;;  %6462 = vst [vmem:[#allocation25_spill] sm:$0xff] %v4955_v59  ;;  %1649 = vmatpush.msra.mxu3 %v4960_v49 }
 0x425   :  { %6463 = vst [vmem:[#allocation26_spill] sm:$0xff] %v4960_v49 }
 0x426   :  { %2869 = vpow2.f32 %v2764_v23  ;;  %v4969_v23 = vld [vmem:[%s6146_s5 + $0x60] sm:$0xff] }
 0x427   :  { %2871 = vpow2.f32 %v2765_v24  ;;  %6464 = vst [vmem:[#allocation27_spill] sm:$0xff] %v4969_v23  ;;  %v4974_v24 = vld [vmem:[%s6146_s5 + $0x68] sm:$0xff]  ;;  %1590 = vmatpush.msra.mxu0 %v4969_v23  ;;  %v5052_v23 = vld [vmem:[%s6146_s5 + $0x38] sm:$0xff] }
 0x428   :  { %v1323_v41 = vpop.f32.mrf.mxu3  ;;  %6465 = vst [vmem:[#allocation28_spill] sm:$0xff] %v4974_v24  ;;  %1610 = vmatpush.msra.mxu1 %v4974_v24  ;;  %v1303_v40 = vpop.f32.mrf.mxu2 }
 0x429   :  { %v1329_v4 = vadd.f32 %v1323_v41, %v447_v36  ;;  %v4983_v36 = vld [vmem:[%s6146_s5 + $0x90] sm:$0xff]  ;;  %v4991_v41 = vld [vmem:[%s6146_s5 + $0x40] sm:$0xff]  ;;  %6478 = vst [vmem:[#allocation52_spill] sm:$0xff] %v5052_v23 }
 0x42a   :  { %6466 = vst [vmem:[#allocation29_spill] sm:$0xff] %v4983_v36  ;;  %1629 = vmatpush.msra.mxu2 %v4983_v36  ;;  %1591 = vmatpush.msra.mxu0 %v4991_v41 }
 0x42b   :  { %v2766_v50 = vmul.f32 -1.442695, %v1329_v4  ;;  %6467 = vst [vmem:[#allocation30_spill] sm:$0xff] %v4991_v41  ;;  %v4996_v4 = vld [vmem:[%s6146_s5 + $0x48] sm:$0xff] }
 0x42c   :  { %v2870_v0 = vpop.eup %2869  ;;  %6468 = vst [vmem:[#allocation31_spill] sm:$0xff] %v4996_v4  ;;  %1611 = vmatpush.msra.mxu1 %v4996_v4  ;;  %v5042_v4 = vld [vmem:[%s6146_s5] sm:$0xff]  ;;  %v5047_v41 = vld [vmem:[%s6146_s5 + $0x8] sm:$0xff] }
 0x42d   :  { %v2872_v54 = vpop.eup %2871  ;;  %v4962_v46 = vadd.f32 1.0, %v2870_v0  ;;  %2873 = vpow2.f32 %v2766_v50  ;;  %v5001_v50 = vld [vmem:[%s6146_s5 + $0x78] sm:$0xff]  ;;  %v5009_v0 = vld [vmem:[%s6146_s5 + $0x70] sm:$0xff]  ;;  %6476 = vst [vmem:[#allocation51_spill] sm:$0xff] %v5042_v4 }
 0x42e   :  { %v4976_v35 = vadd.f32 1.0, %v2872_v54  ;;  %6469 = vst [vmem:[#allocation32_spill] sm:$0xff] %v5001_v50  ;;  %1650 = vmatpush.msra.mxu3 %v5001_v50  ;;  %v5016_v54 = vld [vmem:[%s6146_s5 + $0x20] sm:$0xff]  ;;  %1630 = vmatpush.msra.mxu2 %v5009_v0 }
 0x42f   :  { %2875 = vrcp.f32 %v4962_v46  ;;  %6470 = vst [vmem:[#allocation33_spill] sm:$0xff] %v5009_v0  ;;  %v6475_v50 = vld [vmem:[#allocation56_spill] sm:$0xff]  ;;  %1592 = vmatpush.msra.mxu0 %v5016_v54  ;;  %1612 = vmatpush.msra.mxu1 %v5021_v10  ;;  %v5077_v10 = vld [vmem:[%s6146_s5 + $0x10] sm:$0xff]  ;;  %vm1347_vm14 = vweird.f32 %v4962_v46 }
 0x430   :  { %2877 = vrcp.f32 %v4976_v35  ;;  %6471 = vst [vmem:[#allocation34_spill] sm:$0xff] %v5016_v54  ;;  %v412_v24 = vadd.f32 %v6475_v50, %v6431_v14  ;;  %1651 = vmatpush.msra.mxu3 %v5033_v12  ;;  %v5061_v50 = vld [vmem:[%s6146_s5 + $0x30] sm:$0xff]  ;;  %v5066_v12 = vld [vmem:[%s6146_s5 + $0x18] sm:$0xff]  ;;  %1631 = vmatpush.msra.mxu2 %v5028_v21  ;;  %vm1362_vm15 = vweird.f32 %v4976_v35 }
 0x431   :  { %6477 = vst [vmem:[#allocation38_spill] sm:$0xff] %v5047_v41  ;;  %1593 = vmatpush.msra.mxu0 %v5042_v4  ;;  %1613 = vmatpush.msra.mxu1 %v5047_v41  ;;  %v1353_v4 = vand.u32 2147483648, %v4962_v46  ;;  %v1368_v41 = vand.u32 2147483648, %v4976_v35 }
 0x432   :  { %6479 = vst [vmem:[#allocation39_spill] sm:$0xff] %v5061_v50  ;;  %v1328_v49 = vadd.f32 %v1303_v40, %v412_v24  ;;  %1652 = vmatpush.msra.mxu3 %v5052_v23  ;;  %1632 = vmatpush.msra.mxu2 %v5061_v50  ;;  %v1351_v50 = vand.u32 2147483647, %v4962_v46 }
 0x433   :  { %v2874_v30 = vpop.eup %2873  ;;  %6480 = vst [vmem:[#allocation55_spill] sm:$0xff] %v5066_v12  ;;  %1730 = vmatpush.msrb.mxu0 %v4683_v15  ;;  %1750 = vmatpush.msrb.mxu1 %v4688_v16  ;;  %v1366_v16 = vand.u32 2147483647, %v4976_v35 }
 0x434   :  { %v5054_v14 = vadd.f32 1.0, %v2874_v30  ;;  %6481 = vst [vmem:[#allocation40_spill] sm:$0xff] %v5077_v10  ;;  %1653 = vmatpush.msra.mxu3 %v5066_v12  ;;  %1633 = vmatpush.msra.mxu2 %v5077_v10  ;;  %vm1352_vm2 = vcmp.eq.f32.partialorder %v1351_v50, 8.507059e+37 }
 0x435   :  { %v2876_v0 = vpop.eup %2875  ;;  %1731 = vmatpush.msrb.mxu0 %v4707_v20  ;;  %1751 = vmatpush.msrb.mxu1 %v4712_v63  ;;  %vm1367_vm3 = vcmp.eq.f32.partialorder %v1366_v16, 8.507059e+37 }
 0x436   :  { %v2878_v30 = vpop.eup %2877  ;;  %v1343_v54 = vmul.f32 %v2876_v0, %v4962_v46  ;;  %2879 = vrcp.f32 %v5054_v14  ;;  %1790 = vmatpush.msrb.mxu3 %v4695_v18  ;;  %vm1348_vm12 = vweird.f32 %v2876_v0  ;;  %1770 = vmatpush.msrb.mxu2 %v4700_v19  ;;  %vm1377_vm5 = vweird.f32 %v5054_v14 }
 0x437   :  { %v1358_v40 = vmul.f32 %v2878_v30, %v4976_v35  ;;  %2881 = vtanh.f32 %v1328_v49  ;;  %vm1363_vm13 = vweird.f32 %v2878_v30  ;;  %vm1349_vm0 = vmor %vm1347_vm14, %vm1348_vm12  ;;  %1732 = vmatpush.msrb.mxu0 %v4729_v42  ;;  %1752 = vmatpush.msrb.mxu1 %v4734_v13 }
 0x438   :  { %v1344_v24 = vsub.f32 1.0, %v1343_v54  ;;  %1771 = vmatpush.msrb.mxu2 %v4724_v55  ;;  %1791 = vmatpush.msrb.mxu3 %v4717_v62  ;;  %vm1364_vm1 = vmor %vm1362_vm15, %vm1363_vm13 }
 0x439   :  { %v1359_v23 = vsub.f32 1.0, %v1358_v40  ;;  %1733 = vmatpush.msrb.mxu0 %v4753_v43  ;;  %1753 = vmatpush.msrb.mxu1 %v4758_v61 }
 0x43a   :  { %v1345_v21 = vmul.f32 %v2876_v0, %v1344_v24  ;;  %1772 = vmatpush.msrb.mxu2 %v4748_v52  ;;  %1792 = vmatpush.msrb.mxu3 %v4740_v45 }
 0x43b   :  { %v1360_v54 = vmul.f32 %v2878_v30, %v1359_v23  ;;  %v1354_v23 = vor.u32 1.1754944e-38, %v1353_v4  ;;  %1734 = vmatpush.msrb.mxu0 %v4777_v51  ;;  %1754 = vmatpush.msrb.mxu1 %v4782_v47 }
 0x43c   :  { %v5093_v49 = vpop.eup %2879  ;;  %v1346_v40 = vadd.f32 %v2876_v0, %v1345_v21  ;;  %v1369_v21 = vor.u32 1.1754944e-38, %v1368_v41  ;;  %1773 = vmatpush.msrb.mxu2 %v4772_v26  ;;  %1793 = vmatpush.msrb.mxu3 %v4764_v44 }
 0x43d   :  { %v1361_v24 = vadd.f32 %v2878_v30, %v1360_v54  ;;  %v1373_v18 = vmul.f32 %v5093_v49, %v5054_v14  ;;  %v2882_v35 = vpop.eup %2881  ;;  %1735 = vmatpush.msrb.mxu0 %v4805_v60  ;;  %vm1378_vm4 = vweird.f32 %v5093_v49  ;;  %1755 = vmatpush.msrb.mxu1 %v4810_v29 }
 0x43e   :  { %v1350_v46 = vsel %vm1349_vm0, %v2876_v0, %v1346_v40  ;;  %1774 = vmatpush.msrb.mxu2 %v4800_v58  ;;  %1794 = vmatpush.msrb.mxu3 %v4788_v53  ;;  %vm1379_vm6 = vmor %vm1377_vm5, %vm1378_vm4  ;;  %v6484_v40 = vld [vmem:[#allocation27_spill] sm:$0xff] }
 0x43f   :  { %v1355_v62 = vsel %vm1352_vm2, %v1354_v23, %v1350_v46  ;;  %v1365_v4 = vsel %vm1364_vm1, %v2878_v30, %v1361_v24  ;;  %v1374_v54 = vsub.f32 1.0, %v1373_v18  ;;  %1736 = vmatpush.msrb.mxu0 %v4829_v48  ;;  %1756 = vmatpush.msrb.mxu1 %v4834_v17  ;;  %v6485_v23 = vld [vmem:[#allocation28_spill] sm:$0xff]  ;;  %v6486_v24 = vld [vmem:[#allocation33_spill] sm:$0xff]  ;;  %v6488_v46 = vld [vmem:[#allocation30_spill] sm:$0xff] }
 0x440   :  { %v1370_v42 = vsel %vm1367_vm3, %v1369_v21, %v1365_v4  ;;  %v1389_v13 = vmul.f32 %v2882_v35, %v1355_v62  ;;  %1775 = vmatpush.msrb.mxu2 %v4824_v57  ;;  %1795 = vmatpush.msrb.mxu3 %v4816_v32  ;;  %v1381_v62 = vand.u32 2147483647, %v5054_v14  ;;  %v6487_v21 = vld [vmem:[#allocation32_spill] sm:$0xff]  ;;  %v6489_v35 = vmov 0.0   ;;  %v6490_v4 = vld [vmem:[#allocation31_spill] sm:$0xff] }
 0x441   :  { %v1388_v41 = vmul.f32 %v1370_v42, %v4651_v2  ;;  %v1375_v0 = vmul.f32 %v5093_v49, %v1374_v54  ;;  %v1383_v2 = vand.u32 2147483648, %v5054_v14  ;;  %1737 = vmatpush.msrb.mxu0 %v4853_v27  ;;  %1757 = vmatpush.msrb.mxu1 %v4858_v28  ;;  %v6491_v54 = vld [vmem:[#allocation37_spill] sm:$0xff] }
 0x442   :  { %1776 = vmatpush.msrb.mxu2 %v4848_v25  ;;  %1796 = vmatpush.msrb.mxu3 %v4840_v22  ;;  %vm1382_vm7 = vcmp.eq.f32.partialorder %v1381_v62, 8.507059e+37  ;;  %v6497_v62 = vld [vmem:[#allocation51_spill] sm:$0xff] }
 0x443   :  { %v1390_v16 = vadd.f32 %v1389_v13, %v1388_v41  ;;  %v1376_v18 = vadd.f32 %v5093_v49, %v1375_v0  ;;  %v1384_v13 = vor.u32 1.1754944e-38, %v1383_v2  ;;  %1738 = vmatpush.msrb.mxu0 %v4864_v31  ;;  %1758 = vmatpush.msrb.mxu1 %v4872_v33  ;;  %v6492_v41 = vld [vmem:[#allocation36_spill] sm:$0xff]  ;;  %v6493_v0 = vld [vmem:[#allocation34_spill] sm:$0xff] }
 0x444   :  { %1777 = vmatpush.msrb.mxu2 %v4902_v1  ;;  %1797 = vmatpush.msrb.mxu3 %v4877_v34  ;;  %v6496_v2 = vld [vmem:[#allocation52_spill] sm:$0xff] }
 0x445   :  { %2883 = vtanh.f32 %v1390_v16  ;;  %v1380_v42 = vsel %vm1379_vm6, %v5093_v49, %v1376_v18  ;;  %1739 = vmatpush.msrb.mxu0 %v4885_v37  ;;  %1759 = vmatpush.msrb.mxu1 %v4890_v38  ;;  %v6483_v49 = vld [vmem:[#allocation26_spill] sm:$0xff]  ;;  %v6494_v16 = vld [vmem:[#allocation35_spill] sm:$0xff] }
 0x446   :  { %1778 = vmatpush.msrb.mxu2 %v4924_v7  ;;  %v1385_v50 = vsel %vm1382_vm7, %v1384_v13, %v1380_v42  ;;  %1798 = vmatpush.msrb.mxu3 %v4895_v9  ;;  %v6495_v18 = vld [vmem:[#allocation39_spill] sm:$0xff]  ;;  %v6498_v42 = vld [vmem:[#allocation38_spill] sm:$0xff]  ;;  %v6499_v13 = vld [vmem:[#allocation12_spill] sm:$0xff] }
 0x447   :  { %1740 = vmatpush.msrb.mxu0 %v4913_v5  ;;  %1760 = vmatpush.msrb.mxu1 %v4918_v6 }
 0x448   :  { %1779 = vmatpush.msrb.mxu2 %v4931_v8  ;;  %1799 = vmatpush.msrb.mxu3 %v4907_v3 }
 0x449   :  { %1741 = vmatpush.msrb.mxu0 %v4942_v39  ;;  %1761 = vmatpush.msrb.mxu1 %v4947_v56 }
 0x44a   :  { %1780 = vmatpush.msrb.mxu2 %v4955_v59  ;;  %1800 = vmatpush.msrb.mxu3 %v4936_v11 }
 0x44b   :  { %v2884_v14 = vpop.eup %2883  ;;  %1742 = vmatpush.msrb.mxu0 %v6484_v40  ;;  %1762 = vmatpush.msrb.mxu1 %v6485_v23 }
 0x44c   :  { %v5139_v30 = vmul.f32 %v2884_v14, %v1385_v50  ;;  %1781 = vmatpush.msrb.mxu2 %v4983_v36  ;;  %1801 = vmatpush.msrb.mxu3 %v6483_v49  ;;  %v6500_v14 = vld [vmem:[#allocation14_spill] sm:$0xff]  ;;  %v6501_v50 = vld [vmem:[#allocation15_spill] sm:$0xff] }
 0x44d   :  { %1743 = vmatpush.msrb.mxu0 %v6488_v46  ;;  %1763 = vmatpush.msrb.mxu1 %v6490_v4 }
 0x44e   :  { %6482 = vst [vmem:[#allocation57_spill] sm:$0xff] %v5139_v30  ;;  %1441 = vmatmul.f32.gmra.mxu0 %v5139_v30  ;;  %1476 = vmatmul.f32.gmra.mxu1 %v5139_v30 }
 0x44f   :  { %1511 = vmatmul.f32.gmra.mxu2 %v5139_v30  ;;  %1546 = vmatmul.f32.gmra.mxu3 %v5139_v30  ;;  %v6503_v30 = vld [vmem:[#allocation16_spill] sm:$0xff] }
 0x450   :  { %1782 = vmatpush.msrb.mxu2 %v6486_v24  ;;  %1802 = vmatpush.msrb.mxu3 %v6487_v21 }
 0x451   :  { %1744 = vmatpush.msrb.mxu0 %v6493_v0  ;;  %1764 = vmatpush.msrb.mxu1 %v6494_v16 }
 0x452   :  { %1783 = vmatpush.msrb.mxu2 %v6491_v54  ;;  %1803 = vmatpush.msrb.mxu3 %v6492_v41 }
 0x453   :  { %1745 = vmatpush.msrb.mxu0 %v6497_v62  ;;  %1765 = vmatpush.msrb.mxu1 %v6498_v42 }
 0x454   :  { %1784 = vmatpush.msrb.mxu2 %v6495_v18  ;;  %1804 = vmatpush.msrb.mxu3 %v6496_v2 }
 0x456   :  { %1594 = vmatmul.f32.vlgmr.msra.gmra.mxu0 %v6489_v35  ;;  %1614 = vmatmul.f32.vlgmr.msra.gmra.mxu1 %v6489_v35 }
 0x457   :  { %1634 = vmatmul.f32.vlgmr.msra.gmra.mxu2 %v6489_v35  ;;  %1654 = vmatmul.f32.vlgmr.msra.gmra.mxu3 %v6489_v35  ;;  %v6502_v35 = vld [vmem:[#allocation17_spill] sm:$0xff] }
 0x458   :  { %1785 = vmatpush.msrb.mxu2 %v5077_v10  ;;  %1805 = vmatpush.msrb.mxu3 %v5066_v12 }
 0x459   :  { %1883 = vmatpush.msra.mxu0 %v4683_v15  ;;  %1903 = vmatpush.msra.mxu1 %v6499_v13 }
 0x45a   :  { %1923 = vmatpush.msra.mxu2 %v4700_v19  ;;  %1943 = vmatpush.msra.mxu3 %v6500_v14 }
 0x45b   :  { %1884 = vmatpush.msra.mxu0 %v4707_v20  ;;  %1904 = vmatpush.msra.mxu1 %v4712_v63 }
 0x45c   :  { %1924 = vmatpush.msra.mxu2 %v4724_v55  ;;  %1944 = vmatpush.msra.mxu3 %v6501_v50 }
 0x45d   :  { %1885 = vmatpush.msra.mxu0 %v6502_v35  ;;  %1905 = vmatpush.msra.mxu1 %v6503_v30 }
 0x45e   :  { %1925 = vmatpush.msra.mxu2 %v4748_v52  ;;  %1945 = vmatpush.msra.mxu3 %v4740_v45 }
 0x45f   :  { %1886 = vmatpush.msra.mxu0 %v4753_v43  ;;  %1906 = vmatpush.msra.mxu1 %v4758_v61 }
 0x460   :  { %1926 = vmatpush.msra.mxu2 %v4772_v26  ;;  %1946 = vmatpush.msra.mxu3 %v4764_v44 }
 0x461   :  { %1887 = vmatpush.msra.mxu0 %v4777_v51  ;;  %1907 = vmatpush.msra.mxu1 %v4782_v47 }
 0x462   :  { %1927 = vmatpush.msra.mxu2 %v4800_v58  ;;  %1947 = vmatpush.msra.mxu3 %v4788_v53 }
 0x463   :  { %1888 = vmatpush.msra.mxu0 %v4805_v60  ;;  %1908 = vmatpush.msra.mxu1 %v4810_v29 }
 0x464   :  { %1928 = vmatpush.msra.mxu2 %v4824_v57  ;;  %1948 = vmatpush.msra.mxu3 %v4816_v32 }
 0x465   :  { %1889 = vmatpush.msra.mxu0 %v4829_v48  ;;  %1909 = vmatpush.msra.mxu1 %v4834_v17 }
 0x466   :  { %1929 = vmatpush.msra.mxu2 %v4848_v25  ;;  %1949 = vmatpush.msra.mxu3 %v4840_v22 }
 0x467   :  { %1890 = vmatpush.msra.mxu0 %v4853_v27  ;;  %1910 = vmatpush.msra.mxu1 %v4858_v28 }
 0x468   :  { %1930 = vmatpush.msra.mxu2 %v4902_v1  ;;  %1950 = vmatpush.msra.mxu3 %v4877_v34 }
 0x469   :  { %1891 = vmatpush.msra.mxu0 %v4864_v31  ;;  %1911 = vmatpush.msra.mxu1 %v4872_v33 }
 0x46a   :  { %1931 = vmatpush.msra.mxu2 %v4924_v7  ;;  %1951 = vmatpush.msra.mxu3 %v4895_v9 }
 0x46b   :  { %1892 = vmatpush.msra.mxu0 %v4885_v37  ;;  %1912 = vmatpush.msra.mxu1 %v4890_v38 }
 0x46c   :  { %1932 = vmatpush.msra.mxu2 %v4931_v8  ;;  %1952 = vmatpush.msra.mxu3 %v4907_v3 }
 0x46d   :  { %1893 = vmatpush.msra.mxu0 %v4913_v5  ;;  %1913 = vmatpush.msra.mxu1 %v4918_v6 }
 0x46e   :  { %1933 = vmatpush.msra.mxu2 %v4955_v59  ;;  %1953 = vmatpush.msra.mxu3 %v4936_v11 }
 0x46f   :  { %1894 = vmatpush.msra.mxu0 %v4942_v39  ;;  %1914 = vmatpush.msra.mxu1 %v4947_v56 }
 0x470   :  { %1934 = vmatpush.msra.mxu2 %v4983_v36  ;;  %1954 = vmatpush.msra.mxu3 %v6483_v49 }
 0x471   :  { %1895 = vmatpush.msra.mxu0 %v6484_v40  ;;  %1915 = vmatpush.msra.mxu1 %v6485_v23 }
 0x472   :  { %1935 = vmatpush.msra.mxu2 %v6486_v24  ;;  %1955 = vmatpush.msra.mxu3 %v6487_v21 }
 0x473   :  { %1896 = vmatpush.msra.mxu0 %v6488_v46  ;;  %1916 = vmatpush.msra.mxu1 %v6490_v4  ;;  %v1427_v4 = vpop.f32.mrf.mxu0  ;;  %v1532_v46 = vpop.f32.mrf.mxu3 }
 0x474   :  { %1936 = vmatpush.msra.mxu2 %v6491_v54  ;;  %1956 = vmatpush.msra.mxu3 %v6492_v41  ;;  %v1462_v54 = vpop.f32.mrf.mxu1 }
 0x475   :  { %1897 = vmatpush.msra.mxu0 %v6493_v0  ;;  %1917 = vmatpush.msra.mxu1 %v6494_v16  ;;  %v1497_v16 = vpop.f32.mrf.mxu2 }
 0x476   :  { %1937 = vmatpush.msra.mxu2 %v6495_v18  ;;  %1957 = vmatpush.msra.mxu3 %v6496_v2 }
 0x477   :  { %1898 = vmatpush.msra.mxu0 %v6497_v62  ;;  %1918 = vmatpush.msra.mxu1 %v6498_v42 }
 0x478   :  { %1938 = vmatpush.msra.mxu2 %v5077_v10  ;;  %1958 = vmatpush.msra.mxu3 %v5066_v12 }
 0x47b   :  { %v5240_v41 = vpop.f32.mrf.mxu0  ;;  %v5244_v21 = vpop.f32.mrf.mxu3 }
 0x47c   :  { %6504 = vst [vmem:[#allocation43_spill] sm:$0xff] %v5240_v41  ;;  %v5242_v0 = vpop.f32.mrf.mxu1 }
 0x47d   :  { %6505 = vst [vmem:[#allocation8_spill] sm:$0xff] %v5242_v0  ;;  %v5250_v62 = vpop.f32.mrf.mxu2 }
 0x47e   :  { %6506 = vst [vmem:[#allocation41_spill] sm:$0xff] %v5244_v21 }
 0x47f   :  { %6509 = vst [vmem:[#allocation47_spill] sm:$0xff] %v5250_v62 }
 0x483   :  { %v5246_v18 = vpop.f32.mrf.mxu0  ;;  %v5252_v42 = vpop.f32.mrf.mxu3 }
 0x484   :  { %6507 = vst [vmem:[#allocation42_spill] sm:$0xff] %v5246_v18  ;;  %v5248_v2 = vpop.f32.mrf.mxu1 }
 0x485   :  { %6508 = vst [vmem:[#allocation44_spill] sm:$0xff] %v5248_v2  ;;  %v5258_v24 = vpop.f32.mrf.mxu2 }
 0x486   :  { %6510 = vst [vmem:[#allocation45_spill] sm:$0xff] %v5252_v42  ;;  %v293_v42 = vld [vmem:[%s6147_s6] sm:$0xf] }
 0x487   :  { %6513 = vst [vmem:[#allocation53_spill] sm:$0xff] %v5258_v24  ;;  %v5279_v24 = vperm.slane %v293_v42, 1  ;;  %v5287_v36 = vperm.slane %v293_v42, 3 }
 0x489   :  { %6522 = vst [vmem:[#allocation16_spill] sm:$0xff] %v5279_v24  ;;  %v1533_v56 = vadd.f32 %v1532_v46, %v5287_v36 }
 0x48a   :  { %6525 = vst [vmem:[#allocation61_spill] sm:$0xff] %v5287_v36 }
 0x48b   :  { %v5254_v10 = vpop.f32.mrf.mxu0  ;;  %v5260_v41 = vpop.f32.mrf.mxu3 }
 0x48c   :  { %6511 = vst [vmem:[#allocation46_spill] sm:$0xff] %v5254_v10  ;;  %v5256_v12 = vpop.f32.mrf.mxu1 }
 0x48d   :  { %6512 = vst [vmem:[#allocation48_spill] sm:$0xff] %v5256_v12  ;;  %v5266_v21 = vpop.f32.mrf.mxu2  ;;  %v5277_v12 = vperm.slane %v293_v42, 0 }
 0x48e   :  { %6514 = vst [vmem:[#allocation49_spill] sm:$0xff] %v5260_v41 }
 0x48f   :  { %6517 = vst [vmem:[#allocation56_spill] sm:$0xff] %v5266_v21 }
 0x490   :  { %6521 = vst [vmem:[#allocation17_spill] sm:$0xff] %v5277_v12 }
 0x493   :  { %v5262_v0 = vpop.f32.mrf.mxu0  ;;  %v5268_v18 = vpop.f32.mrf.mxu3 }
 0x494   :  { %6515 = vst [vmem:[#allocation50_spill] sm:$0xff] %v5262_v0  ;;  %v5264_v23 = vpop.f32.mrf.mxu1  ;;  %v1428_v0 = vadd.f32 %v1427_v4, %v5277_v12 }
 0x495   :  { %6516 = vst [vmem:[#allocation54_spill] sm:$0xff] %v5264_v23  ;;  %v1463_v23 = vadd.f32 %v1462_v54, %v5279_v24  ;;  %v5283_v41 = vpop.f32.mrf.mxu2 }
 0x496   :  { %6518 = vst [vmem:[#allocation12_spill] sm:$0xff] %v5268_v18 }
 0x497   :  { %6523 = vst [vmem:[#allocation59_spill] sm:$0xff] %v5283_v41 }
 0x4cb   :  { %v5273_v2 = vpop.f32.mrf.mxu0  ;;  %v5275_v10 = vpop.f32.mrf.mxu1 }
 0x4cc   :  { %6519 = vst [vmem:[#allocation14_spill] sm:$0xff] %v5273_v2 }
 0x4cd   :  { %6520 = vst [vmem:[#allocation15_spill] sm:$0xff] %v5275_v10 }
 0x4d2   :  { %v5285_v21 = vpop.f32.mrf.mxu3  ;;  %v5290_v39 = vpop.f32.mrf.mxu2 }
 0x4d3   :  { %6524 = vst [vmem:[#allocation60_spill] sm:$0xff] %v5285_v21  ;;  %v1595_v18 = vpop.f32.mrf.mxu0  ;;  %v1615_v62 = vpop.f32.mrf.mxu1 }
 0x4d4   :  { %v1658_v40 = vadd.f32 %v1595_v18, %v1428_v0  ;;  %v1659_v49 = vadd.f32 %v1615_v62, %v1463_v23  ;;  %6526 = vst [vmem:[#allocation62_spill] sm:$0xff] %v5290_v39  ;;  %v5292_v0 = vperm.slane %v293_v42, 2 }
 0x4d6   :  { %v2767_v2 = vmul.f32 -1.442695, %v1658_v40  ;;  %v2768_v10 = vmul.f32 -1.442695, %v1659_v49  ;;  %6527 = vst [vmem:[#allocation63_spill] sm:$0xff] %v5292_v0  ;;  %v1498_v23 = vadd.f32 %v1497_v16, %v5292_v0 }
 0x4d8   :  { %2885 = vpow2.f32 %v2767_v2 }
 0x4d9   :  { %2887 = vpow2.f32 %v2768_v10 }
 0x4da   :  { %v1655_v4 = vpop.f32.mrf.mxu3  ;;  %v1635_v40 = vpop.f32.mrf.mxu2 }
 0x4db   :  { %v1661_v54 = vadd.f32 %v1655_v4, %v1533_v56  ;;  %v1660_v18 = vadd.f32 %v1635_v40, %v1498_v23 }
 0x4dd   :  { %v2769_v24 = vmul.f32 -1.442695, %v1661_v54 }
 0x4de   :  { %v2886_v41 = vpop.eup %2885 }
 0x4df   :  { %v2888_v12 = vpop.eup %2887  ;;  %v1671_v21 = vadd.f32 1.0, %v2886_v41  ;;  %2889 = vpow2.f32 %v2769_v24 }
 0x4e0   :  { %v1672_v11 = vadd.f32 1.0, %v2888_v12 }
 0x4e1   :  { %2891 = vrcp.f32 %v1671_v21  ;;  %v1685_v41 = vand.u32 2147483648, %v1671_v21  ;;  %v1683_v42 = vand.u32 2147483647, %v1671_v21  ;;  %vm1679_vm10 = vweird.f32 %v1671_v21 }
 0x4e2   :  { %2893 = vrcp.f32 %v1672_v11  ;;  %v1700_v12 = vand.u32 2147483648, %v1672_v11  ;;  %v1698_v36 = vand.u32 2147483647, %v1672_v11  ;;  %vm1694_vm11 = vweird.f32 %v1672_v11 }
 0x4e3   :  { %v1686_v40 = vor.u32 1.1754944e-38, %v1685_v41  ;;  %vm1684_vm13 = vcmp.eq.f32.partialorder %v1683_v42, 8.507059e+37 }
 0x4e4   :  { %v1701_v0 = vor.u32 1.1754944e-38, %v1700_v12  ;;  %vm1699_vm15 = vcmp.eq.f32.partialorder %v1698_v36, 8.507059e+37 }
 0x4e5   :  { %v2890_v49 = vpop.eup %2889 }
 0x4e6   :  { %v1673_v46 = vadd.f32 1.0, %v2890_v49 }
 0x4e7   :  { %v2892_v10 = vpop.eup %2891 }
 0x4e8   :  { %v2894_v2 = vpop.eup %2893  ;;  %v1675_v62 = vmul.f32 %v2892_v10, %v1671_v21  ;;  %2895 = vrcp.f32 %v1673_v46  ;;  %vm1680_vm8 = vweird.f32 %v2892_v10  ;;  %vm1709_vm1 = vweird.f32 %v1673_v46 }
 0x4e9   :  { %v1690_v56 = vmul.f32 %v2894_v2, %v1672_v11  ;;  %2897 = vtanh.f32 %v1660_v18  ;;  %vm1695_vm9 = vweird.f32 %v2894_v2  ;;  %vm1681_vm12 = vmor %vm1679_vm10, %vm1680_vm8  ;;  %v1713_v21 = vand.u32 2147483647, %v1673_v46 }
 0x4ea   :  { %v1676_v4 = vsub.f32 1.0, %v1675_v62  ;;  %vm1696_vm14 = vmor %vm1694_vm11, %vm1695_vm9 }
 0x4eb   :  { %v1691_v54 = vsub.f32 1.0, %v1690_v56  ;;  %vm1714_vm3 = vcmp.eq.f32.partialorder %v1713_v21, 8.507059e+37 }
 0x4ec   :  { %v1677_v24 = vmul.f32 %v2892_v10, %v1676_v4 }
 0x4ed   :  { %v1692_v39 = vmul.f32 %v2894_v2, %v1691_v54 }
 0x4ee   :  { %v2896_v59 = vpop.eup %2895  ;;  %v1678_v16 = vadd.f32 %v2892_v10, %v1677_v24 }
 0x4ef   :  { %v1693_v49 = vadd.f32 %v2894_v2, %v1692_v39  ;;  %v1705_v23 = vmul.f32 %v2896_v59, %v1673_v46  ;;  %v2898_v18 = vpop.eup %2897  ;;  %vm1710_vm0 = vweird.f32 %v2896_v59  ;;  %v1715_v39 = vand.u32 2147483648, %v1673_v46 }
 0x4f0   :  { %v1682_v62 = vsel %vm1681_vm12, %v2892_v10, %v1678_v16  ;;  %vm1711_vm2 = vmor %vm1709_vm1, %vm1710_vm0 }
 0x4f1   :  { %v1687_v56 = vsel %vm1684_vm13, %v1686_v40, %v1682_v62  ;;  %v1697_v4 = vsel %vm1696_vm14, %v2894_v2, %v1693_v49  ;;  %v1706_v6 = vsub.f32 1.0, %v1705_v23  ;;  %v1716_v41 = vor.u32 1.1754944e-38, %v1715_v39  ;;  %v6561_v62 = vld [vmem:[#allocation63_spill] sm:$0xff] }
 0x4f2   :  { %v1702_v54 = vsel %vm1699_vm15, %v1701_v0, %v1697_v4  ;;  %v1721_v5 = vmul.f32 %v2898_v18, %v1687_v56  ;;  %v6562_v18 = vld [vmem:[#allocation47_spill] sm:$0xff] }
 0x4f3   :  { %v1720_v3 = vmul.f32 0.0, %v1702_v54  ;;  %v1707_v8 = vmul.f32 %v2896_v59, %v1706_v6  ;;  %v1501_v56 = vadd.f32 %v6562_v18, %v6561_v62  ;;  %v5491_v18 = vld [vmem:[%s6146_s5 + $0x168] sm:$0xff] }
 0x4f5   :  { %v5295_v24 = vadd.f32 %v1721_v5, %v1720_v3  ;;  %v1708_v11 = vadd.f32 %v2896_v59, %v1707_v8 }
 0x4f7   :  { %2899 = vtanh.f32 %v5295_v24  ;;  %v1712_v10 = vsel %vm1711_vm2, %v2896_v59, %v1708_v11 }
 0x4f8   :  { %v1717_v36 = vsel %vm1714_vm3, %v1716_v41, %v1712_v10 }
 0x4fd   :  { %v2900_v2 = vpop.eup %2899 }
 0x4fe   :  { %v5298_v12 = vmul.f32 %v2900_v2, %v1717_v36 }
 0x500   :  { %6528 = vst [vmem:[#allocation64_spill] sm:$0xff] %v5298_v12  ;;  %1746 = vmatmul.f32.vlgmr.msrb.gmra.mxu0 %v5298_v12  ;;  %1766 = vmatmul.f32.vlgmr.msrb.gmra.mxu1 %v5298_v12 }
 0x501   :  { %1786 = vmatmul.f32.vlgmr.msrb.gmra.mxu2 %v5298_v12  ;;  %1806 = vmatmul.f32.vlgmr.msrb.gmra.mxu3 %v5298_v12  ;;  %v5725_v12 = vld [vmem:[%s6146_s5 + $0x20] sm:$0xff] }
 0x502   :  { %2036 = vmatpush.msrb.mxu0 %v4683_v15  ;;  %2056 = vmatpush.msrb.mxu1 %v6499_v13  ;;  %v6529_v15 = vld [vmem:[#allocation21_spill] sm:$0xff] }
 0x503   :  { %2076 = vmatpush.msrb.mxu2 %v4700_v19  ;;  %2096 = vmatpush.msrb.mxu3 %v6500_v14  ;;  %v6530_v19 = vld [vmem:[#allocation18_spill] sm:$0xff]  ;;  %v6560_v13 = vld [vmem:[#allocation41_spill] sm:$0xff] }
 0x504   :  { %2037 = vmatpush.msrb.mxu0 %v4707_v20  ;;  %2057 = vmatpush.msrb.mxu1 %v4712_v63  ;;  %v6531_v20 = vld [vmem:[#allocation19_spill] sm:$0xff]  ;;  %v6532_v63 = vld [vmem:[#allocation20_spill] sm:$0xff] }
 0x505   :  { %2077 = vmatpush.msrb.mxu2 %v4724_v55  ;;  %2097 = vmatpush.msrb.mxu3 %v6501_v50  ;;  %v6533_v55 = vld [vmem:[#allocation25_spill] sm:$0xff] }
 0x506   :  { %2038 = vmatpush.msrb.mxu0 %v6502_v35  ;;  %2058 = vmatpush.msrb.mxu1 %v6503_v30  ;;  %v6559_v30 = vld [vmem:[#allocation61_spill] sm:$0xff] }
 0x507   :  { %2078 = vmatpush.msrb.mxu2 %v4748_v52  ;;  %2098 = vmatpush.msrb.mxu3 %v4740_v45  ;;  %v6534_v45 = vld [vmem:[#allocation22_spill] sm:$0xff]  ;;  %v6535_v52 = vld [vmem:[#allocation23_spill] sm:$0xff]  ;;  %v1536_v14 = vadd.f32 %v6560_v13, %v6559_v30 }
 0x508   :  { %2039 = vmatpush.msrb.mxu0 %v4753_v43  ;;  %2059 = vmatpush.msrb.mxu1 %v4758_v61  ;;  %v6536_v43 = vld [vmem:[#allocation24_spill] sm:$0xff]  ;;  %v6537_v61 = vld [vmem:[#allocation29_spill] sm:$0xff]  ;;  %v5425_v13 = vld [vmem:[%s6146_s5 + $0x1d0] sm:$0xff] }
 0x509   :  { %2079 = vmatpush.msrb.mxu2 %v4772_v26  ;;  %2099 = vmatpush.msrb.mxu3 %v4764_v44  ;;  %v6538_v44 = vld [vmem:[#allocation26_spill] sm:$0xff]  ;;  %v6539_v26 = vld [vmem:[#allocation27_spill] sm:$0xff] }
 0x50a   :  { %2040 = vmatpush.msrb.mxu0 %v4777_v51  ;;  %2060 = vmatpush.msrb.mxu1 %v4782_v47  ;;  %v6540_v51 = vld [vmem:[#allocation28_spill] sm:$0xff]  ;;  %v6541_v47 = vld [vmem:[#allocation33_spill] sm:$0xff] }
 0x50b   :  { %2080 = vmatpush.msrb.mxu2 %v4800_v58  ;;  %2100 = vmatpush.msrb.mxu3 %v4788_v53  ;;  %v6542_v53 = vld [vmem:[#allocation32_spill] sm:$0xff]  ;;  %v6543_v58 = vld [vmem:[#allocation30_spill] sm:$0xff] }
 0x50c   :  { %2041 = vmatpush.msrb.mxu0 %v4805_v60  ;;  %2061 = vmatpush.msrb.mxu1 %v4810_v29  ;;  %v6544_v60 = vld [vmem:[#allocation31_spill] sm:$0xff]  ;;  %v6545_v29 = vld [vmem:[#allocation37_spill] sm:$0xff] }
 0x50d   :  { %2081 = vmatpush.msrb.mxu2 %v4824_v57  ;;  %2101 = vmatpush.msrb.mxu3 %v4816_v32  ;;  %v6546_v32 = vld [vmem:[#allocation36_spill] sm:$0xff]  ;;  %v6547_v57 = vld [vmem:[#allocation34_spill] sm:$0xff] }
 0x50e   :  { %2042 = vmatpush.msrb.mxu0 %v4829_v48  ;;  %2062 = vmatpush.msrb.mxu1 %v4834_v17  ;;  %v6548_v48 = vld [vmem:[#allocation35_spill] sm:$0xff] }
 0x50f   :  { %2082 = vmatpush.msrb.mxu2 %v4848_v25  ;;  %2102 = vmatpush.msrb.mxu3 %v4840_v22  ;;  %v6549_v17 = vld [vmem:[#allocation39_spill] sm:$0xff]  ;;  %v6550_v22 = vld [vmem:[#allocation52_spill] sm:$0xff]  ;;  %6582 = vst [vmem:[#allocation35_spill] sm:$0xff] %v5725_v12 }
 0x510   :  { %2043 = vmatpush.msrb.mxu0 %v4853_v27  ;;  %2063 = vmatpush.msrb.mxu1 %v4858_v28  ;;  %v6551_v25 = vld [vmem:[#allocation51_spill] sm:$0xff]  ;;  %v6552_v27 = vld [vmem:[#allocation38_spill] sm:$0xff]  ;;  %v6553_v28 = vld [vmem:[#allocation40_spill] sm:$0xff] }
 0x511   :  { %2083 = vmatpush.msrb.mxu2 %v4902_v1  ;;  %2103 = vmatpush.msrb.mxu3 %v4877_v34  ;;  %v6556_v34 = vld [vmem:[#allocation43_spill] sm:$0xff] }
 0x512   :  { %2044 = vmatpush.msrb.mxu0 %v4864_v31  ;;  %2064 = vmatpush.msrb.mxu1 %v4872_v33  ;;  %v6554_v31 = vld [vmem:[#allocation55_spill] sm:$0xff]  ;;  %v6555_v33 = vld [vmem:[#allocation17_spill] sm:$0xff] }
 0x513   :  { %2084 = vmatpush.msrb.mxu2 %v4924_v7  ;;  %2104 = vmatpush.msrb.mxu3 %v4895_v9  ;;  %v6558_v9 = vld [vmem:[#allocation8_spill] sm:$0xff] }
 0x514   :  { %2045 = vmatpush.msrb.mxu0 %v4885_v37  ;;  %2065 = vmatpush.msrb.mxu1 %v4890_v38  ;;  %v1431_v37 = vadd.f32 %v6556_v34, %v6555_v33  ;;  %v6557_v38 = vld [vmem:[#allocation16_spill] sm:$0xff] }
 0x515   :  { %2085 = vmatpush.msrb.mxu2 %v6529_v15  ;;  %2105 = vmatpush.msrb.mxu3 %v6530_v19  ;;  %v1466_v1 = vadd.f32 %v6558_v9, %v6557_v38 }
 0x516   :  { %2046 = vmatpush.msrb.mxu0 %v6531_v20  ;;  %2066 = vmatpush.msrb.mxu1 %v6532_v63 }
 0x517   :  { %2086 = vmatpush.msrb.mxu2 %v6533_v55  ;;  %2106 = vmatpush.msrb.mxu3 %v6534_v45 }
 0x518   :  { %2047 = vmatpush.msrb.mxu0 %v6535_v52  ;;  %2067 = vmatpush.msrb.mxu1 %v6536_v43 }
 0x519   :  { %2087 = vmatpush.msrb.mxu2 %v6537_v61  ;;  %2107 = vmatpush.msrb.mxu3 %v6538_v44 }
 0x51a   :  { %2048 = vmatpush.msrb.mxu0 %v6539_v26  ;;  %2068 = vmatpush.msrb.mxu1 %v6540_v51 }
 0x51b   :  { %2088 = vmatpush.msrb.mxu2 %v6541_v47  ;;  %2108 = vmatpush.msrb.mxu3 %v6542_v53 }
 0x51c   :  { %2049 = vmatpush.msrb.mxu0 %v6543_v58  ;;  %2069 = vmatpush.msrb.mxu1 %v6544_v60 }
 0x51d   :  { %2089 = vmatpush.msrb.mxu2 %v6545_v29  ;;  %2109 = vmatpush.msrb.mxu3 %v6546_v32 }
 0x51e   :  { %2050 = vmatpush.msrb.mxu0 %v6547_v57  ;;  %2070 = vmatpush.msrb.mxu1 %v6548_v48 }
 0x51f   :  { %2090 = vmatpush.msrb.mxu2 %v6549_v17  ;;  %2110 = vmatpush.msrb.mxu3 %v6550_v22 }
 0x520   :  { %2051 = vmatpush.msrb.mxu0 %v6551_v25  ;;  %2071 = vmatpush.msrb.mxu1 %v6552_v27 }
 0x521   :  { %2091 = vmatpush.msrb.mxu2 %v6553_v28  ;;  %2111 = vmatpush.msrb.mxu3 %v6554_v31 }
 0x57d   :  { %v1747_v3 = vpop.f32.mrf.mxu0  ;;  %v1767_v5 = vpop.f32.mrf.mxu1 }
 0x57e   :  { %v1810_v6 = vadd.f32 %v1747_v3, %v1431_v37  ;;  %v1811_v7 = vadd.f32 %v1767_v5, %v1466_v1  ;;  %v5395_v5 = vld [vmem:[%s6146_s5 + $0x1e8] sm:$0xff] }
 0x580   :  { %v2770_v8 = vmul.f32 -1.442695, %v1810_v6  ;;  %v2771_v59 = vmul.f32 -1.442695, %v1811_v7  ;;  %v5401_v6 = vld [vmem:[%s6146_s5 + $0x1f0] sm:$0xff]  ;;  %v5407_v7 = vld [vmem:[%s6146_s5 + $0x1f8] sm:$0xff] }
 0x582   :  { %2901 = vpow2.f32 %v2770_v8  ;;  %v5413_v8 = vld [vmem:[%s6146_s5 + $0x1c0] sm:$0xff] }
 0x583   :  { %2903 = vpow2.f32 %v2771_v59  ;;  %v5419_v59 = vld [vmem:[%s6146_s5 + $0x1c8] sm:$0xff] }
 0x584   :  { %v1807_v50 = vpop.f32.mrf.mxu3  ;;  %v1787_v49 = vpop.f32.mrf.mxu2 }
 0x585   :  { %v1813_v35 = vadd.f32 %v1807_v50, %v1536_v14  ;;  %v1812_v11 = vadd.f32 %v1787_v49, %v1501_v56  ;;  %v5431_v14 = vld [vmem:[%s6146_s5 + $0x1d8] sm:$0xff]  ;;  %v5437_v50 = vld [vmem:[%s6146_s5 + $0x1a0] sm:$0xff]  ;;  %v5497_v56 = vld [vmem:[%s6146_s5 + $0x170] sm:$0xff] }
 0x586   :  { %v5479_v49 = vld [vmem:[%s6146_s5 + $0x198] sm:$0xff] }
 0x587   :  { %v2772_v0 = vmul.f32 -1.442695, %v1813_v35  ;;  %v5443_v35 = vld [vmem:[%s6146_s5 + $0x1a8] sm:$0xff] }
 0x588   :  { %v2902_v46 = vpop.eup %2901 }
 0x589   :  { %v2904_v42 = vpop.eup %2903  ;;  %v1823_v16 = vadd.f32 1.0, %v2902_v46  ;;  %2905 = vpow2.f32 %v2772_v0  ;;  %v5449_v0 = vld [vmem:[%s6146_s5 + $0x1b0] sm:$0xff]  ;;  %v5455_v46 = vld [vmem:[%s6146_s5 + $0x1b8] sm:$0xff] }
 0x58a   :  { %v1824_v40 = vadd.f32 1.0, %v2904_v42  ;;  %v5461_v42 = vld [vmem:[%s6146_s5 + $0x180] sm:$0xff] }
 0x58b   :  { %2907 = vrcp.f32 %v1823_v16  ;;  %v1837_v36 = vand.u32 2147483648, %v1823_v16  ;;  %v1835_v20 = vand.u32 2147483647, %v1823_v16  ;;  %vm1831_vm6 = vweird.f32 %v1823_v16 }
 0x58c   :  { %2909 = vrcp.f32 %v1824_v40  ;;  %v1852_v15 = vand.u32 2147483648, %v1824_v40  ;;  %v1850_v55 = vand.u32 2147483647, %v1824_v40  ;;  %vm1846_vm7 = vweird.f32 %v1824_v40 }
 0x58d   :  { %v1838_v43 = vor.u32 1.1754944e-38, %v1837_v36  ;;  %vm1836_vm10 = vcmp.eq.f32.partialorder %v1835_v20, 8.507059e+37  ;;  %v5551_v36 = vld [vmem:[%s6146_s5 + $0x138] sm:$0xff]  ;;  %v5569_v20 = vld [vmem:[%s6146_s5 + $0x110] sm:$0xff] }
 0x58e   :  { %v1853_v26 = vor.u32 1.1754944e-38, %v1852_v15  ;;  %vm1851_vm11 = vcmp.eq.f32.partialorder %v1850_v55, 8.507059e+37  ;;  %v5557_v15 = vld [vmem:[%s6146_s5 + $0x100] sm:$0xff] }
 0x58f   :  { %v2906_v23 = vpop.eup %2905  ;;  %v5581_v55 = vld [vmem:[%s6146_s5 + $0xe0] sm:$0xff] }
 0x590   :  { %v1825_v4 = vadd.f32 1.0, %v2906_v23  ;;  %v5485_v23 = vld [vmem:[%s6146_s5 + $0x160] sm:$0xff] }
 0x591   :  { %v2908_v54 = vpop.eup %2907 }
 0x592   :  { %v2910_v39 = vpop.eup %2909  ;;  %v1827_v21 = vmul.f32 %v2908_v54, %v1823_v16  ;;  %2911 = vrcp.f32 %v1825_v4  ;;  %vm1832_vm4 = vweird.f32 %v2908_v54  ;;  %v1867_v27 = vand.u32 2147483648, %v1825_v4  ;;  %v5467_v16 = vld [vmem:[%s6146_s5 + $0x188] sm:$0xff] }
 0x593   :  { %v1842_v10 = vmul.f32 %v2910_v39, %v1824_v40  ;;  %2913 = vtanh.f32 %v1812_v11  ;;  %vm1847_vm5 = vweird.f32 %v2910_v39  ;;  %vm1833_vm8 = vmor %vm1831_vm6, %vm1832_vm4  ;;  %vm1861_vm13 = vweird.f32 %v1825_v4  ;;  %v5473_v40 = vld [vmem:[%s6146_s5 + $0x190] sm:$0xff]  ;;  %v5515_v11 = vld [vmem:[%s6146_s5 + $0x148] sm:$0xff] }
 0x594   :  { %v1828_v41 = vsub.f32 1.0, %v1827_v21  ;;  %vm1848_vm9 = vmor %vm1846_vm7, %vm1847_vm5  ;;  %v1865_v31 = vand.u32 2147483647, %v1825_v4  ;;  %v1868_v37 = vor.u32 1.1754944e-38, %v1867_v27  ;;  %v5527_v21 = vld [vmem:[%s6146_s5 + $0x158] sm:$0xff]  ;;  %v5683_v27 = vld [vmem:[%s6146_s5 + $0x68] sm:$0xff] }
 0x595   :  { %v1843_v2 = vsub.f32 1.0, %v1842_v10  ;;  %v5533_v10 = vld [vmem:[%s6146_s5 + $0x120] sm:$0xff]  ;;  %6575 = vst [vmem:[#allocation33_spill] sm:$0xff] %v5683_v27 }
 0x596   :  { %v1829_v19 = vmul.f32 %v2908_v54, %v1828_v41  ;;  %vm1866_vm15 = vcmp.eq.f32.partialorder %v1865_v31, 8.507059e+37  ;;  %v5539_v41 = vld [vmem:[%s6146_s5 + $0x128] sm:$0xff]  ;;  %v5689_v31 = vld [vmem:[%s6146_s5 + $0x70] sm:$0xff] }
 0x597   :  { %v1844_v63 = vmul.f32 %v2910_v39, %v1843_v2  ;;  %v5545_v2 = vld [vmem:[%s6146_s5 + $0x130] sm:$0xff]  ;;  %6576 = vst [vmem:[#allocation32_spill] sm:$0xff] %v5689_v31 }
 0x598   :  { %v2912_v45 = vpop.eup %2911  ;;  %v1830_v52 = vadd.f32 %v2908_v54, %v1829_v19  ;;  %v5563_v19 = vld [vmem:[%s6146_s5 + $0x108] sm:$0xff] }
 0x599   :  { %v1845_v61 = vadd.f32 %v2910_v39, %v1844_v63  ;;  %v1857_v44 = vmul.f32 %v2912_v45, %v1825_v4  ;;  %v2914_v47 = vpop.eup %2913  ;;  %vm1862_vm12 = vweird.f32 %v2912_v45  ;;  %v5503_v4 = vld [vmem:[%s6146_s5 + $0x178] sm:$0xff] }
 0x59a   :  { %v1834_v51 = vsel %vm1833_vm8, %v2908_v54, %v1830_v52  ;;  %vm1863_vm14 = vmor %vm1861_vm13, %vm1862_vm12  ;;  %v5509_v54 = vld [vmem:[%s6146_s5 + $0x140] sm:$0xff]  ;;  %v5575_v63 = vld [vmem:[%s6146_s5 + $0x118] sm:$0xff] }
 0x59b   :  { %v1839_v53 = vsel %vm1836_vm10, %v1838_v43, %v1834_v51  ;;  %v1849_v58 = vsel %vm1848_vm9, %v2910_v39, %v1845_v61  ;;  %v1858_v60 = vsub.f32 1.0, %v1857_v44  ;;  %v5521_v39 = vld [vmem:[%s6146_s5 + $0x150] sm:$0xff]  ;;  %v5599_v43 = vld [vmem:[%s6146_s5 + $0xf8] sm:$0xff]  ;;  %v5605_v61 = vld [vmem:[%s6146_s5 + $0xc0] sm:$0xff] }
 0x59c   :  { %v1854_v29 = vsel %vm1851_vm11, %v1853_v26, %v1849_v58  ;;  %v1873_v32 = vmul.f32 %v2914_v47, %v1839_v53  ;;  %v5593_v52 = vld [vmem:[%s6146_s5 + $0xf0] sm:$0xff]  ;;  %v5611_v44 = vld [vmem:[%s6146_s5 + $0xc8] sm:$0xff]  ;;  %v5623_v51 = vld [vmem:[%s6146_s5 + $0xd8] sm:$0xff] }
 0x59d   :  { %v1872_v57 = vmul.f32 %v1854_v29, %v5295_v24  ;;  %v1859_v48 = vmul.f32 %v2912_v45, %v1858_v60  ;;  %v5389_v24 = vld [vmem:[%s6146_s5 + $0x1e0] sm:$0xff]  ;;  %v5617_v26 = vld [vmem:[%s6146_s5 + $0xd0] sm:$0xff]  ;;  %6565 = vst [vmem:[#allocation19_spill] sm:$0xff] %v5623_v51  ;;  %v5635_v53 = vld [vmem:[%s6146_s5 + $0xa8] sm:$0xff] }
 0x59e   :  { %6564 = vst [vmem:[#allocation18_spill] sm:$0xff] %v5617_v26  ;;  %v5629_v47 = vld [vmem:[%s6146_s5 + $0xa0] sm:$0xff]  ;;  %v5641_v58 = vld [vmem:[%s6146_s5 + $0xb0] sm:$0xff]  ;;  %v5647_v60 = vld [vmem:[%s6146_s5 + $0xb8] sm:$0xff] }
 0x59f   :  { %v5377_v22 = vadd.f32 %v1873_v32, %v1872_v57  ;;  %v1860_v25 = vadd.f32 %v2912_v45, %v1859_v48  ;;  %6566 = vst [vmem:[#allocation20_spill] sm:$0xff] %v5629_v47  ;;  %v5653_v29 = vld [vmem:[%s6146_s5 + $0x80] sm:$0xff]  ;;  %v5659_v32 = vld [vmem:[%s6146_s5 + $0x88] sm:$0xff]  ;;  %v5665_v57 = vld [vmem:[%s6146_s5 + $0x90] sm:$0xff] }
 0x5a0   :  { %6567 = vst [vmem:[#allocation25_spill] sm:$0xff] %v5635_v53  ;;  %v5671_v48 = vld [vmem:[%s6146_s5 + $0x98] sm:$0xff] }
 0x5a1   :  { %2915 = vtanh.f32 %v5377_v22  ;;  %v1864_v34 = vsel %vm1863_vm14, %v2912_v45, %v1860_v25  ;;  %v5587_v45 = vld [vmem:[%s6146_s5 + $0xe8] sm:$0xff]  ;;  %6568 = vst [vmem:[#allocation22_spill] sm:$0xff] %v5641_v58  ;;  %v5677_v25 = vld [vmem:[%s6146_s5 + $0x60] sm:$0xff] }
 0x5a2   :  { %v1869_v1 = vsel %vm1866_vm15, %v1868_v37, %v1864_v34  ;;  %6569 = vst [vmem:[#allocation23_spill] sm:$0xff] %v5647_v60  ;;  %v5695_v34 = vld [vmem:[%s6146_s5 + $0x78] sm:$0xff]  ;;  %v5701_v37 = vld [vmem:[%s6146_s5 + $0x40] sm:$0xff] }
 0x5a3   :  { %6570 = vst [vmem:[#allocation24_spill] sm:$0xff] %v5653_v29 }
 0x5a4   :  { %6571 = vst [vmem:[#allocation29_spill] sm:$0xff] %v5659_v32 }
 0x5a5   :  { %6572 = vst [vmem:[#allocation26_spill] sm:$0xff] %v5665_v57 }
 0x5a6   :  { %6573 = vst [vmem:[#allocation27_spill] sm:$0xff] %v5671_v48 }
 0x5a7   :  { %v2916_v9 = vpop.eup %2915  ;;  %6574 = vst [vmem:[#allocation28_spill] sm:$0xff] %v5677_v25 }
 0x5a8   :  { %v5380_v3 = vmul.f32 %v2916_v9, %v1869_v1  ;;  %6577 = vst [vmem:[#allocation30_spill] sm:$0xff] %v5695_v34  ;;  %v5707_v9 = vld [vmem:[%s6146_s5 + $0x48] sm:$0xff]  ;;  %v5713_v1 = vld [vmem:[%s6146_s5 + $0x50] sm:$0xff] }
 0x5a9   :  { %6578 = vst [vmem:[#allocation31_spill] sm:$0xff] %v5701_v37 }
 0x5aa   :  { %6563 = vst [vmem:[#allocation21_spill] sm:$0xff] %v5380_v3  ;;  %1899 = vmatmul.f32.vlgmr.msra.gmra.mxu0 %v5380_v3  ;;  %1919 = vmatmul.f32.vlgmr.msra.gmra.mxu1 %v5380_v3 }
 0x5ab   :  { %1939 = vmatmul.f32.vlgmr.msra.gmra.mxu2 %v5380_v3  ;;  %1959 = vmatmul.f32.vlgmr.msra.gmra.mxu3 %v5380_v3  ;;  %6579 = vst [vmem:[#allocation37_spill] sm:$0xff] %v5707_v9  ;;  %v5719_v3 = vld [vmem:[%s6146_s5 + $0x58] sm:$0xff] }
 0x5ac   :  { %2189 = vmatpush.msra.mxu0 %v5389_v24  ;;  %2209 = vmatpush.msra.mxu1 %v5395_v5  ;;  %6580 = vst [vmem:[#allocation36_spill] sm:$0xff] %v5713_v1 }
 0x5ad   :  { %2229 = vmatpush.msra.mxu2 %v5401_v6  ;;  %2249 = vmatpush.msra.mxu3 %v5407_v7  ;;  %6581 = vst [vmem:[#allocation34_spill] sm:$0xff] %v5719_v3 }
 0x5ae   :  { %2190 = vmatpush.msra.mxu0 %v5413_v8  ;;  %2210 = vmatpush.msra.mxu1 %v5419_v59 }
 0x5af   :  { %2230 = vmatpush.msra.mxu2 %v5425_v13  ;;  %2250 = vmatpush.msra.mxu3 %v5431_v14 }
 0x5b0   :  { %2191 = vmatpush.msra.mxu0 %v5437_v50  ;;  %2211 = vmatpush.msra.mxu1 %v5443_v35 }
 0x5b1   :  { %2231 = vmatpush.msra.mxu2 %v5449_v0  ;;  %2251 = vmatpush.msra.mxu3 %v5455_v46 }
 0x5b2   :  { %2192 = vmatpush.msra.mxu0 %v5461_v42  ;;  %2212 = vmatpush.msra.mxu1 %v5467_v16 }
 0x5b3   :  { %2232 = vmatpush.msra.mxu2 %v5473_v40  ;;  %2252 = vmatpush.msra.mxu3 %v5479_v49 }
 0x5b4   :  { %2193 = vmatpush.msra.mxu0 %v5485_v23  ;;  %2213 = vmatpush.msra.mxu1 %v5491_v18 }
 0x5b5   :  { %2233 = vmatpush.msra.mxu2 %v5497_v56  ;;  %2253 = vmatpush.msra.mxu3 %v5503_v4 }
 0x5b6   :  { %2194 = vmatpush.msra.mxu0 %v5509_v54  ;;  %2214 = vmatpush.msra.mxu1 %v5515_v11 }
 0x5b7   :  { %2234 = vmatpush.msra.mxu2 %v5521_v39  ;;  %2254 = vmatpush.msra.mxu3 %v5527_v21 }
 0x5b8   :  { %2195 = vmatpush.msra.mxu0 %v5533_v10  ;;  %2215 = vmatpush.msra.mxu1 %v5539_v41 }
 0x5b9   :  { %2235 = vmatpush.msra.mxu2 %v5545_v2  ;;  %2255 = vmatpush.msra.mxu3 %v5551_v36 }
 0x5ba   :  { %2196 = vmatpush.msra.mxu0 %v5557_v15  ;;  %2216 = vmatpush.msra.mxu1 %v5563_v19 }
 0x5bb   :  { %2236 = vmatpush.msra.mxu2 %v5569_v20  ;;  %2256 = vmatpush.msra.mxu3 %v5575_v63 }
 0x5bc   :  { %2197 = vmatpush.msra.mxu0 %v5581_v55  ;;  %2217 = vmatpush.msra.mxu1 %v5587_v45 }
 0x5bd   :  { %2237 = vmatpush.msra.mxu2 %v5593_v52  ;;  %2257 = vmatpush.msra.mxu3 %v5599_v43 }
 0x5be   :  { %2198 = vmatpush.msra.mxu0 %v5605_v61  ;;  %2218 = vmatpush.msra.mxu1 %v5611_v44 }
 0x5bf   :  { %2238 = vmatpush.msra.mxu2 %v5617_v26  ;;  %2258 = vmatpush.msra.mxu3 %v5623_v51 }
 0x5c0   :  { %2199 = vmatpush.msra.mxu0 %v5629_v47  ;;  %2219 = vmatpush.msra.mxu1 %v5635_v53 }
 0x5c1   :  { %2239 = vmatpush.msra.mxu2 %v5641_v58  ;;  %2259 = vmatpush.msra.mxu3 %v5647_v60 }
 0x5c2   :  { %2200 = vmatpush.msra.mxu0 %v5653_v29  ;;  %2220 = vmatpush.msra.mxu1 %v5659_v32 }
 0x5c3   :  { %2240 = vmatpush.msra.mxu2 %v5665_v57  ;;  %2260 = vmatpush.msra.mxu3 %v5671_v48 }
 0x5c4   :  { %2201 = vmatpush.msra.mxu0 %v5677_v25  ;;  %2221 = vmatpush.msra.mxu1 %v5683_v27 }
 0x5c5   :  { %2241 = vmatpush.msra.mxu2 %v5689_v31  ;;  %2261 = vmatpush.msra.mxu3 %v5695_v34 }
 0x5c6   :  { %2202 = vmatpush.msra.mxu0 %v5701_v37  ;;  %2222 = vmatpush.msra.mxu1 %v5707_v9  ;;  %v5731_v9 = vld [vmem:[%s6146_s5 + $0x28] sm:$0xff] }
 0x5c7   :  { %2242 = vmatpush.msra.mxu2 %v5713_v1  ;;  %2262 = vmatpush.msra.mxu3 %v5719_v3  ;;  %6583 = vst [vmem:[#allocation39_spill] sm:$0xff] %v5731_v9  ;;  %v5738_v3 = vld [vmem:[%s6146_s5 + $0x38] sm:$0xff] }
 0x5c8   :  { %2203 = vmatpush.msra.mxu0 %v5725_v12  ;;  %2223 = vmatpush.msra.mxu1 %v5731_v9  ;;  %6584 = vst [vmem:[#allocation52_spill] sm:$0xff] %v5738_v3  ;;  %v5744_v12 = vld [vmem:[%s6146_s5] sm:$0xff]  ;;  %v5750_v9 = vld [vmem:[%s6146_s5 + $0x8] sm:$0xff] }
 0x5c9   :  { %2243 = vmatpush.msra.mxu2 %v6549_v17  ;;  %2263 = vmatpush.msra.mxu3 %v5738_v3  ;;  %6585 = vst [vmem:[#allocation51_spill] sm:$0xff] %v5744_v12  ;;  %v5757_v17 = vld [vmem:[%s6146_s5 + $0x18] sm:$0xff]  ;;  %v6588_v3 = vld [vmem:[#allocation42_spill] sm:$0xff] }
 0x5ca   :  { %2204 = vmatpush.msra.mxu0 %v5744_v12  ;;  %6586 = vst [vmem:[#allocation38_spill] sm:$0xff] %v5750_v9  ;;  %2224 = vmatpush.msra.mxu1 %v5750_v9  ;;  %v1434_v1 = vadd.f32 %v6588_v3, %v6555_v33  ;;  %v6589_v12 = vld [vmem:[#allocation44_spill] sm:$0xff] }
 0x5cb   :  { %2244 = vmatpush.msra.mxu2 %v6553_v28  ;;  %6587 = vst [vmem:[#allocation40_spill] sm:$0xff] %v5757_v17  ;;  %2264 = vmatpush.msra.mxu3 %v5757_v17  ;;  %v1469_v37 = vadd.f32 %v6589_v12, %v6557_v38  ;;  %v6590_v28 = vld [vmem:[#allocation45_spill] sm:$0xff] }
 0x5cc   :  { %v1539_v57 = vadd.f32 %v6590_v28, %v6559_v30 }
 0x627   :  { %v1900_v34 = vpop.f32.mrf.mxu0  ;;  %v1920_v31 = vpop.f32.mrf.mxu1 }
 0x628   :  { %v1963_v27 = vadd.f32 %v1900_v34, %v1434_v1  ;;  %v1964_v25 = vadd.f32 %v1920_v31, %v1469_v37 }
 0x62a   :  { %v2773_v9 = vmul.f32 -1.442695, %v1963_v27  ;;  %v2774_v48 = vmul.f32 -1.442695, %v1964_v25  ;;  %v6591_v27 = vld [vmem:[#allocation53_spill] sm:$0xff] }
 0x62b   :  { %v1504_v25 = vadd.f32 %v6591_v27, %v6561_v62 }
 0x62c   :  { %2917 = vpow2.f32 %v2773_v9 }
 0x62d   :  { %2919 = vpow2.f32 %v2774_v48 }
 0x62e   :  { %v1960_v32 = vpop.f32.mrf.mxu3  ;;  %v1940_v12 = vpop.f32.mrf.mxu2 }
 0x62f   :  { %v1966_v29 = vadd.f32 %v1960_v32, %v1539_v57  ;;  %v1965_v9 = vadd.f32 %v1940_v12, %v1504_v25 }
 0x631   :  { %v2775_v17 = vmul.f32 -1.442695, %v1966_v29 }
 0x632   :  { %v2918_v60 = vpop.eup %2917 }
 0x633   :  { %v2920_v58 = vpop.eup %2919  ;;  %v1976_v3 = vadd.f32 1.0, %v2918_v60  ;;  %2921 = vpow2.f32 %v2775_v17 }
 0x634   :  { %v1977_v33 = vadd.f32 1.0, %v2920_v58 }
 0x635   :  { %2923 = vrcp.f32 %v1976_v3  ;;  %v1990_v28 = vand.u32 2147483648, %v1976_v3  ;;  %v1988_v17 = vand.u32 2147483647, %v1976_v3  ;;  %vm1984_vm2 = vweird.f32 %v1976_v3 }
 0x636   :  { %2925 = vrcp.f32 %v1977_v33  ;;  %v2005_v60 = vand.u32 2147483648, %v1977_v33  ;;  %v2003_v38 = vand.u32 2147483647, %v1977_v33  ;;  %vm1999_vm3 = vweird.f32 %v1977_v33 }
 0x637   :  { %v1991_v12 = vor.u32 1.1754944e-38, %v1990_v28  ;;  %vm1989_vm6 = vcmp.eq.f32.partialorder %v1988_v17, 8.507059e+37 }
 0x638   :  { %vm2004_vm7 = vcmp.eq.f32.partialorder %v2003_v38, 8.507059e+37 }
 0x639   :  { %v2922_v34 = vpop.eup %2921 }
 0x63a   :  { %v1978_v31 = vadd.f32 1.0, %v2922_v34 }
 0x63b   :  { %v2924_v37 = vpop.eup %2923 }
 0x63c   :  { %v2926_v1 = vpop.eup %2925  ;;  %v1980_v48 = vmul.f32 %v2924_v37, %v1976_v3  ;;  %2927 = vrcp.f32 %v1978_v31  ;;  %vm1985_vm0 = vweird.f32 %v2924_v37  ;;  %vm2014_vm9 = vweird.f32 %v1978_v31 }
 0x63d   :  { %v1995_v32 = vmul.f32 %v2926_v1, %v1977_v33  ;;  %2929 = vtanh.f32 %v1965_v9  ;;  %vm2000_vm1 = vweird.f32 %v2926_v1  ;;  %vm1986_vm4 = vmor %vm1984_vm2, %vm1985_vm0 }
 0x63e   :  { %v1981_v29 = vsub.f32 1.0, %v1980_v48  ;;  %vm2001_vm5 = vmor %vm1999_vm3, %vm2000_vm1  ;;  %v2006_v48 = vor.u32 1.1754944e-38, %v2005_v60 }
 0x63f   :  { %v1996_v57 = vsub.f32 1.0, %v1995_v32 }
 0x640   :  { %v1982_v58 = vmul.f32 %v2924_v37, %v1981_v29 }
 0x641   :  { %v1997_v30 = vmul.f32 %v2926_v1, %v1996_v57 }
 0x642   :  { %v2928_v53 = vpop.eup %2927  ;;  %v1983_v27 = vadd.f32 %v2924_v37, %v1982_v58 }
 0x643   :  { %v1998_v34 = vadd.f32 %v2926_v1, %v1997_v30  ;;  %v2010_v25 = vmul.f32 %v2928_v53, %v1978_v31  ;;  %v2930_v9 = vpop.eup %2929  ;;  %vm2015_vm8 = vweird.f32 %v2928_v53  ;;  %v2020_v30 = vand.u32 2147483648, %v1978_v31 }
 0x644   :  { %v1987_v32 = vsel %vm1986_vm4, %v2924_v37, %v1983_v27  ;;  %v2018_v37 = vand.u32 2147483647, %v1978_v31  ;;  %vm2016_vm10 = vmor %vm2014_vm9, %vm2015_vm8 }
 0x645   :  { %v1992_v62 = vsel %vm1989_vm6, %v1991_v12, %v1987_v32  ;;  %v2002_v29 = vsel %vm2001_vm5, %v2926_v1, %v1998_v34  ;;  %v2011_v47 = vsub.f32 1.0, %v2010_v25  ;;  %v2021_v60 = vor.u32 1.1754944e-38, %v2020_v30  ;;  %v6622_v32 = vld [vmem:[#allocation63_spill] sm:$0xff] }
 0x646   :  { %v2007_v57 = vsel %vm2004_vm7, %v2006_v48, %v2002_v29  ;;  %v2026_v51 = vmul.f32 %v2930_v9, %v1992_v62  ;;  %vm2019_vm11 = vcmp.eq.f32.partialorder %v2018_v37, 8.507059e+37  ;;  %v6592_v62 = vld [vmem:[#allocation18_spill] sm:$0xff]  ;;  %v6623_v9 = vld [vmem:[#allocation56_spill] sm:$0xff] }
 0x647   :  { %v2025_v26 = vmul.f32 %v2007_v57, %v5377_v22  ;;  %v2012_v58 = vmul.f32 %v2928_v53, %v2011_v47  ;;  %v6593_v22 = vld [vmem:[#allocation19_spill] sm:$0xff]  ;;  %v1507_v29 = vadd.f32 %v6623_v9, %v6622_v32  ;;  %v6624_v9 = vld [vmem:[#allocation50_spill] sm:$0xff] }
 0x649   :  { %v5769_v3 = vadd.f32 %v2026_v51, %v2025_v26  ;;  %v2013_v33 = vadd.f32 %v2928_v53, %v2012_v58 }
 0x64b   :  { %2931 = vtanh.f32 %v5769_v3  ;;  %v2017_v28 = vsel %vm2016_vm10, %v2928_v53, %v2013_v33 }
 0x64c   :  { %v2022_v1 = vsel %vm2019_vm11, %v2021_v60, %v2017_v28 }
 0x651   :  { %v2932_v38 = vpop.eup %2931 }
 0x652   :  { %v5772_v17 = vmul.f32 %v2932_v38, %v2022_v1 }
 0x654   :  { %2052 = vmatmul.f32.vlgmr.msrb.gmra.mxu0 %v5772_v17  ;;  %2072 = vmatmul.f32.vlgmr.msrb.gmra.mxu1 %v5772_v17 }
 0x655   :  { %2092 = vmatmul.f32.vlgmr.msrb.gmra.mxu2 %v5772_v17  ;;  %2112 = vmatmul.f32.vlgmr.msrb.gmra.mxu3 %v5772_v17 }
 0x656   :  { %2342 = vmatpush.msrb.mxu0 %v5389_v24  ;;  %2362 = vmatpush.msrb.mxu1 %v5395_v5  ;;  %v6594_v24 = vld [vmem:[#allocation20_spill] sm:$0xff]  ;;  %v6595_v5 = vld [vmem:[#allocation25_spill] sm:$0xff] }
 0x657   :  { %2382 = vmatpush.msrb.mxu2 %v5401_v6  ;;  %2402 = vmatpush.msrb.mxu3 %v5407_v7  ;;  %v6596_v6 = vld [vmem:[#allocation22_spill] sm:$0xff]  ;;  %v6597_v7 = vld [vmem:[#allocation23_spill] sm:$0xff] }
 0x658   :  { %2343 = vmatpush.msrb.mxu0 %v5413_v8  ;;  %2363 = vmatpush.msrb.mxu1 %v5419_v59  ;;  %v6598_v8 = vld [vmem:[#allocation24_spill] sm:$0xff]  ;;  %v6599_v59 = vld [vmem:[#allocation29_spill] sm:$0xff] }
 0x659   :  { %2383 = vmatpush.msrb.mxu2 %v5425_v13  ;;  %2403 = vmatpush.msrb.mxu3 %v5431_v14  ;;  %v6600_v13 = vld [vmem:[#allocation26_spill] sm:$0xff]  ;;  %v6601_v14 = vld [vmem:[#allocation27_spill] sm:$0xff] }
 0x65a   :  { %2344 = vmatpush.msrb.mxu0 %v5437_v50  ;;  %2364 = vmatpush.msrb.mxu1 %v5443_v35  ;;  %v6602_v50 = vld [vmem:[#allocation28_spill] sm:$0xff]  ;;  %v6603_v35 = vld [vmem:[#allocation33_spill] sm:$0xff] }
 0x65b   :  { %2384 = vmatpush.msrb.mxu2 %v5449_v0  ;;  %2404 = vmatpush.msrb.mxu3 %v5455_v46  ;;  %v6604_v0 = vld [vmem:[#allocation32_spill] sm:$0xff]  ;;  %v6605_v46 = vld [vmem:[#allocation30_spill] sm:$0xff] }
 0x65c   :  { %2345 = vmatpush.msrb.mxu0 %v5461_v42  ;;  %2365 = vmatpush.msrb.mxu1 %v5467_v16  ;;  %v6606_v42 = vld [vmem:[#allocation31_spill] sm:$0xff]  ;;  %v6607_v16 = vld [vmem:[#allocation37_spill] sm:$0xff] }
 0x65d   :  { %2385 = vmatpush.msrb.mxu2 %v5473_v40  ;;  %2405 = vmatpush.msrb.mxu3 %v5479_v49  ;;  %v6608_v40 = vld [vmem:[#allocation36_spill] sm:$0xff]  ;;  %v6609_v49 = vld [vmem:[#allocation34_spill] sm:$0xff] }
 0x65e   :  { %2346 = vmatpush.msrb.mxu0 %v5485_v23  ;;  %2366 = vmatpush.msrb.mxu1 %v5491_v18  ;;  %v6610_v23 = vld [vmem:[#allocation35_spill] sm:$0xff] }
 0x65f   :  { %2386 = vmatpush.msrb.mxu2 %v5497_v56  ;;  %2406 = vmatpush.msrb.mxu3 %v5503_v4  ;;  %v6611_v18 = vld [vmem:[#allocation39_spill] sm:$0xff]  ;;  %v3107_v56 = vld [vmem:[%s6146_s5 + $0x30] sm:$0xff]  ;;  %v6612_v4 = vld [vmem:[#allocation52_spill] sm:$0xff] }
 0x660   :  { %2347 = vmatpush.msrb.mxu0 %v5509_v54  ;;  %2367 = vmatpush.msrb.mxu1 %v5515_v11  ;;  %v6613_v54 = vld [vmem:[#allocation51_spill] sm:$0xff]  ;;  %v6614_v11 = vld [vmem:[#allocation38_spill] sm:$0xff] }
 0x661   :  { %2387 = vmatpush.msrb.mxu2 %v5521_v39  ;;  %2407 = vmatpush.msrb.mxu3 %v5527_v21  ;;  %v3108_v39 = vld [vmem:[%s6146_s5 + $0x10] sm:$0xff]  ;;  %v6615_v21 = vld [vmem:[#allocation40_spill] sm:$0xff] }
 0x662   :  { %2348 = vmatpush.msrb.mxu0 %v5533_v10  ;;  %2368 = vmatpush.msrb.mxu1 %v5539_v41  ;;  %v6616_v10 = vld [vmem:[#allocation17_spill] sm:$0xff]  ;;  %v6617_v41 = vld [vmem:[#allocation46_spill] sm:$0xff] }
 0x663   :  { %2388 = vmatpush.msrb.mxu2 %v5545_v2  ;;  %2408 = vmatpush.msrb.mxu3 %v5551_v36  ;;  %v1437_v2 = vadd.f32 %v6617_v41, %v6616_v10  ;;  %v6618_v36 = vld [vmem:[#allocation16_spill] sm:$0xff] }
 0x664   :  { %2349 = vmatpush.msrb.mxu0 %v5557_v15  ;;  %2369 = vmatpush.msrb.mxu1 %v5563_v19  ;;  %v6619_v15 = vld [vmem:[#allocation48_spill] sm:$0xff] }
 0x665   :  { %2389 = vmatpush.msrb.mxu2 %v5569_v20  ;;  %2409 = vmatpush.msrb.mxu3 %v5575_v63  ;;  %v1472_v19 = vadd.f32 %v6619_v15, %v6618_v36 }
 0x666   :  { %2350 = vmatpush.msrb.mxu0 %v5581_v55  ;;  %2370 = vmatpush.msrb.mxu1 %v5587_v45 }
 0x667   :  { %2390 = vmatpush.msrb.mxu2 %v5593_v52  ;;  %2410 = vmatpush.msrb.mxu3 %v5599_v43 }
 0x668   :  { %2351 = vmatpush.msrb.mxu0 %v5605_v61  ;;  %2371 = vmatpush.msrb.mxu1 %v5611_v44  ;;  %v6620_v61 = vld [vmem:[#allocation61_spill] sm:$0xff] }
 0x669   :  { %2391 = vmatpush.msrb.mxu2 %v6592_v62  ;;  %2411 = vmatpush.msrb.mxu3 %v6593_v22  ;;  %v6621_v44 = vld [vmem:[#allocation49_spill] sm:$0xff] }
 0x66a   :  { %2352 = vmatpush.msrb.mxu0 %v6594_v24  ;;  %2372 = vmatpush.msrb.mxu1 %v6595_v5  ;;  %v1542_v26 = vadd.f32 %v6621_v44, %v6620_v61  ;;  %v2555_v44 = vld [vmem:[%s6149_s8 + $0xd0] sm:$0xff] }
 0x66b   :  { %2392 = vmatpush.msrb.mxu2 %v6596_v6  ;;  %2412 = vmatpush.msrb.mxu3 %v6597_v7 }
 0x66c   :  { %2353 = vmatpush.msrb.mxu0 %v6598_v8  ;;  %2373 = vmatpush.msrb.mxu1 %v6599_v59 }
 0x66d   :  { %2393 = vmatpush.msrb.mxu2 %v6600_v13  ;;  %2413 = vmatpush.msrb.mxu3 %v6601_v14 }
 0x66e   :  { %2354 = vmatpush.msrb.mxu0 %v6602_v50  ;;  %2374 = vmatpush.msrb.mxu1 %v6603_v35 }
 0x66f   :  { %2394 = vmatpush.msrb.mxu2 %v6604_v0  ;;  %2414 = vmatpush.msrb.mxu3 %v6605_v46 }
 0x670   :  { %2355 = vmatpush.msrb.mxu0 %v6606_v42  ;;  %2375 = vmatpush.msrb.mxu1 %v6607_v16 }
 0x671   :  { %2395 = vmatpush.msrb.mxu2 %v6608_v40  ;;  %2415 = vmatpush.msrb.mxu3 %v6609_v49 }
 0x672   :  { %2356 = vmatpush.msrb.mxu0 %v6610_v23  ;;  %2376 = vmatpush.msrb.mxu1 %v6611_v18 }
 0x673   :  { %2396 = vmatpush.msrb.mxu2 %v3107_v56  ;;  %2416 = vmatpush.msrb.mxu3 %v6612_v4 }
 0x674   :  { %2357 = vmatpush.msrb.mxu0 %v6613_v54  ;;  %2377 = vmatpush.msrb.mxu1 %v6614_v11 }
 0x675   :  { %2397 = vmatpush.msrb.mxu2 %v3108_v39  ;;  %2417 = vmatpush.msrb.mxu3 %v6615_v21 }
 0x6d1   :  { %v2053_v20 = vpop.f32.mrf.mxu0  ;;  %v2073_v63 = vpop.f32.mrf.mxu1 }
 0x6d2   :  { %v2116_v55 = vadd.f32 %v2053_v20, %v1437_v2  ;;  %v2117_v45 = vadd.f32 %v2073_v63, %v1472_v19  ;;  %v2560_v19 = vld [vmem:[%s6149_s8 + $0xf8] sm:$0xff]  ;;  %v2527_v20 = vld [vmem:[%s6148_s7 + $0xf0] sm:$0xff] }
 0x6d3   :  { %v2528_v63 = vld [vmem:[%s6148_s7 + $0xf8] sm:$0xff] }
 0x6d4   :  { %v2776_v52 = vmul.f32 -1.442695, %v2116_v55  ;;  %v2777_v43 = vmul.f32 -1.442695, %v2117_v45  ;;  %v2557_v55 = vld [vmem:[%s6149_s8 + $0xe0] sm:$0xff]  ;;  %v2558_v45 = vld [vmem:[%s6149_s8 + $0xe8] sm:$0xff] }
 0x6d6   :  { %2933 = vpow2.f32 %v2776_v52  ;;  %v2525_v52 = vld [vmem:[%s6148_s7 + $0xe0] sm:$0xff] }
 0x6d7   :  { %2935 = vpow2.f32 %v2777_v43  ;;  %v2526_v43 = vld [vmem:[%s6148_s7 + $0xe8] sm:$0xff] }
 0x6d8   :  { %v2113_v51 = vpop.f32.mrf.mxu3  ;;  %v2093_v25 = vpop.f32.mrf.mxu2 }
 0x6d9   :  { %v2119_v47 = vadd.f32 %v2113_v51, %v1542_v26  ;;  %v2118_v33 = vadd.f32 %v2093_v25, %v1507_v29  ;;  %v2556_v26 = vld [vmem:[%s6149_s8 + $0xd8] sm:$0xff]  ;;  %v2523_v51 = vld [vmem:[%s6148_s7 + $0xd0] sm:$0xff]  ;;  %v1440_v29 = vadd.f32 %v6624_v9, %v6616_v10 }
 0x6da   :  { %v2552_v25 = vld [vmem:[%s6149_s8 + $0xb8] sm:$0xff] }
 0x6db   :  { %v2778_v53 = vmul.f32 -1.442695, %v2119_v47  ;;  %v2524_v47 = vld [vmem:[%s6148_s7 + $0xd8] sm:$0xff] }
 0x6dc   :  { %v2934_v31 = vpop.eup %2933 }
 0x6dd   :  { %v2936_v27 = vpop.eup %2935  ;;  %v2129_v12 = vadd.f32 1.0, %v2934_v31  ;;  %2937 = vpow2.f32 %v2778_v53  ;;  %v2553_v53 = vld [vmem:[%s6149_s8 + $0xc0] sm:$0xff]  ;;  %v2554_v31 = vld [vmem:[%s6149_s8 + $0xc8] sm:$0xff] }
 0x6de   :  { %v2130_v34 = vadd.f32 1.0, %v2936_v27  ;;  %v2521_v27 = vld [vmem:[%s6148_s7 + $0xc0] sm:$0xff] }
 0x6df   :  { %2939 = vrcp.f32 %v2129_v12  ;;  %v2143_v1 = vand.u32 2147483648, %v2129_v12  ;;  %v2141_v24 = vand.u32 2147483647, %v2129_v12  ;;  %vm2137_vm14 = vweird.f32 %v2129_v12 }
 0x6e0   :  { %2941 = vrcp.f32 %v2130_v34  ;;  %v2158_v62 = vand.u32 2147483648, %v2130_v34  ;;  %v2156_v6 = vand.u32 2147483647, %v2130_v34  ;;  %vm2152_vm15 = vweird.f32 %v2130_v34 }
 0x6e1   :  { %v2144_v59 = vor.u32 1.1754944e-38, %v2143_v1  ;;  %vm2142_vm2 = vcmp.eq.f32.partialorder %v2141_v24, 8.507059e+37  ;;  %v2547_v24 = vld [vmem:[%s6149_s8 + $0x90] sm:$0xff] }
 0x6e2   :  { %v2159_v50 = vor.u32 1.1754944e-38, %v2158_v62  ;;  %vm2157_vm3 = vcmp.eq.f32.partialorder %v2156_v6, 8.507059e+37  ;;  %v2515_v6 = vld [vmem:[%s6148_s7 + $0x90] sm:$0xff] }
 0x6e3   :  { %v2938_v48 = vpop.eup %2937 }
 0x6e4   :  { %v2131_v57 = vadd.f32 1.0, %v2938_v48  ;;  %v2519_v48 = vld [vmem:[%s6148_s7 + $0xb0] sm:$0xff] }
 0x6e5   :  { %v2940_v58 = vpop.eup %2939 }
 0x6e6   :  { %v2942_v30 = vpop.eup %2941  ;;  %v2133_v37 = vmul.f32 %v2940_v58, %v2129_v12  ;;  %2943 = vrcp.f32 %v2131_v57  ;;  %vm2138_vm12 = vweird.f32 %v2940_v58  ;;  %v2173_v54 = vand.u32 2147483648, %v2131_v57  ;;  %v2522_v12 = vld [vmem:[%s6148_s7 + $0xc8] sm:$0xff] }
 0x6e7   :  { %v2148_v28 = vmul.f32 %v2942_v30, %v2130_v34  ;;  %2945 = vtanh.f32 %v2118_v33  ;;  %vm2153_vm13 = vweird.f32 %v2942_v30  ;;  %vm2139_vm0 = vmor %vm2137_vm14, %vm2138_vm12  ;;  %vm2167_vm5 = vweird.f32 %v2131_v57  ;;  %v2551_v34 = vld [vmem:[%s6149_s8 + $0xb0] sm:$0xff]  ;;  %v2520_v33 = vld [vmem:[%s6148_s7 + $0xb8] sm:$0xff] }
 0x6e8   :  { %v2134_v60 = vsub.f32 1.0, %v2133_v37  ;;  %vm2154_vm1 = vmor %vm2152_vm15, %vm2153_vm13  ;;  %v2171_v11 = vand.u32 2147483647, %v2131_v57  ;;  %v2174_v21 = vor.u32 1.1754944e-38, %v2173_v54  ;;  %v2509_v54 = vld [vmem:[%s6148_s7 + $0x60] sm:$0xff] }
 0x6e9   :  { %v2149_v38 = vsub.f32 1.0, %v2148_v28  ;;  %v2549_v28 = vld [vmem:[%s6149_s8 + $0xa0] sm:$0xff] }
 0x6ea   :  { %v2135_v22 = vmul.f32 %v2940_v58, %v2134_v60  ;;  %vm2172_vm7 = vcmp.eq.f32.partialorder %v2171_v11, 8.507059e+37  ;;  %v2550_v60 = vld [vmem:[%s6149_s8 + $0xa8] sm:$0xff] }
 0x6eb   :  { %v2150_v5 = vmul.f32 %v2942_v30, %v2149_v38  ;;  %v2517_v38 = vld [vmem:[%s6148_s7 + $0xa0] sm:$0xff]  ;;  %v2510_v11 = vld [vmem:[%s6148_s7 + $0x68] sm:$0xff] }
 0x6ec   :  { %v2944_v7 = vpop.eup %2943  ;;  %v2136_v8 = vadd.f32 %v2940_v58, %v2135_v22  ;;  %v2518_v22 = vld [vmem:[%s6148_s7 + $0xa8] sm:$0xff] }
 0x6ed   :  { %v2151_v13 = vadd.f32 %v2942_v30, %v2150_v5  ;;  %v2163_v14 = vmul.f32 %v2944_v7, %v2131_v57  ;;  %v2946_v0 = vpop.eup %2945  ;;  %vm2168_vm4 = vweird.f32 %v2944_v7  ;;  %v6625_v57 = vld [vmem:[#allocation54_spill] sm:$0xff]  ;;  %v2548_v5 = vld [vmem:[%s6149_s8 + $0x98] sm:$0xff] }
 0x6ee   :  { %v2140_v35 = vsel %vm2139_vm0, %v2940_v58, %v2136_v8  ;;  %vm2169_vm6 = vmor %vm2167_vm5, %vm2168_vm4  ;;  %v1475_v58 = vadd.f32 %v6625_v57, %v6618_v36  ;;  %v2499_v57 = vld [vmem:[%s6148_s7 + $0x10] sm:$0xff] }
 0x6ef   :  { %v2145_v46 = vsel %vm2142_vm2, %v2144_v59, %v2140_v35  ;;  %v2155_v42 = vsel %vm2154_vm1, %v2942_v30, %v2151_v13  ;;  %v2164_v16 = vsub.f32 1.0, %v2163_v14  ;;  %v2516_v59 = vld [vmem:[%s6148_s7 + $0x98] sm:$0xff]  ;;  %v2545_v13 = vld [vmem:[%s6149_s8 + $0x80] sm:$0xff]  ;;  %v2546_v14 = vld [vmem:[%s6149_s8 + $0x88] sm:$0xff] }
 0x6f0   :  { %v2160_v40 = vsel %vm2157_vm3, %v2159_v50, %v2155_v42  ;;  %v2179_v49 = vmul.f32 %v2946_v0, %v2145_v46  ;;  %v2513_v50 = vld [vmem:[%s6148_s7 + $0x80] sm:$0xff]  ;;  %v2514_v35 = vld [vmem:[%s6148_s7 + $0x88] sm:$0xff]  ;;  %v2543_v0 = vld [vmem:[%s6149_s8 + $0x70] sm:$0xff] }
 0x6f1   :  { %v2178_v23 = vmul.f32 %v2160_v40, %v5769_v3  ;;  %v2165_v18 = vmul.f32 %v2944_v7, %v2164_v16  ;;  %v2559_v3 = vld [vmem:[%s6149_s8 + $0xf0] sm:$0xff]  ;;  %v2544_v46 = vld [vmem:[%s6149_s8 + $0x78] sm:$0xff]  ;;  %v6626_v42 = vld [vmem:[#allocation12_spill] sm:$0xff] }
 0x6f2   :  { %v1545_v16 = vadd.f32 %v6626_v42, %v6620_v61  ;;  %v2511_v40 = vld [vmem:[%s6148_s7 + $0x70] sm:$0xff] }
 0x6f3   :  { %v5855_v56 = vadd.f32 %v2179_v49, %v2178_v23  ;;  %v2166_v4 = vadd.f32 %v2944_v7, %v2165_v18  ;;  %v2512_v49 = vld [vmem:[%s6148_s7 + $0x78] sm:$0xff]  ;;  %v2541_v23 = vld [vmem:[%s6149_s8 + $0x60] sm:$0xff] }
 0x6f5   :  { %2947 = vtanh.f32 %v5855_v56  ;;  %v2170_v39 = vsel %vm2169_vm6, %v2944_v7, %v2166_v4  ;;  %v2542_v4 = vld [vmem:[%s6149_s8 + $0x68] sm:$0xff] }
 0x6f6   :  { %v2175_v2 = vsel %vm2172_vm7, %v2174_v21, %v2170_v39  ;;  %v2539_v21 = vld [vmem:[%s6149_s8 + $0x50] sm:$0xff] }
 0x6fb   :  { %v2948_v41 = vpop.eup %2947 }
 0x6fc   :  { %v5858_v15 = vmul.f32 %v2948_v41, %v2175_v2  ;;  %v2540_v41 = vld [vmem:[%s6149_s8 + $0x58] sm:$0xff]  ;;  %v2507_v2 = vld [vmem:[%s6148_s7 + $0x50] sm:$0xff] }
 0x6fe   :  { %2205 = vmatmul.f32.vlgmr.msra.gmra.mxu0 %v5858_v15  ;;  %2225 = vmatmul.f32.vlgmr.msra.gmra.mxu1 %v5858_v15 }
 0x6ff   :  { %2245 = vmatmul.f32.vlgmr.msra.gmra.mxu2 %v5858_v15  ;;  %2265 = vmatmul.f32.vlgmr.msra.gmra.mxu3 %v5858_v15 }
 0x700   :  { %2561 = vmatpush.msra.mxu0 %v2559_v3  ;;  %2596 = vmatpush.msra.mxu1 %v2560_v19  ;;  %v2508_v3 = vld [vmem:[%s6148_s7 + $0x58] sm:$0xff] }
 0x701   :  { %2631 = vmatpush.msra.mxu2 %v2527_v20  ;;  %2666 = vmatpush.msra.mxu3 %v2528_v63  ;;  %v2537_v20 = vld [vmem:[%s6149_s8 + $0x40] sm:$0xff]  ;;  %v2538_v63 = vld [vmem:[%s6149_s8 + $0x48] sm:$0xff] }
 0x702   :  { %2562 = vmatpush.msra.mxu0 %v2557_v55  ;;  %2597 = vmatpush.msra.mxu1 %v2558_v45  ;;  %v2505_v45 = vld [vmem:[%s6148_s7 + $0x40] sm:$0xff] }
 0x703   :  { %2632 = vmatpush.msra.mxu2 %v2525_v52  ;;  %2667 = vmatpush.msra.mxu3 %v2526_v43  ;;  %v2506_v52 = vld [vmem:[%s6148_s7 + $0x48] sm:$0xff] }
 0x704   :  { %2563 = vmatpush.msra.mxu0 %v2555_v44  ;;  %2598 = vmatpush.msra.mxu1 %v2556_v26 }
 0x705   :  { %2633 = vmatpush.msra.mxu2 %v2523_v51  ;;  %2668 = vmatpush.msra.mxu3 %v2524_v47  ;;  %v2535_v51 = vld [vmem:[%s6149_s8 + $0x30] sm:$0xff]  ;;  %v2536_v47 = vld [vmem:[%s6149_s8 + $0x38] sm:$0xff] }
 0x706   :  { %2564 = vmatpush.msra.mxu0 %v2553_v53  ;;  %2599 = vmatpush.msra.mxu1 %v2554_v31  ;;  %v2503_v53 = vld [vmem:[%s6148_s7 + $0x30] sm:$0xff]  ;;  %v2504_v31 = vld [vmem:[%s6148_s7 + $0x38] sm:$0xff] }
 0x707   :  { %2634 = vmatpush.msra.mxu2 %v2521_v27  ;;  %2669 = vmatpush.msra.mxu3 %v2522_v12  ;;  %v2533_v27 = vld [vmem:[%s6149_s8 + $0x20] sm:$0xff]  ;;  %v2534_v12 = vld [vmem:[%s6149_s8 + $0x28] sm:$0xff] }
 0x708   :  { %2565 = vmatpush.msra.mxu0 %v2551_v34  ;;  %2600 = vmatpush.msra.mxu1 %v2552_v25  ;;  %v2501_v34 = vld [vmem:[%s6148_s7 + $0x20] sm:$0xff]  ;;  %v2502_v25 = vld [vmem:[%s6148_s7 + $0x28] sm:$0xff] }
 0x709   :  { %2635 = vmatpush.msra.mxu2 %v2519_v48  ;;  %2670 = vmatpush.msra.mxu3 %v2520_v33  ;;  %v2531_v48 = vld [vmem:[%s6149_s8 + $0x10] sm:$0xff] }
 0x70a   :  { %2566 = vmatpush.msra.mxu0 %v2549_v28  ;;  %2601 = vmatpush.msra.mxu1 %v2550_v60  ;;  %v2529_v28 = vld [vmem:[%s6149_s8] sm:$0xff]  ;;  %v2530_v60 = vld [vmem:[%s6149_s8 + $0x8] sm:$0xff] }
 0x70b   :  { %2636 = vmatpush.msra.mxu2 %v2517_v38  ;;  %2671 = vmatpush.msra.mxu3 %v2518_v22 }
 0x70c   :  { %2567 = vmatpush.msra.mxu0 %v2547_v24  ;;  %2602 = vmatpush.msra.mxu1 %v2548_v5 }
 0x70d   :  { %2637 = vmatpush.msra.mxu2 %v2515_v6  ;;  %2672 = vmatpush.msra.mxu3 %v2516_v59 }
 0x70e   :  { %2568 = vmatpush.msra.mxu0 %v2545_v13  ;;  %2603 = vmatpush.msra.mxu1 %v2546_v14 }
 0x70f   :  { %2638 = vmatpush.msra.mxu2 %v2513_v50  ;;  %2673 = vmatpush.msra.mxu3 %v2514_v35 }
 0x710   :  { %2569 = vmatpush.msra.mxu0 %v2543_v0  ;;  %2604 = vmatpush.msra.mxu1 %v2544_v46 }
 0x711   :  { %2639 = vmatpush.msra.mxu2 %v2511_v40  ;;  %2674 = vmatpush.msra.mxu3 %v2512_v49 }
 0x712   :  { %2570 = vmatpush.msra.mxu0 %v2541_v23  ;;  %2605 = vmatpush.msra.mxu1 %v2542_v4 }
 0x713   :  { %2640 = vmatpush.msra.mxu2 %v2509_v54  ;;  %2675 = vmatpush.msra.mxu3 %v2510_v11 }
 0x714   :  { %2571 = vmatpush.msra.mxu0 %v2539_v21  ;;  %2606 = vmatpush.msra.mxu1 %v2540_v41 }
 0x715   :  { %2641 = vmatpush.msra.mxu2 %v2507_v2  ;;  %2676 = vmatpush.msra.mxu3 %v2508_v3 }
 0x716   :  { %2572 = vmatpush.msra.mxu0 %v2537_v20  ;;  %2607 = vmatpush.msra.mxu1 %v2538_v63 }
 0x717   :  { %2642 = vmatpush.msra.mxu2 %v2505_v45  ;;  %2677 = vmatpush.msra.mxu3 %v2506_v52 }
 0x718   :  { %2573 = vmatpush.msra.mxu0 %v2535_v51  ;;  %2608 = vmatpush.msra.mxu1 %v2536_v47  ;;  %v6629_v47 = vld [vmem:[#allocation58_spill] sm:$0xff] }
 0x719   :  { %2643 = vmatpush.msra.mxu2 %v2503_v53  ;;  %2678 = vmatpush.msra.mxu3 %v2504_v31  ;;  %v6630_v53 = vld [vmem:[#allocation21_spill] sm:$0xff] }
 0x71a   :  { %2574 = vmatpush.msra.mxu0 %v2533_v27  ;;  %2609 = vmatpush.msra.mxu1 %v2534_v12  ;;  %v6631_v31 = vld [vmem:[#allocation9_spill] sm:$0xff]  ;;  %v6632_v27 = vld [vmem:[#allocation10_spill] sm:$0xff]  ;;  %v6633_v12 = vld [vmem:[#allocation11_spill] sm:$0xff] }
 0x71b   :  { %2644 = vmatpush.msra.mxu2 %v2501_v34  ;;  %2679 = vmatpush.msra.mxu3 %v2502_v25  ;;  %v6634_v34 = vld [vmem:[#allocation13_spill] sm:$0xff] }
 0x71c   :  { %2575 = vmatpush.msra.mxu0 %v2531_v48  ;;  %v6635_v25 = vld [vmem:[#allocation57_spill] sm:$0xff] }
 0x71d   :  { %2645 = vmatpush.msra.mxu2 %v2499_v57 }
 0x71e   :  { %2576 = vmatpush.msra.mxu0 %v2529_v28  ;;  %v6638_v28 = vld [vmem:[#allocation60_spill] sm:$0xff] }
 0x77b   :  { %v2206_v30 = vpop.f32.mrf.mxu0  ;;  %v2226_v37 = vpop.f32.mrf.mxu1 }
 0x77c   :  { %v2269_v1 = vadd.f32 %v2206_v30, %v1440_v29  ;;  %v2270_v62 = vadd.f32 %v2226_v37, %v1475_v58  ;;  %v2532_v29 = vld [vmem:[%s6149_s8 + $0x18] sm:$0xff] }
 0x77d   :  { %v2500_v58 = vld [vmem:[%s6148_s7 + $0x18] sm:$0xff]  ;;  %2610 = vmatpush.msra.mxu1 %v2532_v29 }
 0x77e   :  { %v2779_v7 = vmul.f32 -1.442695, %v2269_v1  ;;  %v2780_v8 = vmul.f32 -1.442695, %v2270_v62  ;;  %v6627_v30 = vld [vmem:[#allocation59_spill] sm:$0xff]  ;;  %v2497_v1 = vld [vmem:[%s6148_s7] sm:$0xff]  ;;  %2680 = vmatpush.msra.mxu3 %v2500_v58 }
 0x77f   :  { %v1510_v37 = vadd.f32 %v6627_v30, %v6622_v32  ;;  %v2498_v62 = vld [vmem:[%s6148_s7 + $0x8] sm:$0xff]  ;;  %2611 = vmatpush.msra.mxu1 %v2530_v60  ;;  %2646 = vmatpush.msra.mxu2 %v2497_v1  ;;  %v1548_v60 = vadd.f32 %v6638_v28, %v6620_v61 }
 0x780   :  { %2949 = vpow2.f32 %v2779_v7  ;;  %2681 = vmatpush.msra.mxu3 %v2498_v62 }
 0x781   :  { %2951 = vpow2.f32 %v2780_v8 }
 0x782   :  { %v2266_v18 = vpop.f32.mrf.mxu3  ;;  %v2246_v9 = vpop.f32.mrf.mxu2 }
 0x783   :  { %v2272_v39 = vadd.f32 %v2266_v18, %v1545_v16  ;;  %v2271_v24 = vadd.f32 %v2246_v9, %v1510_v37  ;;  %v6637_v9 = vld [vmem:[#allocation15_spill] sm:$0xff] }
 0x785   :  { %v2781_v19 = vmul.f32 -1.442695, %v2272_v39 }
 0x786   :  { %v2950_v55 = vpop.eup %2949 }
 0x787   :  { %v2952_v43 = vpop.eup %2951  ;;  %v6014_v44 = vadd.f32 1.0, %v2950_v55  ;;  %2953 = vpow2.f32 %v2781_v19 }
 0x788   :  { %v6016_v26 = vadd.f32 1.0, %v2952_v43 }
 0x789   :  { %2955 = vrcp.f32 %v6014_v44  ;;  %v2296_v13 = vand.u32 2147483648, %v6014_v44  ;;  %v2294_v35 = vand.u32 2147483647, %v6014_v44  ;;  %vm2290_vm10 = vweird.f32 %v6014_v44 }
 0x78a   :  { %2957 = vrcp.f32 %v6016_v26  ;;  %v2311_v14 = vand.u32 2147483648, %v6016_v26  ;;  %v2309_v46 = vand.u32 2147483647, %v6016_v26  ;;  %vm2305_vm11 = vweird.f32 %v6016_v26 }
 0x78b   :  { %v2297_v40 = vor.u32 1.1754944e-38, %v2296_v13  ;;  %vm2295_vm14 = vcmp.eq.f32.partialorder %v2294_v35, 8.507059e+37 }
 0x78c   :  { %v2312_v18 = vor.u32 1.1754944e-38, %v2311_v14  ;;  %vm2310_vm15 = vcmp.eq.f32.partialorder %v2309_v46, 8.507059e+37 }
 0x78d   :  { %v2954_v33 = vpop.eup %2953 }
 0x78e   :  { %v2284_v38 = vadd.f32 1.0, %v2954_v33 }
 0x78f   :  { %v2956_v22 = vpop.eup %2955 }
 0x790   :  { %v2958_v5 = vpop.eup %2957  ;;  %v2286_v6 = vmul.f32 %v2956_v22, %v6014_v44  ;;  %2959 = vrcp.f32 %v2284_v38  ;;  %vm2291_vm8 = vweird.f32 %v2956_v22  ;;  %v2326_v55 = vand.u32 2147483648, %v2284_v38 }
 0x791   :  { %v2301_v7 = vmul.f32 %v2958_v5, %v6016_v26  ;;  %2961 = vtanh.f32 %v2271_v24  ;;  %vm2306_vm9 = vweird.f32 %v2958_v5  ;;  %vm2292_vm12 = vmor %vm2290_vm10, %vm2291_vm8  ;;  %vm2320_vm1 = vweird.f32 %v2284_v38 }
 0x792   :  { %v2287_v8 = vsub.f32 1.0, %v2286_v6  ;;  %vm2307_vm13 = vmor %vm2305_vm11, %vm2306_vm9  ;;  %v2324_v45 = vand.u32 2147483647, %v2284_v38  ;;  %v2327_v43 = vor.u32 1.1754944e-38, %v2326_v55 }
 0x793   :  { %v2302_v59 = vsub.f32 1.0, %v2301_v7 }
 0x794   :  { %v2288_v50 = vmul.f32 %v2956_v22, %v2287_v8  ;;  %vm2325_vm3 = vcmp.eq.f32.partialorder %v2324_v45, 8.507059e+37 }
 0x795   :  { %v2303_v0 = vmul.f32 %v2958_v5, %v2302_v59 }
 0x796   :  { %v2960_v42 = vpop.eup %2959  ;;  %v2289_v16 = vadd.f32 %v2956_v22, %v2288_v50 }
 0x797   :  { %v2304_v49 = vadd.f32 %v2958_v5, %v2303_v0  ;;  %v2316_v23 = vmul.f32 %v2960_v42, %v2284_v38  ;;  %v2962_v54 = vpop.eup %2961  ;;  %vm2321_vm0 = vweird.f32 %v2960_v42 }
 0x798   :  { %v2293_v4 = vsel %vm2292_vm12, %v2956_v22, %v2289_v16  ;;  %vm2322_vm2 = vmor %vm2320_vm1, %vm2321_vm0 }
 0x799   :  { %v2298_v11 = vsel %vm2295_vm14, %v2297_v40, %v2293_v4  ;;  %v2308_v39 = vsel %vm2307_vm13, %v2958_v5, %v2304_v49  ;;  %v2317_v21 = vsub.f32 1.0, %v2316_v23 }
 0x79a   :  { %v2313_v41 = vsel %vm2310_vm15, %v2312_v18, %v2308_v39  ;;  %v2332_v2 = vmul.f32 %v2962_v54, %v2298_v11 }
 0x79b   :  { %v2331_v3 = vmul.f32 %v2313_v41, %v5855_v56  ;;  %v2318_v19 = vmul.f32 %v2960_v42, %v2317_v21  ;;  %v6628_v56 = vld [vmem:[#allocation64_spill] sm:$0xff] }
 0x79d   :  { %v6079_v20 = vadd.f32 %v2332_v2, %v2331_v3  ;;  %v2319_v63 = vadd.f32 %v2960_v42, %v2318_v19 }
 0x79f   :  { %2963 = vtanh.f32 %v6079_v20  ;;  %v2323_v52 = vsel %vm2322_vm2, %v2960_v42, %v2319_v63  ;;  %v6639_v42 = vld [vmem:[#allocation62_spill] sm:$0xff] }
 0x7a0   :  { %v2328_v26 = vsel %vm2325_vm3, %v2327_v43, %v2323_v52  ;;  %v1513_v16 = vadd.f32 %v6639_v42, %v6622_v32 }
 0x7a5   :  { %v2964_v44 = vpop.eup %2963 }
 0x7a6   :  { %v2335_v51 = vmul.f32 %v2964_v44, %v2328_v26 }
 0x7a8   :  { %2358 = vmatmul.f32.vlgmr.msrb.gmra.mxu0 %v2335_v51  ;;  %2378 = vmatmul.f32.vlgmr.msrb.gmra.mxu1 %v2335_v51 }
 0x7a9   :  { %2398 = vmatmul.f32.vlgmr.msrb.gmra.mxu2 %v2335_v51  ;;  %2418 = vmatmul.f32.vlgmr.msrb.gmra.mxu3 %v2335_v51 }
 0x7b0   :  { %2577 = vmatmul.f32.vlgmr.msra.gmra.mxu0 %v6628_v56  ;;  %2612 = vmatmul.f32.vlgmr.msra.gmra.mxu1 %v6628_v56 }
 0x7b1   :  { %2647 = vmatmul.f32.vlgmr.msra.gmra.mxu2 %v6629_v47  ;;  %2682 = vmatmul.f32.vlgmr.msra.gmra.mxu3 %v6629_v47 }
 0x7b8   :  { %2580 = vmatmul.f32.gmra.mxu0 %v6630_v53  ;;  %2615 = vmatmul.f32.gmra.mxu1 %v6630_v53 }
 0x7b9   :  { %2650 = vmatmul.f32.gmra.mxu2 %v6631_v31  ;;  %2685 = vmatmul.f32.gmra.mxu3 %v6631_v31 }
 0x7c0   :  { %2583 = vmatmul.f32.gmra.mxu0 %v5772_v17  ;;  %2618 = vmatmul.f32.gmra.mxu1 %v5772_v17  ;;  %v6636_v17 = vld [vmem:[#allocation14_spill] sm:$0xff] }
 0x7c1   :  { %2653 = vmatmul.f32.gmra.mxu2 %v6632_v27  ;;  %2688 = vmatmul.f32.gmra.mxu3 %v6632_v27  ;;  %v1443_v48 = vadd.f32 %v6636_v17, %v6616_v10 }
 0x7c8   :  { %2586 = vmatmul.f32.gmra.mxu0 %v5858_v15  ;;  %2621 = vmatmul.f32.gmra.mxu1 %v5858_v15  ;;  %v1478_v15 = vadd.f32 %v6637_v9, %v6618_v36  ;;  %v2701_v36 = vld [vmem:[%s6150_s9] sm:$0x3]  ;;  %s3136_s9 = smov [#allocation5]  }
 0x7c9   :  { %2656 = vmatmul.f32.gmra.mxu2 %v6633_v12  ;;  %2691 = vmatmul.f32.gmra.mxu3 %v6633_v12  ;;  %v6111_v59 = vperm.slane %v2701_v36, 0  ;;  %v6113_v61 = vperm.slane %v2701_v36, 1  ;;  %s2735_s29 = sshll.u32 %s3136_s9, 4  ;;  %s2736_s29 = int_to_ptr.vmem [resolvable:$true] %s2735_s29 }
 0x7d0   :  { %2589 = vmatmul.f32.gmra.mxu0 %v2335_v51  ;;  %2624 = vmatmul.f32.gmra.mxu1 %v2335_v51 }
 0x7d1   :  { %2659 = vmatmul.f32.gmra.mxu2 %v6634_v34  ;;  %2694 = vmatmul.f32.gmra.mxu3 %v6634_v34 }
 0x7d9   :  { %2662 = vmatmul.f32.gmra.mxu2 %v6635_v25  ;;  %2697 = vmatmul.f32.gmra.mxu3 %v6635_v25 }
 0x825   :  { %v2359_v29 = vpop.f32.mrf.mxu0  ;;  %v2379_v57 = vpop.f32.mrf.mxu1 }
 0x826   :  { %v2422_v58 = vadd.f32 %v2359_v29, %v1443_v48  ;;  %v2423_v33 = vadd.f32 %v2379_v57, %v1478_v15 }
 0x828   :  { %v2782_v30 = vmul.f32 -1.442695, %v2422_v58  ;;  %v2783_v37 = vmul.f32 -1.442695, %v2423_v33 }
 0x82a   :  { %2965 = vpow2.f32 %v2782_v30 }
 0x82b   :  { %2967 = vpow2.f32 %v2783_v37 }
 0x82c   :  { %v2399_v38 = vpop.f32.mrf.mxu2  ;;  %v2419_v1 = vpop.f32.mrf.mxu3 }
 0x82d   :  { %v2425_v62 = vadd.f32 %v2419_v1, %v1548_v60  ;;  %v2578_v22 = vpop.f32.mrf.mxu0  ;;  %v2613_v24 = vpop.f32.mrf.mxu1  ;;  %v2424_v18 = vadd.f32 %v2399_v38, %v1513_v16 }
 0x82f   :  { %v2784_v10 = vmul.f32 -1.442695, %v2425_v62 }
 0x830   :  { %v2966_v5 = vpop.eup %2965 }
 0x831   :  { %v2968_v6 = vpop.eup %2967  ;;  %v2435_v7 = vadd.f32 1.0, %v2966_v5  ;;  %2969 = vpow2.f32 %v2784_v10 }
 0x832   :  { %v2436_v8 = vadd.f32 1.0, %v2968_v6 }
 0x833   :  { %2971 = vrcp.f32 %v2435_v7  ;;  %v2447_v2 = vand.u32 2147483647, %v2435_v7  ;;  %v2449_v63 = vand.u32 2147483648, %v2435_v7  ;;  %vm2443_vm6 = vweird.f32 %v2435_v7 }
 0x834   :  { %2973 = vrcp.f32 %v2436_v8  ;;  %v2648_v13 = vpop.f32.mrf.mxu2  ;;  %v2683_v14 = vpop.f32.mrf.mxu3  ;;  %v2464_v52 = vand.u32 2147483648, %v2436_v8  ;;  %v2462_v44 = vand.u32 2147483647, %v2436_v8  ;;  %vm2458_vm7 = vweird.f32 %v2436_v8 }
 0x835   :  { %v2649_v50 = vadd.f32 %v2648_v13, %v2578_v22  ;;  %v2684_v35 = vadd.f32 %v2683_v14, %v2613_v24  ;;  %v2581_v0 = vpop.f32.mrf.mxu0  ;;  %v2616_v46 = vpop.f32.mrf.mxu1  ;;  %v2450_v12 = vor.u32 1.1754944e-38, %v2449_v63  ;;  %vm2448_vm10 = vcmp.eq.f32.partialorder %v2447_v2, 8.507059e+37 }
 0x836   :  { %v2465_v48 = vor.u32 1.1754944e-38, %v2464_v52  ;;  %vm2463_vm11 = vcmp.eq.f32.partialorder %v2462_v44, 8.507059e+37 }
 0x837   :  { %v2970_v40 = vpop.eup %2969  ;;  %v2707_v49 = vadd.f32 %v6111_v59, %v2649_v50  ;;  %v2708_v23 = vadd.f32 %v6113_v61, %v2684_v35 }
 0x838   :  { %v6119_v4 = vadd.f32 1.0, %v2970_v40 }
 0x839   :  { %v2972_v54 = vpop.eup %2971  ;;  %2719 = vst [vmem:[#allocation5] sm:$0xff] %v2707_v49 }
 0x83a   :  { %v2974_v11 = vpop.eup %2973  ;;  %v2439_v39 = vmul.f32 %v2972_v54, %v2435_v7  ;;  %2975 = vrcp.f32 %v6119_v4  ;;  %2720 = vst [vmem:[#allocation5 + $0x8] sm:$0xff] %v2708_v23  ;;  %vm2444_vm4 = vweird.f32 %v2972_v54  ;;  %v2479_v6 = vand.u32 2147483648, %v6119_v4 }
 0x83b   :  { %v2454_v21 = vmul.f32 %v2974_v11, %v2436_v8  ;;  %2977 = vtanh.f32 %v2424_v18  ;;  %vm2459_vm5 = vweird.f32 %v2974_v11  ;;  %vm2445_vm8 = vmor %vm2443_vm6, %vm2444_vm4  ;;  %vm2473_vm13 = vweird.f32 %v6119_v4 }
 0x83c   :  { %v2440_v41 = vsub.f32 1.0, %v2439_v39  ;;  %v2651_v32 = vpop.f32.mrf.mxu2  ;;  %v2686_v3 = vpop.f32.mrf.mxu3  ;;  %vm2460_vm9 = vmor %vm2458_vm7, %vm2459_vm5  ;;  %v2480_v35 = vor.u32 1.1754944e-38, %v2479_v6 }
 0x83d   :  { %v2455_v19 = vsub.f32 1.0, %v2454_v21  ;;  %v2652_v55 = vadd.f32 %v2651_v32, %v2581_v0  ;;  %v2687_v45 = vadd.f32 %v2686_v3, %v2616_v46  ;;  %v2584_v47 = vpop.f32.mrf.mxu0  ;;  %v2619_v53 = vpop.f32.mrf.mxu1 }
 0x83e   :  { %v2441_v43 = vmul.f32 %v2972_v54, %v2440_v41 }
 0x83f   :  { %v2456_v26 = vmul.f32 %v2974_v11, %v2455_v19  ;;  %v2709_v51 = vadd.f32 %v6111_v59, %v2652_v55  ;;  %v2710_v56 = vadd.f32 %v6113_v61, %v2687_v45 }
 0x840   :  { %v2976_v31 = vpop.eup %2975  ;;  %v2442_v27 = vadd.f32 %v2972_v54, %v2441_v43 }
 0x841   :  { %v2457_v34 = vadd.f32 %v2974_v11, %v2456_v26  ;;  %v2469_v25 = vmul.f32 %v2976_v31, %v6119_v4  ;;  %2721 = vst [vmem:[#allocation5 + $0x10] sm:$0xff] %v2709_v51  ;;  %v2978_v17 = vpop.eup %2977  ;;  %vm2474_vm12 = vweird.f32 %v2976_v31 }
 0x842   :  { %v2446_v9 = vsel %vm2445_vm8, %v2972_v54, %v2442_v27  ;;  %2722 = vst [vmem:[#allocation5 + $0x18] sm:$0xff] %v2710_v56  ;;  %vm2475_vm14 = vmor %vm2473_vm13, %vm2474_vm12 }
 0x843   :  { %v2451_v15 = vsel %vm2448_vm10, %v2450_v12, %v2446_v9  ;;  %v2461_v29 = vsel %vm2460_vm9, %v2974_v11, %v2457_v34  ;;  %v2470_v57 = vsub.f32 1.0, %v2469_v25 }
 0x844   :  { %v2466_v58 = vsel %vm2463_vm11, %v2465_v48, %v2461_v29  ;;  %v2485_v33 = vmul.f32 %v2978_v17, %v2451_v15  ;;  %v2654_v30 = vpop.f32.mrf.mxu2  ;;  %v2689_v37 = vpop.f32.mrf.mxu3 }
 0x845   :  { %v2484_v28 = vmul.f32 %v2466_v58, %v6079_v20  ;;  %v2655_v60 = vadd.f32 %v2654_v30, %v2584_v47  ;;  %v2690_v38 = vadd.f32 %v2689_v37, %v2619_v53  ;;  %v2471_v1 = vmul.f32 %v2976_v31, %v2470_v57  ;;  %v2587_v5 = vpop.f32.mrf.mxu0  ;;  %v2622_v36 = vpop.f32.mrf.mxu1 }
 0x846   :  { %v2477_v20 = vand.u32 2147483647, %v6119_v4 }
 0x847   :  { %v2486_v62 = vadd.f32 %v2485_v33, %v2484_v28  ;;  %v2711_v22 = vadd.f32 %v6111_v59, %v2655_v60  ;;  %v2712_v24 = vadd.f32 %v6113_v61, %v2690_v38  ;;  %v2472_v10 = vadd.f32 %v2976_v31, %v2471_v1 }
 0x848   :  { %vm2478_vm15 = vcmp.eq.f32.partialorder %v2477_v20, 8.507059e+37 }
 0x849   :  { %2979 = vtanh.f32 %v2486_v62  ;;  %2723 = vst [vmem:[#allocation5 + $0x20] sm:$0xff] %v2711_v22  ;;  %v2476_v13 = vsel %vm2475_vm14, %v2976_v31, %v2472_v10 }
 0x84a   :  { %2724 = vst [vmem:[#allocation5 + $0x28] sm:$0xff] %v2712_v24  ;;  %v2481_v16 = vsel %vm2478_vm15, %v2480_v35, %v2476_v13 }
 0x84c   :  { %v2657_v7 = vpop.f32.mrf.mxu2  ;;  %v2692_v8 = vpop.f32.mrf.mxu3 }
 0x84d   :  { %v2658_v14 = vadd.f32 %v2657_v7, %v2587_v5  ;;  %v2693_v50 = vadd.f32 %v2692_v8, %v2622_v36  ;;  %v2590_v49 = vpop.f32.mrf.mxu0  ;;  %v2625_v23 = vpop.f32.mrf.mxu1 }
 0x84f   :  { %v2980_v0 = vpop.eup %2979  ;;  %v2713_v46 = vadd.f32 %v6111_v59, %v2658_v14  ;;  %v2714_v42 = vadd.f32 %v6113_v61, %v2693_v50 }
 0x850   :  { %v2488_v40 = vmul.f32 %v2980_v0, %v2481_v16 }
 0x851   :  { %2725 = vst [vmem:[#allocation5 + $0x30] sm:$0xff] %v2713_v46 }
 0x852   :  { %2726 = vst [vmem:[#allocation5 + $0x38] sm:$0xff] %v2714_v42  ;;  %2592 = vmatmul.f32.gmra.mxu0 %v2488_v40  ;;  %2627 = vmatmul.f32.gmra.mxu1 %v2488_v40 }
 0x854   :  { %v2660_v18 = vpop.f32.mrf.mxu2  ;;  %v2695_v4 = vpop.f32.mrf.mxu3 }
 0x855   :  { %v2661_v54 = vadd.f32 %v2660_v18, %v2590_v49  ;;  %v2696_v11 = vadd.f32 %v2695_v4, %v2625_v23 }
 0x857   :  { %v2715_v39 = vadd.f32 %v6111_v59, %v2661_v54  ;;  %v2716_v21 = vadd.f32 %v6113_v61, %v2696_v11 }
 0x859   :  { %2727 = vst [vmem:[#allocation5 + $0x40] sm:$0xff] %v2715_v39 }
 0x85a   :  { %2728 = vst [vmem:[#allocation5 + $0x48] sm:$0xff] %v2716_v21 }
 0x85c   :  { %v2663_v41 = vpop.f32.mrf.mxu2  ;;  %v2698_v2 = vpop.f32.mrf.mxu3 }
 0x8cf   :  { %v2593_v32 = vpop.f32.mrf.mxu0  ;;  %v2628_v3 = vpop.f32.mrf.mxu1 }
 0x8d0   :  { %v2664_v19 = vadd.f32 %v2663_v41, %v2593_v32  ;;  %v2699_v63 = vadd.f32 %v2698_v2, %v2628_v3 }
 0x8d2   :  { %v2717_v55 = vadd.f32 %v6111_v59, %v2664_v19  ;;  %v2718_v45 = vadd.f32 %v6113_v61, %v2699_v63 }
 0x8d4   :  { %2729 = vst [vmem:[#allocation5 + $0x50] sm:$0xff] %v2717_v55 }
 0x8d5   :  { %2730 = vst [vmem:[#allocation5 + $0x58] sm:$0xff] %v2718_v45 }
 0x8d6   :  { %2743 = dma.vmem_to_hbm [thread:$0]  %s2736_s29, 1536, %s2738_s11, [#allocation6], %s3137_s4, %s3137_s4, %s3138_s12  }
 0x8d7   :  { %3133 = dma.done.wait [#allocation6], 1536  }
 0x8d8   :  { %3134 = vsyncadd [#allocation6], 4294965760 }
 0x8d9   :  { %2748 = vsyncpa [#allocation6], 1 }

</bundles_post_ra>
